<compile_context>
chip_gen: v7x
topology: tpu7x:2x2x1
jax: 0.10.0
libtpu: 0.0.40
codegen_flags: <defaults>
</compile_context>

<pallas_src>
import functools
import math

import numpy as np
import jax
import jax.numpy as jnp
from jax import lax
from jax.experimental import pallas as pl
from jax.experimental.pallas import tpu as pltpu

EPS = 1e-5  # torch BatchNorm2d default


# ---------------------------------------------------------------------------
# Fused per-batch kernel: the entire DAHead forward, channel-major layout.
#   x_ref   : (1, cin, hw)            f32
#   w_in    : (9, 2c, cin)            bf16   3x3 conv taps (pam|cam, BN folded)
#   b_in    : (2c, 1)                 f32
#   w_qkv   : (2*qpad + c, 2c)        bf16   [q pad | k pad | alpha*v], cam cols 0
#   b_qkv   : (2*qpad + c, 1)         f32
#   w_g1    : (crc, 2c)  b_g1 (crc,1) bf16/f32  gate layer 1 (pam cols 0)
#   w_g2    : (c, crc)   b_g2 (c, 1)  bf16/f32  gate layer 2
#   w_out   : (nc, 2c)                bf16   [pam_out | cam_out] stacked
#   w_p     : (nc, c)                 bf16   pam_out (for the attention context)
#   b_out   : (nc, 1)                 f32    pam_out_b + cam_out_b
#   up      : (hw, 4*hw)              bf16   x2 bilinear operator kron(Ah,Aw)^T
#   o_ref   : (1, nc, 4*hw)           f32
# ---------------------------------------------------------------------------
def _da_head_kernel(x_ref, w_in_ref, b_in_ref, w_qkv_ref, b_qkv_ref,
                    w_g1_ref, b_g1_ref, w_g2_ref, b_g2_ref,
                    w_out_ref, w_p_ref, b_out_ref, up_ref, o_ref,
                    *, h, w, c_pam, qpad):
    hw = h * w
    x = x_ref[0]                                              # (cin, hw) f32

    # ---- fused pam_in_conv + cam_in_conv: 3x3 conv as 9 lane-rolled matmuls
    #      (image borders masked in-kernel), folded-BN bias, LeakyReLU(0.2).
    lane = lax.broadcasted_iota(jnp.int32, (1, hw), 1).astype(jnp.float32)
    row = jnp.floor((lane + 0.5) * (1.0 / w))
    col = lane - row * w
    acc = jnp.zeros((w_in_ref.shape[1], hw), jnp.float32) + b_in_ref[...]
    for di in (-1, 0, 1):
        for dj in (-1, 0, 1):
            tap = (di + 1) * 3 + (dj + 1)
            off = di * w + dj
            shifted = x if off == 0 else pltpu.roll(x, shift=(-off) % hw, axis=1)
            valid = ((row + di >= 0) & (row + di < h) &
                     (col + dj >= 0) & (col + dj < w))
            patch = jnp.where(valid, shifted, 0.0).astype(jnp.bfloat16)
            acc = acc + jnp.dot(w_in_ref[tap], patch,
                                preferred_element_type=jnp.float32)
    feat = jnp.maximum(acc, 0.2 * acc)                        # (2c, hw) [pam|cam]
    feat_bf = feat.astype(jnp.bfloat16)

    # ---- PositionAttention: one fused [q|k|alpha*v] projection (cam input
    #      columns are zero), tile-aligned split, online softmax.
    qkv = jnp.dot(w_qkv_ref[...], feat_bf,
                  preferred_element_type=jnp.float32) + b_qkv_ref[...]
    q = jnp.transpose(qkv[:qpad, :]).astype(jnp.bfloat16)             # (hw, qpad)
    k = jnp.transpose(qkv[qpad:2 * qpad, :]).astype(jnp.bfloat16)     # (hw, qpad)
    v = qkv[2 * qpad:, :].astype(jnp.bfloat16)                        # (c, hw)
    s = lax.dot_general(q, k, (((1,), (1,)), ((), ())),
                        preferred_element_type=jnp.float32)           # (hw, hw)
    s = s - jnp.max(s, axis=-1, keepdims=True)
    p = jnp.exp(s)   # f32 exp (v5e-safe); TODO(synk): bf16 p/attn on v6e/v7x
    attn = p * pl.reciprocal(jnp.sum(p, axis=-1, keepdims=True), approx=True)
    ctx = lax.dot_general(v, attn.astype(jnp.bfloat16),
                          (((1,), (1,)), ((), ())),
                          preferred_element_type=jnp.float32)         # alpha*bmm(v, attn^T), (c, hw)

    # ---- ChannelAttention gate, fused in (pam columns of w_g1 are zero).
    g1 = jnp.dot(w_g1_ref[...], feat_bf, preferred_element_type=jnp.float32)
    z = jnp.sum(g1, axis=-1, keepdims=True) * (1.0 / hw) + b_g1_ref[...]
    z = jnp.maximum(z, 0.2 * z)                                        # LeakyReLU(0.2)
    gs = jnp.dot(w_g2_ref[...], z.astype(jnp.bfloat16),
                 preferred_element_type=jnp.float32) + b_g2_ref[...]
    gate = pl.reciprocal(1.0 + jnp.exp(-gs), approx=True)              # sigmoid, (c, 1)

    # ---- out convs: (pam+ctx)@Wp + (cam*gate)@Wc + (bp+bc) as one stacked
    #      K=2c matmul on gate-scaled features plus a K=c matmul on the context.
    chan_scale = jnp.concatenate([jnp.ones((c_pam, 1), jnp.float32), gate], axis=0)
    out_t = (jnp.dot(w_out_ref[...], (feat * chan_scale).astype(jnp.bfloat16),
                     preferred_element_type=jnp.float32)
             + jnp.dot(w_p_ref[...], ctx.astype(jnp.bfloat16),
                       preferred_element_type=jnp.float32)
             + b_out_ref[...])                                         # (nc, hw), lane-dense

    # ---- fused x2 bilinear upsample of the summed output: one constant matmul.
    o_ref[0] = jnp.dot(out_t.astype(jnp.bfloat16), up_ref[...],
                       preferred_element_type=jnp.float32)             # (nc, 4*hw)


# ---------------------------------------------------------------------------
# Host-side glue: BN folding, bilinear operator, parameter packing.
# ---------------------------------------------------------------------------
def fold_bn(wt, bn):
    gamma, beta, mean, var = bn
    scale = gamma / jnp.sqrt(var + EPS)
    return wt * scale[:, None, None, None], beta - mean * scale


def _interp_mat_1d(size_in, size_out):
    """Bilinear (align_corners=False) 1-D interpolation as (size_out, size_in)."""
    A = np.zeros((size_out, size_in), np.float32)
    for d in range(size_out):
        src = (d + 0.5) * (size_in / size_out) - 0.5
        src = max(src, 0.0)
        i0 = min(int(math.floor(src)), size_in - 1)
        i1 = min(i0 + 1, size_in - 1)
        frac = src - i0
        A[d, i0] += 1.0 - frac
        A[d, i1] += frac
    return A


def da_head_forward(params, x_nchw):
    n, cin, h, w = x_nchw.shape
    hw = h * w
    c = params["c_pam"]
    nc = params["num_classes"]
    crc = params["crc"]
    qpad = params["qpad"]
    ho, wo = 2 * h, 2 * w

    # Constant separable x2-bilinear operator, fused into the kernel epilogue.
    up = jnp.asarray(np.kron(_interp_mat_1d(h, ho), _interp_mat_1d(w, wo)).T,
                     dtype=jnp.bfloat16)                      # (hw, ho*wo)

    x_flat = x_nchw.reshape(n, cin, hw)    # NCHW is already channel-major: free reshape

    kernel = functools.partial(_da_head_kernel, h=h, w=w, c_pam=c, qpad=qpad)
    out = pl.pallas_call(
        kernel,
        out_shape=jax.ShapeDtypeStruct((n, nc, ho * wo), jnp.float32),
        grid_spec=pltpu.PrefetchScalarGridSpec(
            num_scalar_prefetch=0,
            grid=(n,),
            in_specs=[
                pl.BlockSpec((1, cin, hw), lambda b: (b, 0, 0)),        # x
                pl.BlockSpec((9, 2 * c, cin), lambda b: (0, 0, 0)),     # w_in
                pl.BlockSpec((2 * c, 1), lambda b: (0, 0)),             # b_in
                pl.BlockSpec((2 * qpad + c, 2 * c), lambda b: (0, 0)),  # w_qkv
                pl.BlockSpec((2 * qpad + c, 1), lambda b: (0, 0)),      # b_qkv
                pl.BlockSpec((crc, 2 * c), lambda b: (0, 0)),           # w_g1
                pl.BlockSpec((crc, 1), lambda b: (0, 0)),               # b_g1
                pl.BlockSpec((c, crc), lambda b: (0, 0)),               # w_g2
                pl.BlockSpec((c, 1), lambda b: (0, 0)),                 # b_g2
                pl.BlockSpec((nc, 2 * c), lambda b: (0, 0)),            # w_out
                pl.BlockSpec((nc, c), lambda b: (0, 0)),                # w_p
                pl.BlockSpec((nc, 1), lambda b: (0, 0)),                # b_out
                pl.BlockSpec((hw, ho * wo), lambda b: (0, 0)),          # up
            ],
            out_specs=pl.BlockSpec((1, nc, ho * wo), lambda b: (b, 0, 0)),
        ),
        compiler_params=pltpu.CompilerParams(
            dimension_semantics=("parallel",)),
    )(x_flat, params["w_in"], params["b_in"], params["w_qkv"], params["b_qkv"],
      params["w_g1"], params["b_g1"], params["w_g2"], params["b_g2"],
      params["w_out"], params["w_p"], params["b_out"], up)
    return out.reshape(n, nc, ho, wo)


# ---------------------------------------------------------------------------
# Deterministic parameters (torch layout) -> kernel-ready channel-major packs.
# ---------------------------------------------------------------------------
class KeyGen:
    def __init__(self, seed=0):
        self._key = jax.random.PRNGKey(seed)

    def __call__(self):
        self._key, sub = jax.random.split(self._key)
        return sub


def make_conv(kg, cout, cin, kh, kw):
    return jax.random.normal(kg(), (cout, cin, kh, kw), jnp.float32) / math.sqrt(cin * kh * kw)


def make_bias(kg, c):
    return 0.05 * jax.random.normal(kg(), (c,), jnp.float32)


def make_bn(kg, c):
    gamma = 1.0 + 0.1 * jax.random.normal(kg(), (c,), jnp.float32)
    beta = 0.05 * jax.random.normal(kg(), (c,), jnp.float32)
    mean = 0.05 * jax.random.normal(kg(), (c,), jnp.float32)
    var = 1.0 + 0.1 * jnp.abs(jax.random.normal(kg(), (c,), jnp.float32))
    return gamma, beta, mean, var


def init_da_head(seed=0, in_channels=32, channels=32, num_classes=32,
                 pam_channels=32, reduction=8, alpha=0.5):
    assert channels == pam_channels  # module's cam_out_conv takes pam_channels
    kg = KeyGen(seed)
    cr = pam_channels // reduction
    crc = channels // reduction

    raw = dict(
        pam_in_w=make_conv(kg, pam_channels, in_channels, 3, 3),
        pam_in_bn=make_bn(kg, pam_channels),
        cam_in_w=make_conv(kg, channels, in_channels, 3, 3),
        cam_in_bn=make_bn(kg, channels),
        q_w=make_conv(kg, cr, pam_channels, 1, 1), q_b=make_bias(kg, cr),
        k_w=make_conv(kg, cr, pam_channels, 1, 1), k_b=make_bias(kg, cr),
        v_w=make_conv(kg, pam_channels, pam_channels, 1, 1), v_b=make_bias(kg, pam_channels),
        pam_out_w=make_conv(kg, num_classes, pam_channels, 1, 1),
        pam_out_b=make_bias(kg, num_classes),
        g1_w=make_conv(kg, crc, channels, 1, 1), g1_b=make_bias(kg, crc),
        g2_w=make_conv(kg, channels, crc, 1, 1), g2_b=make_bias(kg, channels),
        cam_out_w=make_conv(kg, num_classes, pam_channels, 1, 1),
        cam_out_b=make_bias(kg, num_classes),
        # torch inits PositionAttention.alpha to 0; use a nonzero "trained"
        # value so the attention path affects the output (formula unchanged).
        alpha=jnp.float32(alpha),
    )

    wpin, bpin = fold_bn(raw["pam_in_w"], raw["pam_in_bn"])
    wcin, bcin = fold_bn(raw["cam_in_w"], raw["cam_in_bn"])

    def w33(wt):   # (cout, cin, 3, 3) -> (9, cout, cin), tap index = kh*3+kw
        return jnp.transpose(wt, (2, 3, 0, 1)).reshape(9, wt.shape[0], wt.shape[1])

    def w11(wt):   # (cout, cin, 1, 1) -> (cout, cin)  (channel-major, torch layout)
        return wt[:, :, 0, 0]

    def colv(b):
        return jnp.asarray(b, jnp.float32).reshape(-1, 1)

    qpad = ((cr + 7) // 8) * 8   # pad q / k row-blocks to a sublane tile

    def pad_rows(m, rows):
        return jnp.concatenate(
            [m, jnp.zeros((rows - m.shape[0],) + m.shape[1:], m.dtype)], axis=0)

    c = pam_channels
    # fused [q(pad); k(pad); alpha*v] projection; cam input-columns zeroed
    w_qkv_pam = jnp.concatenate([pad_rows(w11(raw["q_w"]), qpad),
                                 pad_rows(w11(raw["k_w"]), qpad),
                                 raw["alpha"] * w11(raw["v_w"])], axis=0)
    w_qkv = jnp.concatenate([w_qkv_pam, jnp.zeros_like(w_qkv_pam)], axis=1)
    b_qkv = jnp.concatenate([pad_rows(colv(raw["q_b"]), qpad),
                             pad_rows(colv(raw["k_b"]), qpad),
                             raw["alpha"] * colv(raw["v_b"])], axis=0)

    params = dict(
        c_pam=c, num_classes=num_classes, cr=cr, crc=crc, qpad=qpad,
        # pam_in_conv & cam_in_conv fused along out-channels (BN folded)
        w_in=jnp.concatenate([w33(wpin), w33(wcin)], axis=1).astype(jnp.bfloat16),
        b_in=jnp.concatenate([colv(bpin), colv(bcin)], axis=0),
        w_qkv=w_qkv.astype(jnp.bfloat16), b_qkv=b_qkv,
        # channel-attention gate; pam input-columns of W1 are zero
        w_g1=jnp.concatenate([jnp.zeros((crc, c), jnp.float32), w11(raw["g1_w"])],
                             axis=1).astype(jnp.bfloat16),
        b_g1=colv(raw["g1_b"]),
        w_g2=w11(raw["g2_w"]).astype(jnp.bfloat16),
        b_g2=colv(raw["g2_b"]),
        # pam_out_conv & cam_out_conv stacked along the input-channel axis
        w_out=jnp.concatenate([w11(raw["pam_out_w"]), w11(raw["cam_out_w"])],
                              axis=1).astype(jnp.bfloat16),
        w_p=w11(raw["pam_out_w"]).astype(jnp.bfloat16),
        # both 1x1-conv biases summed once (upsample rows sum to 1)
        b_out=colv(raw["pam_out_b"] + raw["cam_out_b"]),
    )
    return params, raw


# ---------------------------------------------------------------------------
# Pure-JAX f32 reference of the torch module (eval mode) -- sanity check only.
# ---------------------------------------------------------------------------
def _reference_forward(raw, x):
    def conv3x3(inp, wt):
        return lax.conv_general_dilated(inp, wt, (1, 1), ((1, 1), (1, 1)),
                                        dimension_numbers=("NCHW", "OIHW", "NCHW"))

    def bn(inp, p):
        g, b, m, v = p
        s = g / jnp.sqrt(v + EPS)
        return (inp - m[None, :, None, None]) * s[None, :, None, None] + b[None, :, None, None]

    def leaky(t):
        return jnp.where(t >= 0, t, 0.2 * t)

    def conv1x1(inp, wt, bias):
        return jnp.einsum("nchw,oc->nohw", inp, wt[:, :, 0, 0]) + bias[None, :, None, None]

    def up2x(inp):
        _, _, hh, ww = inp.shape
        ah = jnp.asarray(_interp_mat_1d(hh, 2 * hh))
        aw = jnp.asarray(_interp_mat_1d(ww, 2 * ww))
        return jnp.einsum("oi,pj,ncij->ncop", ah, aw, inp)

    n, _, h, w = x.shape
    # PAM branch
    pam = leaky(bn(conv3x3(x, raw["pam_in_w"]), raw["pam_in_bn"]))
    q = conv1x1(pam, raw["q_w"], raw["q_b"]).reshape(n, -1, h * w)
    k = conv1x1(pam, raw["k_w"], raw["k_b"]).reshape(n, -1, h * w)
    attn = jax.nn.softmax(jnp.einsum("ncp,ncq->npq", q, k), axis=-1)
    v = conv1x1(pam, raw["v_w"], raw["v_b"]).reshape(n, -1, h * w)
    ctx = jnp.einsum("ncq,npq->ncp", v, attn).reshape(pam.shape)
    pam = raw["alpha"] * ctx + pam
    pam = up2x(conv1x1(pam, raw["pam_out_w"], raw["pam_out_b"]))
    # CAM branch
    cam = leaky(bn(conv3x3(x, raw["cam_in_w"]), raw["cam_in_bn"]))
    pooled = jnp.mean(cam, axis=(2, 3), keepdims=True)
    z = leaky(conv1x1(pooled, raw["g1_w"], raw["g1_b"]))
    gate = jax.nn.sigmoid(conv1x1(z, raw["g2_w"], raw["g2_b"]))
    cam = up2x(conv1x1(cam * gate, raw["cam_out_w"], raw["cam_out_b"]))
    return pam + cam


# ---------------------------------------------------------------------------
if __name__ == "__main__":
    in_channels = channels = num_classes = pam_channels = 32
    params, raw = init_da_head(seed=0, in_channels=in_channels, channels=channels,
                               num_classes=num_classes, pam_channels=pam_channels)
    x = jax.random.normal(jax.random.PRNGKey(0), (2, in_channels, 16, 16), jnp.float32)

    fwd = jax.jit(lambda inp: da_head_forward(params, inp))
    out = jax.block_until_ready(fwd(x))

    assert out.shape == (2, num_classes, 32, 32), out.shape
    assert bool(jnp.all(jnp.isfinite(out)))

    # loose parity check against an f32 pure-JAX reference (bf16 MXU operands
    # and approx reciprocals => ~1% expected deviation)
    ref = _reference_forward(raw, x)
    rel_err = float(jnp.linalg.norm(out - ref) / jnp.linalg.norm(ref))
    assert rel_err < 5e-2, f"relative L2 error too high: {rel_err}"
    print("KERNEL_OK")
</pallas_src>

<mosaic_0001>
module attributes {stable_mosaic.version = 11 : i64} {
  func.func @_da_head_kernel(%arg0: i32, %arg1: memref<1x32x256xf32, #tpu.memory_space<vmem>>, %arg2: memref<9x64x32xbf16, #tpu.memory_space<vmem>>, %arg3: memref<64x1xf32, #tpu.memory_space<vmem>>, %arg4: memref<48x64xbf16, #tpu.memory_space<vmem>>, %arg5: memref<48x1xf32, #tpu.memory_space<vmem>>, %arg6: memref<4x64xbf16, #tpu.memory_space<vmem>>, %arg7: memref<4x1xf32, #tpu.memory_space<vmem>>, %arg8: memref<32x4xbf16, #tpu.memory_space<vmem>>, %arg9: memref<32x1xf32, #tpu.memory_space<vmem>>, %arg10: memref<32x64xbf16, #tpu.memory_space<vmem>>, %arg11: memref<32x32xbf16, #tpu.memory_space<vmem>>, %arg12: memref<32x1xf32, #tpu.memory_space<vmem>>, %arg13: memref<256x1024xbf16, #tpu.memory_space<vmem>>, %arg14: memref<1x32x1024xf32, #tpu.memory_space<vmem>>) attributes {dimension_semantics = [#tpu.dimension_semantics<parallel>], iteration_bounds = array<i64: 2>, scalar_prefetch = 0 : i64, scratch_operands = 0 : i64, tpu.core_type = #tpu.core_type<tc>, window_params = [{transform_indices = @transform_0, window_bounds = array<i64: 1, 32, 256>}, {pipeline_mode = #tpu.pipeline_mode<synchronous>, transform_indices = @transform_1, window_bounds = array<i64: 9, 64, 32>}, {pipeline_mode = #tpu.pipeline_mode<synchronous>, transform_indices = @transform_2, window_bounds = array<i64: 64, 1>}, {pipeline_mode = #tpu.pipeline_mode<synchronous>, transform_indices = @transform_3, window_bounds = array<i64: 48, 64>}, {pipeline_mode = #tpu.pipeline_mode<synchronous>, transform_indices = @transform_4, window_bounds = array<i64: 48, 1>}, {pipeline_mode = #tpu.pipeline_mode<synchronous>, transform_indices = @transform_5, window_bounds = array<i64: 4, 64>}, {pipeline_mode = #tpu.pipeline_mode<synchronous>, transform_indices = @transform_6, window_bounds = array<i64: 4, 1>}, {pipeline_mode = #tpu.pipeline_mode<synchronous>, transform_indices = @transform_7, window_bounds = array<i64: 32, 4>}, {pipeline_mode = #tpu.pipeline_mode<synchronous>, transform_indices = @transform_8, window_bounds = array<i64: 32, 1>}, {pipeline_mode = #tpu.pipeline_mode<synchronous>, transform_indices = @transform_9, window_bounds = array<i64: 32, 64>}, {pipeline_mode = #tpu.pipeline_mode<synchronous>, transform_indices = @transform_10, window_bounds = array<i64: 32, 32>}, {pipeline_mode = #tpu.pipeline_mode<synchronous>, transform_indices = @transform_11, window_bounds = array<i64: 32, 1>}, {pipeline_mode = #tpu.pipeline_mode<synchronous>, transform_indices = @transform_12, window_bounds = array<i64: 256, 1024>}, {transform_indices = @transform_13, window_bounds = array<i64: 1, 32, 1024>}]} {
    %c0 = arith.constant 0 : index
    %c0_0 = arith.constant 0 : index
    %c0_1 = arith.constant 0 : index
    %0 = vector.load %arg1[%c0, %c0_0, %c0_1] : memref<1x32x256xf32, #tpu.memory_space<vmem>>, vector<1x32x256xf32>
    %1 = vector.shape_cast %0 : vector<1x32x256xf32> to vector<32x256xf32>
    %2 = tpu.iota {dimensions = array<i32: 1>} : vector<1x256xi32>
    %3 = arith.sitofp %2 : vector<1x256xi32> to vector<1x256xf32>
    %cst = arith.constant 5.000000e-01 : f32
    %4 = vector.broadcast %cst : f32 to vector<1x256xf32>
    %5 = arith.addf %3, %4 : vector<1x256xf32>
    %cst_2 = arith.constant 6.250000e-02 : f32
    %6 = vector.broadcast %cst_2 : f32 to vector<1x256xf32>
    %7 = arith.mulf %5, %6 : vector<1x256xf32>
    %8 = math.floor %7 : vector<1x256xf32>
    %cst_3 = arith.constant 1.600000e+01 : f32
    %9 = vector.broadcast %cst_3 : f32 to vector<1x256xf32>
    %10 = arith.mulf %8, %9 : vector<1x256xf32>
    %11 = arith.subf %3, %10 : vector<1x256xf32>
    %cst_4 = arith.constant 0.000000e+00 : f32
    %12 = vector.broadcast %cst_4 : f32 to vector<64x256xf32>
    %c0_5 = arith.constant 0 : index
    %c0_6 = arith.constant 0 : index
    %13 = vector.load %arg3[%c0_5, %c0_6] : memref<64x1xf32, #tpu.memory_space<vmem>>, vector<64x1xf32>
    %14 = vector.broadcast %13 : vector<64x1xf32> to vector<64x256xf32>
    %15 = arith.addf %12, %14 : vector<64x256xf32>
    %c17_i32 = arith.constant 17 : i32
    %16 = tpu.dynamic_rotate %1 by %c17_i32 dim 1 : vector<32x256xf32>, i32 -> vector<32x256xf32>
    %cst_7 = arith.constant -1.000000e+00 : f32
    %17 = vector.broadcast %cst_7 : f32 to vector<1x256xf32>
    %18 = arith.addf %8, %17 : vector<1x256xf32>
    %cst_8 = arith.constant 0.000000e+00 : f32
    %19 = vector.broadcast %cst_8 : f32 to vector<1x256xf32>
    %20 = arith.cmpf oge, %18, %19 : vector<1x256xf32>
    %cst_9 = arith.constant -1.000000e+00 : f32
    %21 = vector.broadcast %cst_9 : f32 to vector<1x256xf32>
    %22 = arith.addf %8, %21 : vector<1x256xf32>
    %cst_10 = arith.constant 1.600000e+01 : f32
    %23 = vector.broadcast %cst_10 : f32 to vector<1x256xf32>
    %24 = arith.cmpf olt, %22, %23 : vector<1x256xf32>
    %25 = arith.andi %20, %24 : vector<1x256xi1>
    %cst_11 = arith.constant -1.000000e+00 : f32
    %26 = vector.broadcast %cst_11 : f32 to vector<1x256xf32>
    %27 = arith.addf %11, %26 : vector<1x256xf32>
    %cst_12 = arith.constant 0.000000e+00 : f32
    %28 = vector.broadcast %cst_12 : f32 to vector<1x256xf32>
    %29 = arith.cmpf oge, %27, %28 : vector<1x256xf32>
    %30 = arith.andi %25, %29 : vector<1x256xi1>
    %cst_13 = arith.constant -1.000000e+00 : f32
    %31 = vector.broadcast %cst_13 : f32 to vector<1x256xf32>
    %32 = arith.addf %11, %31 : vector<1x256xf32>
    %cst_14 = arith.constant 1.600000e+01 : f32
    %33 = vector.broadcast %cst_14 : f32 to vector<1x256xf32>
    %34 = arith.cmpf olt, %32, %33 : vector<1x256xf32>
    %35 = arith.andi %30, %34 : vector<1x256xi1>
    %cst_15 = arith.constant 0.000000e+00 : f32
    %36 = vector.shape_cast %35 : vector<1x256xi1> to vector<1x256xi1>
    %37 = vector.broadcast %36 : vector<1x256xi1> to vector<32x256xi1>
    %38 = vector.broadcast %cst_15 : f32 to vector<32x256xf32>
    %39 = arith.select %37, %16, %38 : vector<32x256xi1>, vector<32x256xf32>
    %40 = arith.truncf %39 : vector<32x256xf32> to vector<32x256xbf16>
    %c0_16 = arith.constant 0 : index
    %c0_17 = arith.constant 0 : index
    %c0_18 = arith.constant 0 : index
    %41 = vector.load %arg2[%c0_16, %c0_17, %c0_18] : memref<9x64x32xbf16, #tpu.memory_space<vmem>>, vector<1x64x32xbf16>
    %42 = vector.shape_cast %41 : vector<1x64x32xbf16> to vector<64x32xbf16>
    %cst_19 = arith.constant dense<0.000000e+00> : vector<64x256xf32>
    %43 = tpu.matmul %42, %40, %cst_19 {dimension_numbers = #tpu.dot_dimension_numbers<[1], [0], [0], [1], [0, 0, 1, 1], [], []>} : vector<64x32xbf16>, vector<32x256xbf16>, vector<64x256xf32> -> vector<64x256xf32>
    %44 = arith.addf %15, %43 : vector<64x256xf32>
    %c16_i32 = arith.constant 16 : i32
    %45 = tpu.dynamic_rotate %1 by %c16_i32 dim 1 : vector<32x256xf32>, i32 -> vector<32x256xf32>
    %cst_20 = arith.constant -1.000000e+00 : f32
    %46 = vector.broadcast %cst_20 : f32 to vector<1x256xf32>
    %47 = arith.addf %8, %46 : vector<1x256xf32>
    %cst_21 = arith.constant 0.000000e+00 : f32
    %48 = vector.broadcast %cst_21 : f32 to vector<1x256xf32>
    %49 = arith.cmpf oge, %47, %48 : vector<1x256xf32>
    %cst_22 = arith.constant -1.000000e+00 : f32
    %50 = vector.broadcast %cst_22 : f32 to vector<1x256xf32>
    %51 = arith.addf %8, %50 : vector<1x256xf32>
    %cst_23 = arith.constant 1.600000e+01 : f32
    %52 = vector.broadcast %cst_23 : f32 to vector<1x256xf32>
    %53 = arith.cmpf olt, %51, %52 : vector<1x256xf32>
    %54 = arith.andi %49, %53 : vector<1x256xi1>
    %cst_24 = arith.constant 0.000000e+00 : f32
    %55 = vector.broadcast %cst_24 : f32 to vector<1x256xf32>
    %56 = arith.addf %11, %55 : vector<1x256xf32>
    %cst_25 = arith.constant 0.000000e+00 : f32
    %57 = vector.broadcast %cst_25 : f32 to vector<1x256xf32>
    %58 = arith.cmpf oge, %56, %57 : vector<1x256xf32>
    %59 = arith.andi %54, %58 : vector<1x256xi1>
    %cst_26 = arith.constant 0.000000e+00 : f32
    %60 = vector.broadcast %cst_26 : f32 to vector<1x256xf32>
    %61 = arith.addf %11, %60 : vector<1x256xf32>
    %cst_27 = arith.constant 1.600000e+01 : f32
    %62 = vector.broadcast %cst_27 : f32 to vector<1x256xf32>
    %63 = arith.cmpf olt, %61, %62 : vector<1x256xf32>
    %64 = arith.andi %59, %63 : vector<1x256xi1>
    %cst_28 = arith.constant 0.000000e+00 : f32
    %65 = vector.shape_cast %64 : vector<1x256xi1> to vector<1x256xi1>
    %66 = vector.broadcast %65 : vector<1x256xi1> to vector<32x256xi1>
    %67 = vector.broadcast %cst_28 : f32 to vector<32x256xf32>
    %68 = arith.select %66, %45, %67 : vector<32x256xi1>, vector<32x256xf32>
    %69 = arith.truncf %68 : vector<32x256xf32> to vector<32x256xbf16>
    %c1 = arith.constant 1 : index
    %c0_29 = arith.constant 0 : index
    %c0_30 = arith.constant 0 : index
    %70 = vector.load %arg2[%c1, %c0_29, %c0_30] : memref<9x64x32xbf16, #tpu.memory_space<vmem>>, vector<1x64x32xbf16>
    %71 = vector.shape_cast %70 : vector<1x64x32xbf16> to vector<64x32xbf16>
    %cst_31 = arith.constant dense<0.000000e+00> : vector<64x256xf32>
    %72 = tpu.matmul %71, %69, %cst_31 {dimension_numbers = #tpu.dot_dimension_numbers<[1], [0], [0], [1], [0, 0, 1, 1], [], []>} : vector<64x32xbf16>, vector<32x256xbf16>, vector<64x256xf32> -> vector<64x256xf32>
    %73 = arith.addf %44, %72 : vector<64x256xf32>
    %c15_i32 = arith.constant 15 : i32
    %74 = tpu.dynamic_rotate %1 by %c15_i32 dim 1 : vector<32x256xf32>, i32 -> vector<32x256xf32>
    %cst_32 = arith.constant -1.000000e+00 : f32
    %75 = vector.broadcast %cst_32 : f32 to vector<1x256xf32>
    %76 = arith.addf %8, %75 : vector<1x256xf32>
    %cst_33 = arith.constant 0.000000e+00 : f32
    %77 = vector.broadcast %cst_33 : f32 to vector<1x256xf32>
    %78 = arith.cmpf oge, %76, %77 : vector<1x256xf32>
    %cst_34 = arith.constant -1.000000e+00 : f32
    %79 = vector.broadcast %cst_34 : f32 to vector<1x256xf32>
    %80 = arith.addf %8, %79 : vector<1x256xf32>
    %cst_35 = arith.constant 1.600000e+01 : f32
    %81 = vector.broadcast %cst_35 : f32 to vector<1x256xf32>
    %82 = arith.cmpf olt, %80, %81 : vector<1x256xf32>
    %83 = arith.andi %78, %82 : vector<1x256xi1>
    %cst_36 = arith.constant 1.000000e+00 : f32
    %84 = vector.broadcast %cst_36 : f32 to vector<1x256xf32>
    %85 = arith.addf %11, %84 : vector<1x256xf32>
    %cst_37 = arith.constant 0.000000e+00 : f32
    %86 = vector.broadcast %cst_37 : f32 to vector<1x256xf32>
    %87 = arith.cmpf oge, %85, %86 : vector<1x256xf32>
    %88 = arith.andi %83, %87 : vector<1x256xi1>
    %cst_38 = arith.constant 1.000000e+00 : f32
    %89 = vector.broadcast %cst_38 : f32 to vector<1x256xf32>
    %90 = arith.addf %11, %89 : vector<1x256xf32>
    %cst_39 = arith.constant 1.600000e+01 : f32
    %91 = vector.broadcast %cst_39 : f32 to vector<1x256xf32>
    %92 = arith.cmpf olt, %90, %91 : vector<1x256xf32>
    %93 = arith.andi %88, %92 : vector<1x256xi1>
    %cst_40 = arith.constant 0.000000e+00 : f32
    %94 = vector.shape_cast %93 : vector<1x256xi1> to vector<1x256xi1>
    %95 = vector.broadcast %94 : vector<1x256xi1> to vector<32x256xi1>
    %96 = vector.broadcast %cst_40 : f32 to vector<32x256xf32>
    %97 = arith.select %95, %74, %96 : vector<32x256xi1>, vector<32x256xf32>
    %98 = arith.truncf %97 : vector<32x256xf32> to vector<32x256xbf16>
    %c2 = arith.constant 2 : index
    %c0_41 = arith.constant 0 : index
    %c0_42 = arith.constant 0 : index
    %99 = vector.load %arg2[%c2, %c0_41, %c0_42] : memref<9x64x32xbf16, #tpu.memory_space<vmem>>, vector<1x64x32xbf16>
    %100 = vector.shape_cast %99 : vector<1x64x32xbf16> to vector<64x32xbf16>
    %cst_43 = arith.constant dense<0.000000e+00> : vector<64x256xf32>
    %101 = tpu.matmul %100, %98, %cst_43 {dimension_numbers = #tpu.dot_dimension_numbers<[1], [0], [0], [1], [0, 0, 1, 1], [], []>} : vector<64x32xbf16>, vector<32x256xbf16>, vector<64x256xf32> -> vector<64x256xf32>
    %102 = arith.addf %73, %101 : vector<64x256xf32>
    %c1_i32 = arith.constant 1 : i32
    %103 = tpu.dynamic_rotate %1 by %c1_i32 dim 1 : vector<32x256xf32>, i32 -> vector<32x256xf32>
    %cst_44 = arith.constant 0.000000e+00 : f32
    %104 = vector.broadcast %cst_44 : f32 to vector<1x256xf32>
    %105 = arith.addf %8, %104 : vector<1x256xf32>
    %cst_45 = arith.constant 0.000000e+00 : f32
    %106 = vector.broadcast %cst_45 : f32 to vector<1x256xf32>
    %107 = arith.cmpf oge, %105, %106 : vector<1x256xf32>
    %cst_46 = arith.constant 0.000000e+00 : f32
    %108 = vector.broadcast %cst_46 : f32 to vector<1x256xf32>
    %109 = arith.addf %8, %108 : vector<1x256xf32>
    %cst_47 = arith.constant 1.600000e+01 : f32
    %110 = vector.broadcast %cst_47 : f32 to vector<1x256xf32>
    %111 = arith.cmpf olt, %109, %110 : vector<1x256xf32>
    %112 = arith.andi %107, %111 : vector<1x256xi1>
    %cst_48 = arith.constant -1.000000e+00 : f32
    %113 = vector.broadcast %cst_48 : f32 to vector<1x256xf32>
    %114 = arith.addf %11, %113 : vector<1x256xf32>
    %cst_49 = arith.constant 0.000000e+00 : f32
    %115 = vector.broadcast %cst_49 : f32 to vector<1x256xf32>
    %116 = arith.cmpf oge, %114, %115 : vector<1x256xf32>
    %117 = arith.andi %112, %116 : vector<1x256xi1>
    %cst_50 = arith.constant -1.000000e+00 : f32
    %118 = vector.broadcast %cst_50 : f32 to vector<1x256xf32>
    %119 = arith.addf %11, %118 : vector<1x256xf32>
    %cst_51 = arith.constant 1.600000e+01 : f32
    %120 = vector.broadcast %cst_51 : f32 to vector<1x256xf32>
    %121 = arith.cmpf olt, %119, %120 : vector<1x256xf32>
    %122 = arith.andi %117, %121 : vector<1x256xi1>
    %cst_52 = arith.constant 0.000000e+00 : f32
    %123 = vector.shape_cast %122 : vector<1x256xi1> to vector<1x256xi1>
    %124 = vector.broadcast %123 : vector<1x256xi1> to vector<32x256xi1>
    %125 = vector.broadcast %cst_52 : f32 to vector<32x256xf32>
    %126 = arith.select %124, %103, %125 : vector<32x256xi1>, vector<32x256xf32>
    %127 = arith.truncf %126 : vector<32x256xf32> to vector<32x256xbf16>
    %c3 = arith.constant 3 : index
    %c0_53 = arith.constant 0 : index
    %c0_54 = arith.constant 0 : index
    %128 = vector.load %arg2[%c3, %c0_53, %c0_54] : memref<9x64x32xbf16, #tpu.memory_space<vmem>>, vector<1x64x32xbf16>
    %129 = vector.shape_cast %128 : vector<1x64x32xbf16> to vector<64x32xbf16>
    %cst_55 = arith.constant dense<0.000000e+00> : vector<64x256xf32>
    %130 = tpu.matmul %129, %127, %cst_55 {dimension_numbers = #tpu.dot_dimension_numbers<[1], [0], [0], [1], [0, 0, 1, 1], [], []>} : vector<64x32xbf16>, vector<32x256xbf16>, vector<64x256xf32> -> vector<64x256xf32>
    %131 = arith.addf %102, %130 : vector<64x256xf32>
    %cst_56 = arith.constant 0.000000e+00 : f32
    %132 = vector.broadcast %cst_56 : f32 to vector<1x256xf32>
    %133 = arith.addf %8, %132 : vector<1x256xf32>
    %cst_57 = arith.constant 0.000000e+00 : f32
    %134 = vector.broadcast %cst_57 : f32 to vector<1x256xf32>
    %135 = arith.cmpf oge, %133, %134 : vector<1x256xf32>
    %cst_58 = arith.constant 0.000000e+00 : f32
    %136 = vector.broadcast %cst_58 : f32 to vector<1x256xf32>
    %137 = arith.addf %8, %136 : vector<1x256xf32>
    %cst_59 = arith.constant 1.600000e+01 : f32
    %138 = vector.broadcast %cst_59 : f32 to vector<1x256xf32>
    %139 = arith.cmpf olt, %137, %138 : vector<1x256xf32>
    %140 = arith.andi %135, %139 : vector<1x256xi1>
    %cst_60 = arith.constant 0.000000e+00 : f32
    %141 = vector.broadcast %cst_60 : f32 to vector<1x256xf32>
    %142 = arith.addf %11, %141 : vector<1x256xf32>
    %cst_61 = arith.constant 0.000000e+00 : f32
    %143 = vector.broadcast %cst_61 : f32 to vector<1x256xf32>
    %144 = arith.cmpf oge, %142, %143 : vector<1x256xf32>
    %145 = arith.andi %140, %144 : vector<1x256xi1>
    %cst_62 = arith.constant 0.000000e+00 : f32
    %146 = vector.broadcast %cst_62 : f32 to vector<1x256xf32>
    %147 = arith.addf %11, %146 : vector<1x256xf32>
    %cst_63 = arith.constant 1.600000e+01 : f32
    %148 = vector.broadcast %cst_63 : f32 to vector<1x256xf32>
    %149 = arith.cmpf olt, %147, %148 : vector<1x256xf32>
    %150 = arith.andi %145, %149 : vector<1x256xi1>
    %cst_64 = arith.constant 0.000000e+00 : f32
    %151 = vector.shape_cast %150 : vector<1x256xi1> to vector<1x256xi1>
    %152 = vector.broadcast %151 : vector<1x256xi1> to vector<32x256xi1>
    %153 = vector.broadcast %cst_64 : f32 to vector<32x256xf32>
    %154 = arith.select %152, %1, %153 : vector<32x256xi1>, vector<32x256xf32>
    %155 = arith.truncf %154 : vector<32x256xf32> to vector<32x256xbf16>
    %c4 = arith.constant 4 : index
    %c0_65 = arith.constant 0 : index
    %c0_66 = arith.constant 0 : index
    %156 = vector.load %arg2[%c4, %c0_65, %c0_66] : memref<9x64x32xbf16, #tpu.memory_space<vmem>>, vector<1x64x32xbf16>
    %157 = vector.shape_cast %156 : vector<1x64x32xbf16> to vector<64x32xbf16>
    %cst_67 = arith.constant dense<0.000000e+00> : vector<64x256xf32>
    %158 = tpu.matmul %157, %155, %cst_67 {dimension_numbers = #tpu.dot_dimension_numbers<[1], [0], [0], [1], [0, 0, 1, 1], [], []>} : vector<64x32xbf16>, vector<32x256xbf16>, vector<64x256xf32> -> vector<64x256xf32>
    %159 = arith.addf %131, %158 : vector<64x256xf32>
    %c255_i32 = arith.constant 255 : i32
    %160 = tpu.dynamic_rotate %1 by %c255_i32 dim 1 : vector<32x256xf32>, i32 -> vector<32x256xf32>
    %cst_68 = arith.constant 0.000000e+00 : f32
    %161 = vector.broadcast %cst_68 : f32 to vector<1x256xf32>
    %162 = arith.addf %8, %161 : vector<1x256xf32>
    %cst_69 = arith.constant 0.000000e+00 : f32
    %163 = vector.broadcast %cst_69 : f32 to vector<1x256xf32>
    %164 = arith.cmpf oge, %162, %163 : vector<1x256xf32>
    %cst_70 = arith.constant 0.000000e+00 : f32
    %165 = vector.broadcast %cst_70 : f32 to vector<1x256xf32>
    %166 = arith.addf %8, %165 : vector<1x256xf32>
    %cst_71 = arith.constant 1.600000e+01 : f32
    %167 = vector.broadcast %cst_71 : f32 to vector<1x256xf32>
    %168 = arith.cmpf olt, %166, %167 : vector<1x256xf32>
    %169 = arith.andi %164, %168 : vector<1x256xi1>
    %cst_72 = arith.constant 1.000000e+00 : f32
    %170 = vector.broadcast %cst_72 : f32 to vector<1x256xf32>
    %171 = arith.addf %11, %170 : vector<1x256xf32>
    %cst_73 = arith.constant 0.000000e+00 : f32
    %172 = vector.broadcast %cst_73 : f32 to vector<1x256xf32>
    %173 = arith.cmpf oge, %171, %172 : vector<1x256xf32>
    %174 = arith.andi %169, %173 : vector<1x256xi1>
    %cst_74 = arith.constant 1.000000e+00 : f32
    %175 = vector.broadcast %cst_74 : f32 to vector<1x256xf32>
    %176 = arith.addf %11, %175 : vector<1x256xf32>
    %cst_75 = arith.constant 1.600000e+01 : f32
    %177 = vector.broadcast %cst_75 : f32 to vector<1x256xf32>
    %178 = arith.cmpf olt, %176, %177 : vector<1x256xf32>
    %179 = arith.andi %174, %178 : vector<1x256xi1>
    %cst_76 = arith.constant 0.000000e+00 : f32
    %180 = vector.shape_cast %179 : vector<1x256xi1> to vector<1x256xi1>
    %181 = vector.broadcast %180 : vector<1x256xi1> to vector<32x256xi1>
    %182 = vector.broadcast %cst_76 : f32 to vector<32x256xf32>
    %183 = arith.select %181, %160, %182 : vector<32x256xi1>, vector<32x256xf32>
    %184 = arith.truncf %183 : vector<32x256xf32> to vector<32x256xbf16>
    %c5 = arith.constant 5 : index
    %c0_77 = arith.constant 0 : index
    %c0_78 = arith.constant 0 : index
    %185 = vector.load %arg2[%c5, %c0_77, %c0_78] : memref<9x64x32xbf16, #tpu.memory_space<vmem>>, vector<1x64x32xbf16>
    %186 = vector.shape_cast %185 : vector<1x64x32xbf16> to vector<64x32xbf16>
    %cst_79 = arith.constant dense<0.000000e+00> : vector<64x256xf32>
    %187 = tpu.matmul %186, %184, %cst_79 {dimension_numbers = #tpu.dot_dimension_numbers<[1], [0], [0], [1], [0, 0, 1, 1], [], []>} : vector<64x32xbf16>, vector<32x256xbf16>, vector<64x256xf32> -> vector<64x256xf32>
    %188 = arith.addf %159, %187 : vector<64x256xf32>
    %c241_i32 = arith.constant 241 : i32
    %189 = tpu.dynamic_rotate %1 by %c241_i32 dim 1 : vector<32x256xf32>, i32 -> vector<32x256xf32>
    %cst_80 = arith.constant 1.000000e+00 : f32
    %190 = vector.broadcast %cst_80 : f32 to vector<1x256xf32>
    %191 = arith.addf %8, %190 : vector<1x256xf32>
    %cst_81 = arith.constant 0.000000e+00 : f32
    %192 = vector.broadcast %cst_81 : f32 to vector<1x256xf32>
    %193 = arith.cmpf oge, %191, %192 : vector<1x256xf32>
    %cst_82 = arith.constant 1.000000e+00 : f32
    %194 = vector.broadcast %cst_82 : f32 to vector<1x256xf32>
    %195 = arith.addf %8, %194 : vector<1x256xf32>
    %cst_83 = arith.constant 1.600000e+01 : f32
    %196 = vector.broadcast %cst_83 : f32 to vector<1x256xf32>
    %197 = arith.cmpf olt, %195, %196 : vector<1x256xf32>
    %198 = arith.andi %193, %197 : vector<1x256xi1>
    %cst_84 = arith.constant -1.000000e+00 : f32
    %199 = vector.broadcast %cst_84 : f32 to vector<1x256xf32>
    %200 = arith.addf %11, %199 : vector<1x256xf32>
    %cst_85 = arith.constant 0.000000e+00 : f32
    %201 = vector.broadcast %cst_85 : f32 to vector<1x256xf32>
    %202 = arith.cmpf oge, %200, %201 : vector<1x256xf32>
    %203 = arith.andi %198, %202 : vector<1x256xi1>
    %cst_86 = arith.constant -1.000000e+00 : f32
    %204 = vector.broadcast %cst_86 : f32 to vector<1x256xf32>
    %205 = arith.addf %11, %204 : vector<1x256xf32>
    %cst_87 = arith.constant 1.600000e+01 : f32
    %206 = vector.broadcast %cst_87 : f32 to vector<1x256xf32>
    %207 = arith.cmpf olt, %205, %206 : vector<1x256xf32>
    %208 = arith.andi %203, %207 : vector<1x256xi1>
    %cst_88 = arith.constant 0.000000e+00 : f32
    %209 = vector.shape_cast %208 : vector<1x256xi1> to vector<1x256xi1>
    %210 = vector.broadcast %209 : vector<1x256xi1> to vector<32x256xi1>
    %211 = vector.broadcast %cst_88 : f32 to vector<32x256xf32>
    %212 = arith.select %210, %189, %211 : vector<32x256xi1>, vector<32x256xf32>
    %213 = arith.truncf %212 : vector<32x256xf32> to vector<32x256xbf16>
    %c6 = arith.constant 6 : index
    %c0_89 = arith.constant 0 : index
    %c0_90 = arith.constant 0 : index
    %214 = vector.load %arg2[%c6, %c0_89, %c0_90] : memref<9x64x32xbf16, #tpu.memory_space<vmem>>, vector<1x64x32xbf16>
    %215 = vector.shape_cast %214 : vector<1x64x32xbf16> to vector<64x32xbf16>
    %cst_91 = arith.constant dense<0.000000e+00> : vector<64x256xf32>
    %216 = tpu.matmul %215, %213, %cst_91 {dimension_numbers = #tpu.dot_dimension_numbers<[1], [0], [0], [1], [0, 0, 1, 1], [], []>} : vector<64x32xbf16>, vector<32x256xbf16>, vector<64x256xf32> -> vector<64x256xf32>
    %217 = arith.addf %188, %216 : vector<64x256xf32>
    %c240_i32 = arith.constant 240 : i32
    %218 = tpu.dynamic_rotate %1 by %c240_i32 dim 1 : vector<32x256xf32>, i32 -> vector<32x256xf32>
    %cst_92 = arith.constant 1.000000e+00 : f32
    %219 = vector.broadcast %cst_92 : f32 to vector<1x256xf32>
    %220 = arith.addf %8, %219 : vector<1x256xf32>
    %cst_93 = arith.constant 0.000000e+00 : f32
    %221 = vector.broadcast %cst_93 : f32 to vector<1x256xf32>
    %222 = arith.cmpf oge, %220, %221 : vector<1x256xf32>
    %cst_94 = arith.constant 1.000000e+00 : f32
    %223 = vector.broadcast %cst_94 : f32 to vector<1x256xf32>
    %224 = arith.addf %8, %223 : vector<1x256xf32>
    %cst_95 = arith.constant 1.600000e+01 : f32
    %225 = vector.broadcast %cst_95 : f32 to vector<1x256xf32>
    %226 = arith.cmpf olt, %224, %225 : vector<1x256xf32>
    %227 = arith.andi %222, %226 : vector<1x256xi1>
    %cst_96 = arith.constant 0.000000e+00 : f32
    %228 = vector.broadcast %cst_96 : f32 to vector<1x256xf32>
    %229 = arith.addf %11, %228 : vector<1x256xf32>
    %cst_97 = arith.constant 0.000000e+00 : f32
    %230 = vector.broadcast %cst_97 : f32 to vector<1x256xf32>
    %231 = arith.cmpf oge, %229, %230 : vector<1x256xf32>
    %232 = arith.andi %227, %231 : vector<1x256xi1>
    %cst_98 = arith.constant 0.000000e+00 : f32
    %233 = vector.broadcast %cst_98 : f32 to vector<1x256xf32>
    %234 = arith.addf %11, %233 : vector<1x256xf32>
    %cst_99 = arith.constant 1.600000e+01 : f32
    %235 = vector.broadcast %cst_99 : f32 to vector<1x256xf32>
    %236 = arith.cmpf olt, %234, %235 : vector<1x256xf32>
    %237 = arith.andi %232, %236 : vector<1x256xi1>
    %cst_100 = arith.constant 0.000000e+00 : f32
    %238 = vector.shape_cast %237 : vector<1x256xi1> to vector<1x256xi1>
    %239 = vector.broadcast %238 : vector<1x256xi1> to vector<32x256xi1>
    %240 = vector.broadcast %cst_100 : f32 to vector<32x256xf32>
    %241 = arith.select %239, %218, %240 : vector<32x256xi1>, vector<32x256xf32>
    %242 = arith.truncf %241 : vector<32x256xf32> to vector<32x256xbf16>
    %c7 = arith.constant 7 : index
    %c0_101 = arith.constant 0 : index
    %c0_102 = arith.constant 0 : index
    %243 = vector.load %arg2[%c7, %c0_101, %c0_102] : memref<9x64x32xbf16, #tpu.memory_space<vmem>>, vector<1x64x32xbf16>
    %244 = vector.shape_cast %243 : vector<1x64x32xbf16> to vector<64x32xbf16>
    %cst_103 = arith.constant dense<0.000000e+00> : vector<64x256xf32>
    %245 = tpu.matmul %244, %242, %cst_103 {dimension_numbers = #tpu.dot_dimension_numbers<[1], [0], [0], [1], [0, 0, 1, 1], [], []>} : vector<64x32xbf16>, vector<32x256xbf16>, vector<64x256xf32> -> vector<64x256xf32>
    %246 = arith.addf %217, %245 : vector<64x256xf32>
    %c239_i32 = arith.constant 239 : i32
    %247 = tpu.dynamic_rotate %1 by %c239_i32 dim 1 : vector<32x256xf32>, i32 -> vector<32x256xf32>
    %cst_104 = arith.constant 1.000000e+00 : f32
    %248 = vector.broadcast %cst_104 : f32 to vector<1x256xf32>
    %249 = arith.addf %8, %248 : vector<1x256xf32>
    %cst_105 = arith.constant 0.000000e+00 : f32
    %250 = vector.broadcast %cst_105 : f32 to vector<1x256xf32>
    %251 = arith.cmpf oge, %249, %250 : vector<1x256xf32>
    %cst_106 = arith.constant 1.000000e+00 : f32
    %252 = vector.broadcast %cst_106 : f32 to vector<1x256xf32>
    %253 = arith.addf %8, %252 : vector<1x256xf32>
    %cst_107 = arith.constant 1.600000e+01 : f32
    %254 = vector.broadcast %cst_107 : f32 to vector<1x256xf32>
    %255 = arith.cmpf olt, %253, %254 : vector<1x256xf32>
    %256 = arith.andi %251, %255 : vector<1x256xi1>
    %cst_108 = arith.constant 1.000000e+00 : f32
    %257 = vector.broadcast %cst_108 : f32 to vector<1x256xf32>
    %258 = arith.addf %11, %257 : vector<1x256xf32>
    %cst_109 = arith.constant 0.000000e+00 : f32
    %259 = vector.broadcast %cst_109 : f32 to vector<1x256xf32>
    %260 = arith.cmpf oge, %258, %259 : vector<1x256xf32>
    %261 = arith.andi %256, %260 : vector<1x256xi1>
    %cst_110 = arith.constant 1.000000e+00 : f32
    %262 = vector.broadcast %cst_110 : f32 to vector<1x256xf32>
    %263 = arith.addf %11, %262 : vector<1x256xf32>
    %cst_111 = arith.constant 1.600000e+01 : f32
    %264 = vector.broadcast %cst_111 : f32 to vector<1x256xf32>
    %265 = arith.cmpf olt, %263, %264 : vector<1x256xf32>
    %266 = arith.andi %261, %265 : vector<1x256xi1>
    %cst_112 = arith.constant 0.000000e+00 : f32
    %267 = vector.shape_cast %266 : vector<1x256xi1> to vector<1x256xi1>
    %268 = vector.broadcast %267 : vector<1x256xi1> to vector<32x256xi1>
    %269 = vector.broadcast %cst_112 : f32 to vector<32x256xf32>
    %270 = arith.select %268, %247, %269 : vector<32x256xi1>, vector<32x256xf32>
    %271 = arith.truncf %270 : vector<32x256xf32> to vector<32x256xbf16>
    %c8 = arith.constant 8 : index
    %c0_113 = arith.constant 0 : index
    %c0_114 = arith.constant 0 : index
    %272 = vector.load %arg2[%c8, %c0_113, %c0_114] : memref<9x64x32xbf16, #tpu.memory_space<vmem>>, vector<1x64x32xbf16>
    %273 = vector.shape_cast %272 : vector<1x64x32xbf16> to vector<64x32xbf16>
    %cst_115 = arith.constant dense<0.000000e+00> : vector<64x256xf32>
    %274 = tpu.matmul %273, %271, %cst_115 {dimension_numbers = #tpu.dot_dimension_numbers<[1], [0], [0], [1], [0, 0, 1, 1], [], []>} : vector<64x32xbf16>, vector<32x256xbf16>, vector<64x256xf32> -> vector<64x256xf32>
    %275 = arith.addf %246, %274 : vector<64x256xf32>
    %cst_116 = arith.constant 2.000000e-01 : f32
    %276 = vector.broadcast %cst_116 : f32 to vector<64x256xf32>
    %277 = arith.mulf %276, %275 : vector<64x256xf32>
    %278 = arith.maximumf %275, %277 : vector<64x256xf32>
    %279 = arith.truncf %278 : vector<64x256xf32> to vector<64x256xbf16>
    %c0_117 = arith.constant 0 : index
    %c0_118 = arith.constant 0 : index
    %280 = vector.load %arg4[%c0_117, %c0_118] : memref<48x64xbf16, #tpu.memory_space<vmem>>, vector<48x64xbf16>
    %cst_119 = arith.constant dense<0.000000e+00> : vector<48x256xf32>
    %281 = tpu.matmul %280, %279, %cst_119 {dimension_numbers = #tpu.dot_dimension_numbers<[1], [0], [0], [1], [0, 0, 1, 1], [], []>} : vector<48x64xbf16>, vector<64x256xbf16>, vector<48x256xf32> -> vector<48x256xf32>
    %c0_120 = arith.constant 0 : index
    %c0_121 = arith.constant 0 : index
    %282 = vector.load %arg5[%c0_120, %c0_121] : memref<48x1xf32, #tpu.memory_space<vmem>>, vector<48x1xf32>
    %283 = vector.broadcast %282 : vector<48x1xf32> to vector<48x256xf32>
    %284 = arith.addf %281, %283 : vector<48x256xf32>
    %285 = vector.extract_strided_slice %284 {offsets = [0, 0], sizes = [8, 256], strides = [1, 1]} : vector<48x256xf32> to vector<8x256xf32>
    %286 = tpu.transpose %285, [1, 0] : vector<8x256xf32> -> vector<256x8xf32>
    %287 = arith.truncf %286 : vector<256x8xf32> to vector<256x8xbf16>
    %288 = vector.extract_strided_slice %284 {offsets = [8, 0], sizes = [8, 256], strides = [1, 1]} : vector<48x256xf32> to vector<8x256xf32>
    %289 = tpu.transpose %288, [1, 0] : vector<8x256xf32> -> vector<256x8xf32>
    %290 = arith.truncf %289 : vector<256x8xf32> to vector<256x8xbf16>
    %291 = vector.extract_strided_slice %284 {offsets = [16, 0], sizes = [32, 256], strides = [1, 1]} : vector<48x256xf32> to vector<32x256xf32>
    %292 = arith.truncf %291 : vector<32x256xf32> to vector<32x256xbf16>
    %cst_122 = arith.constant dense<0.000000e+00> : vector<256x256xf32>
    %293 = tpu.matmul %287, %290, %cst_122 {dimension_numbers = #tpu.dot_dimension_numbers<[1], [1], [0], [0], [0, 0, 1, 0], [], []>} : vector<256x8xbf16>, vector<256x8xbf16>, vector<256x256xf32> -> vector<256x256xf32>
    %cst_123 = arith.constant dense<0xFF800000> : vector<256xf32>
    %294 = vector.multi_reduction <maximumf>, %293, %cst_123 [1] : vector<256x256xf32> to vector<256xf32>
    %295 = vector.shape_cast %294 : vector<256xf32> to vector<256x1xf32>
    %296 = vector.broadcast %295 : vector<256x1xf32> to vector<256x256xf32>
    %297 = arith.subf %293, %296 : vector<256x256xf32>
    %298 = math.exp %297 : vector<256x256xf32>
    %cst_124 = arith.constant dense<0.000000e+00> : vector<256xf32>
    %299 = vector.multi_reduction <add>, %298, %cst_124 [1] : vector<256x256xf32> to vector<256xf32>
    %300 = vector.shape_cast %299 : vector<256xf32> to vector<256x1xf32>
    %301 = tpu.reciprocal %300 {approx = true} : vector<256x1xf32> -> vector<256x1xf32>
    %302 = vector.broadcast %301 : vector<256x1xf32> to vector<256x256xf32>
    %303 = arith.mulf %298, %302 : vector<256x256xf32>
    %304 = arith.truncf %303 : vector<256x256xf32> to vector<256x256xbf16>
    %cst_125 = arith.constant dense<0.000000e+00> : vector<32x256xf32>
    %305 = tpu.matmul %292, %304, %cst_125 {dimension_numbers = #tpu.dot_dimension_numbers<[1], [1], [0], [0], [0, 0, 1, 0], [], []>} : vector<32x256xbf16>, vector<256x256xbf16>, vector<32x256xf32> -> vector<32x256xf32>
    %c0_126 = arith.constant 0 : index
    %c0_127 = arith.constant 0 : index
    %306 = vector.load %arg6[%c0_126, %c0_127] : memref<4x64xbf16, #tpu.memory_space<vmem>>, vector<4x64xbf16>
    %cst_128 = arith.constant dense<0.000000e+00> : vector<4x256xf32>
    %307 = tpu.matmul %306, %279, %cst_128 {dimension_numbers = #tpu.dot_dimension_numbers<[1], [0], [0], [1], [0, 0, 1, 1], [], []>} : vector<4x64xbf16>, vector<64x256xbf16>, vector<4x256xf32> -> vector<4x256xf32>
    %cst_129 = arith.constant dense<0.000000e+00> : vector<4xf32>
    %308 = vector.multi_reduction <add>, %307, %cst_129 [1] : vector<4x256xf32> to vector<4xf32>
    %309 = vector.shape_cast %308 : vector<4xf32> to vector<4x1xf32>
    %cst_130 = arith.constant 3.906250e-03 : f32
    %310 = vector.broadcast %cst_130 : f32 to vector<4x1xf32>
    %311 = arith.mulf %309, %310 : vector<4x1xf32>
    %c0_131 = arith.constant 0 : index
    %c0_132 = arith.constant 0 : index
    %312 = vector.load %arg7[%c0_131, %c0_132] : memref<4x1xf32, #tpu.memory_space<vmem>>, vector<4x1xf32>
    %313 = arith.addf %311, %312 : vector<4x1xf32>
    %cst_133 = arith.constant 2.000000e-01 : f32
    %314 = vector.broadcast %cst_133 : f32 to vector<4x1xf32>
    %315 = arith.mulf %314, %313 : vector<4x1xf32>
    %316 = arith.maximumf %313, %315 : vector<4x1xf32>
    %c0_134 = arith.constant 0 : index
    %c0_135 = arith.constant 0 : index
    %317 = vector.load %arg8[%c0_134, %c0_135] : memref<32x4xbf16, #tpu.memory_space<vmem>>, vector<32x4xbf16>
    %318 = arith.truncf %316 : vector<4x1xf32> to vector<4x1xbf16>
    %cst_136 = arith.constant dense<0.000000e+00> : vector<32x1xf32>
    %319 = tpu.matmul %317, %318, %cst_136 {dimension_numbers = #tpu.dot_dimension_numbers<[1], [0], [0], [1], [0, 0, 1, 1], [], []>} : vector<32x4xbf16>, vector<4x1xbf16>, vector<32x1xf32> -> vector<32x1xf32>
    %c0_137 = arith.constant 0 : index
    %c0_138 = arith.constant 0 : index
    %320 = vector.load %arg9[%c0_137, %c0_138] : memref<32x1xf32, #tpu.memory_space<vmem>>, vector<32x1xf32>
    %321 = arith.addf %319, %320 : vector<32x1xf32>
    %cst_139 = arith.constant 0.000000e+00 : f32
    %322 = vector.broadcast %cst_139 : f32 to vector<32x1xf32>
    %323 = arith.subf %322, %321 : vector<32x1xf32>
    %324 = math.exp %323 : vector<32x1xf32>
    %cst_140 = arith.constant 1.000000e+00 : f32
    %325 = vector.broadcast %cst_140 : f32 to vector<32x1xf32>
    %326 = arith.addf %325, %324 : vector<32x1xf32>
    %327 = tpu.reciprocal %326 {approx = true} : vector<32x1xf32> -> vector<32x1xf32>
    %cst_141 = arith.constant 1.000000e+00 : f32
    %328 = vector.broadcast %cst_141 : f32 to vector<32x1xf32>
    %329 = tpu.concatenate %328, %327 in 0 : vector<32x1xf32>, vector<32x1xf32> -> vector<64x1xf32>
    %c0_142 = arith.constant 0 : index
    %c0_143 = arith.constant 0 : index
    %330 = vector.load %arg10[%c0_142, %c0_143] : memref<32x64xbf16, #tpu.memory_space<vmem>>, vector<32x64xbf16>
    %331 = vector.broadcast %329 : vector<64x1xf32> to vector<64x256xf32>
    %332 = arith.mulf %278, %331 : vector<64x256xf32>
    %333 = arith.truncf %332 : vector<64x256xf32> to vector<64x256xbf16>
    %cst_144 = arith.constant dense<0.000000e+00> : vector<32x256xf32>
    %334 = tpu.matmul %330, %333, %cst_144 {dimension_numbers = #tpu.dot_dimension_numbers<[1], [0], [0], [1], [0, 0, 1, 1], [], []>} : vector<32x64xbf16>, vector<64x256xbf16>, vector<32x256xf32> -> vector<32x256xf32>
    %c0_145 = arith.constant 0 : index
    %c0_146 = arith.constant 0 : index
    %335 = vector.load %arg11[%c0_145, %c0_146] : memref<32x32xbf16, #tpu.memory_space<vmem>>, vector<32x32xbf16>
    %336 = arith.truncf %305 : vector<32x256xf32> to vector<32x256xbf16>
    %cst_147 = arith.constant dense<0.000000e+00> : vector<32x256xf32>
    %337 = tpu.matmul %335, %336, %cst_147 {dimension_numbers = #tpu.dot_dimension_numbers<[1], [0], [0], [1], [0, 0, 1, 1], [], []>} : vector<32x32xbf16>, vector<32x256xbf16>, vector<32x256xf32> -> vector<32x256xf32>
    %338 = arith.addf %334, %337 : vector<32x256xf32>
    %c0_148 = arith.constant 0 : index
    %c0_149 = arith.constant 0 : index
    %339 = vector.load %arg12[%c0_148, %c0_149] : memref<32x1xf32, #tpu.memory_space<vmem>>, vector<32x1xf32>
    %340 = vector.broadcast %339 : vector<32x1xf32> to vector<32x256xf32>
    %341 = arith.addf %338, %340 : vector<32x256xf32>
    %342 = arith.truncf %341 : vector<32x256xf32> to vector<32x256xbf16>
    %c0_150 = arith.constant 0 : index
    %c0_151 = arith.constant 0 : index
    %343 = vector.load %arg13[%c0_150, %c0_151] : memref<256x1024xbf16, #tpu.memory_space<vmem>>, vector<256x1024xbf16>
    %cst_152 = arith.constant dense<0.000000e+00> : vector<32x1024xf32>
    %344 = tpu.matmul %342, %343, %cst_152 {dimension_numbers = #tpu.dot_dimension_numbers<[1], [0], [0], [1], [0, 0, 1, 1], [], []>} : vector<32x256xbf16>, vector<256x1024xbf16>, vector<32x1024xf32> -> vector<32x1024xf32>
    %c0_153 = arith.constant 0 : index
    %c0_154 = arith.constant 0 : index
    %c0_155 = arith.constant 0 : index
    %345 = vector.load %arg14[%c0_153, %c0_154, %c0_155] : memref<1x32x1024xf32, #tpu.memory_space<vmem>>, vector<1x32x1024xf32>
    %346 = vector.shape_cast %345 : vector<1x32x1024xf32> to vector<32x1024xf32>
    %347 = vector.shape_cast %344 : vector<32x1024xf32> to vector<1x32x1024xf32>
    tpu.vector_store %arg14[%c0_153, %c0_154, %c0_155], %347 {strides = array<i32>} : memref<1x32x1024xf32, #tpu.memory_space<vmem>>, vector<1x32x1024xf32>,
    return
  }
  func.func @transform_0(%arg0: i32) -> (i32, i32, i32) {
    %c0_i32 = arith.constant 0 : i32
    %c0_i32_0 = arith.constant 0 : i32
    %c0_i32_1 = arith.constant 0 : i32
    return %arg0, %c0_i32, %c0_i32_0 : i32, i32, i32
  }
  func.func @transform_1(%arg0: i32) -> (i32, i32, i32) {
    %c0_i32 = arith.constant 0 : i32
    %c0_i32_0 = arith.constant 0 : i32
    %c0_i32_1 = arith.constant 0 : i32
    %c0_i32_2 = arith.constant 0 : i32
    return %c0_i32, %c0_i32_0, %c0_i32_1 : i32, i32, i32
  }
  func.func @transform_2(%arg0: i32) -> (i32, i32) {
    %c0_i32 = arith.constant 0 : i32
    %c0_i32_0 = arith.constant 0 : i32
    %c0_i32_1 = arith.constant 0 : i32
    return %c0_i32, %c0_i32_0 : i32, i32
  }
  func.func @transform_3(%arg0: i32) -> (i32, i32) {
    %c0_i32 = arith.constant 0 : i32
    %c0_i32_0 = arith.constant 0 : i32
    %c0_i32_1 = arith.constant 0 : i32
    return %c0_i32, %c0_i32_0 : i32, i32
  }
  func.func @transform_4(%arg0: i32) -> (i32, i32) {
    %c0_i32 = arith.constant 0 : i32
    %c0_i32_0 = arith.constant 0 : i32
    %c0_i32_1 = arith.constant 0 : i32
    return %c0_i32, %c0_i32_0 : i32, i32
  }
  func.func @transform_5(%arg0: i32) -> (i32, i32) {
    %c0_i32 = arith.constant 0 : i32
    %c0_i32_0 = arith.constant 0 : i32
    %c0_i32_1 = arith.constant 0 : i32
    return %c0_i32, %c0_i32_0 : i32, i32
  }
  func.func @transform_6(%arg0: i32) -> (i32, i32) {
    %c0_i32 = arith.constant 0 : i32
    %c0_i32_0 = arith.constant 0 : i32
    %c0_i32_1 = arith.constant 0 : i32
    return %c0_i32, %c0_i32_0 : i32, i32
  }
  func.func @transform_7(%arg0: i32) -> (i32, i32) {
    %c0_i32 = arith.constant 0 : i32
    %c0_i32_0 = arith.constant 0 : i32
    %c0_i32_1 = arith.constant 0 : i32
    return %c0_i32, %c0_i32_0 : i32, i32
  }
  func.func @transform_8(%arg0: i32) -> (i32, i32) {
    %c0_i32 = arith.constant 0 : i32
    %c0_i32_0 = arith.constant 0 : i32
    %c0_i32_1 = arith.constant 0 : i32
    return %c0_i32, %c0_i32_0 : i32, i32
  }
  func.func @transform_9(%arg0: i32) -> (i32, i32) {
    %c0_i32 = arith.constant 0 : i32
    %c0_i32_0 = arith.constant 0 : i32
    %c0_i32_1 = arith.constant 0 : i32
    return %c0_i32, %c0_i32_0 : i32, i32
  }
  func.func @transform_10(%arg0: i32) -> (i32, i32) {
    %c0_i32 = arith.constant 0 : i32
    %c0_i32_0 = arith.constant 0 : i32
    %c0_i32_1 = arith.constant 0 : i32
    return %c0_i32, %c0_i32_0 : i32, i32
  }
  func.func @transform_11(%arg0: i32) -> (i32, i32) {
    %c0_i32 = arith.constant 0 : i32
    %c0_i32_0 = arith.constant 0 : i32
    %c0_i32_1 = arith.constant 0 : i32
    return %c0_i32, %c0_i32_0 : i32, i32
  }
  func.func @transform_12(%arg0: i32) -> (i32, i32) {
    %c0_i32 = arith.constant 0 : i32
    %c0_i32_0 = arith.constant 0 : i32
    %c0_i32_1 = arith.constant 0 : i32
    return %c0_i32, %c0_i32_0 : i32, i32
  }
  func.func @transform_13(%arg0: i32) -> (i32, i32, i32) {
    %c0_i32 = arith.constant 0 : i32
    %c0_i32_0 = arith.constant 0 : i32
    %c0_i32_1 = arith.constant 0 : i32
    return %arg0, %c0_i32, %c0_i32_0 : i32, i32, i32
  }
}

</mosaic_0001>

<bundles_post_ra>
// kernel: _lambda_.1
= control target key start
LH: loop header
LB: loop body
LE: loop exit
PB: predicated region body
PF: predicated region fallthrough
CT: control target
= control target key end

     0   :  { %s5999_s25 = smov 0   ;;  %s8102_s0 = inlined_call_operand.vmem [shape: f32[2,32,256], index: 0, kind: input, shape index: {}]   ;;  %s8103_s1 = inlined_call_operand.vmem [shape: bf16[9,64,32], index: 1, kind: input, shape index: {}]   ;;  %s8104_s2 = inlined_call_operand.vmem [shape: f32[64,1], index: 2, kind: input, shape index: {}]   ;;  %s8105_s3 = inlined_call_operand.vmem [shape: bf16[48,64], index: 3, kind: input, shape index: {}]   ;;  %s8106_s4 = inlined_call_operand.vmem [shape: f32[48,1], index: 4, kind: input, shape index: {}]   ;;  %s8107_s5 = inlined_call_operand.vmem [shape: bf16[4,64], index: 5, kind: input, shape index: {}]   ;;  %s8108_s6 = inlined_call_operand.vmem [shape: f32[4,1], index: 6, kind: input, shape index: {}]   ;;  %s8109_s7 = inlined_call_operand.vmem [shape: bf16[32,4], index: 7, kind: input, shape index: {}]   ;;  %s8110_s8 = inlined_call_operand.vmem [shape: f32[32,1], index: 8, kind: input, shape index: {}]   ;;  %s8111_s9 = inlined_call_operand.vmem [shape: bf16[32,64], index: 9, kind: input, shape index: {}]   ;;  %s8112_s10 = inlined_call_operand.vmem [shape: bf16[32,32], index: 10, kind: input, shape index: {}]   ;;  %s8113_s11 = inlined_call_operand.vmem [shape: f32[32,1], index: 11, kind: input, shape index: {}]   ;;  %s8114_s12 = inlined_call_operand.vmem [shape: bf16[256,1024], index: 12, kind: input, shape index: {}]   ;;  %s8115_s13 = inlined_call_operand.vmem [shape: f32[2,32,1024], index: 13, kind: output, shape index: {}]  }
   0x1 LB: > { %s4759_s26 = sadd.s32 4294967295, %s5918_s25   ;;  %p4763_p0 = scmp.ge.s32.totalorder %s5918_s25, 1  ;;  %s5918_s25 = sphi %s5999_s25, %s23_s25  }
   0x2   : > { %p387_p1 = scmp.lt.s32.totalorder %s5918_s25, 3 }
   0x4   : > { %p388_p2 = pnand %p4763_p0, %p387_p1 }
   0x6   : > { %391 = sbr.rel (%p388_p2) target bundleno = 3132 (0xc3c), region = 72 }
   0xd   : > { %p431_p3 = scmp.lt.s32.totalorder %s4759_s26, 1  ;;  %s5920_s14 = smov 17   ;;  %v8124_v12 = vmov 0   ;;  %v450_v13 = vlaneseq }
   0xe   : > { %653 = vmatprep.mubr.bf16.mxu0 %v8124_v12  ;;  %5576 = vset.pattern.permute.xlu1 %v8124_v12  ;;  %s5922_s15 = smov 16   ;;  %s5923_s16 = smov 15  }
   0xf   : > { %s8352_s26 = smov (!%p431_p3, %s4759_s26), 1  ;;  %5575 = vset.pattern.permute.xlu0 %v8124_v12  ;;  %2252 = vmatprep.mubr.bf16.mxu1 %v8124_v12  ;;  %s5924_s17 = smov 1   ;;  %v6065_v14 = vand.u32 127, %v450_v13 }
  0x10   : > { %s5177_s27 = sshll.u32 %s8352_s26, 6  ;;  %s5925_s18 = smov 127  }
  0x11   : > { %s435_s30 = scalar_lea.vmem %s8102_s0, %s5177_s27  ;;  %s5926_s19 = smov 113   ;;  %v452_v15 = vadd.s32 128, %v6065_v14  ;;  %v453_v17 = vcvt.s32.f32 %v6065_v14  ;;  %vm537_vm12 = vcmp.lt.s32.totalorder %v6065_v14, 17  ;;  %vm726_vm15 = vcmp.lt.s32.totalorder %v6065_v14, 16 }
  0x12   : > { %v6013_v0 = vld [vmem:[%s435_s30 + $0x20] sm:$0xff]  ;;  %v6015_v1 = vld [vmem:[%s435_s30 + $0x30] sm:$0xff]  ;;  %v6025_v5 = vld [vmem:[%s435_s30 + $0x28] sm:$0xff]  ;;  %s5927_s20 = smov 112   ;;  %s5928_s21 = smov 111  }
  0x13   : > { %v6017_v2 = vld [vmem:[%s435_s30] sm:$0xff]  ;;  %v6021_v3 = vpack.i.bf16 %v6015_v1, %v6013_v0  ;;  %v6023_v4 = vld [vmem:[%s435_s30 + $0x10] sm:$0xff]  ;;  %v6027_v6 = vld [vmem:[%s435_s30 + $0x38] sm:$0xff]  ;;  %v454_v16 = vcvt.s32.f32 %v452_v15  ;;  %v455_v19 = vadd.f32 0.5, %v453_v17  ;;  %s5178_s28 = sshll.u32 %s8352_s26, 8 }
  0x14   : > { %v6031_v7 = vpack.i.bf16 %v6023_v4, %v6017_v2  ;;  %v6033_v8 = vld [vmem:[%s435_s30 + $0x8] sm:$0xff]  ;;  %v6035_v9 = vld [vmem:[%s435_s30 + $0x18] sm:$0xff]  ;;  %v6040_v10 = vpack.i.bf16 %v6027_v6, %v6025_v5 }
  0x15   : > { %5426 = vrot.lane.b32.xlu1 %v6021_v3, %s5920_s14  ;;  %v5420_v11 = vpack.i.bf16 %v6035_v9, %v6033_v8  ;;  %v456_v18 = vadd.f32 0.5, %v454_v16  ;;  %v457_v21 = vmul.f32 0.0625, %v455_v19 }
  0x16   : > { %5416 = vrot.lane.b32.xlu0 %v6031_v7, %s5920_s14 }
  0x17   : > { %v458_v20 = vmul.f32 0.0625, %v456_v18  ;;  %v6074_v23 = vfloor.f32 %v457_v21 }
  0x19   : > { %5431 = vrot.lane.b32.xlu1 %v6040_v10, %s5920_s14  ;;  %v6072_v22 = vfloor.f32 %v458_v20  ;;  %v461_v25 = vmul.f32 16.0, %v6074_v23  ;;  %v546_v29 = vadd.f32 -1.0, %v6074_v23 }
  0x1a   : > { %5421 = vrot.lane.b32.xlu0 %v5420_v11, %s5920_s14  ;;  %s8065_s14 = scalar_lea.vmem %s8115_s13, %s5178_s28 }
  0x1b   : > { %v462_v24 = vmul.f32 16.0, %v6072_v22  ;;  %v547_v27 = vadd.f32 -1.0, %v6072_v22  ;;  %v6081_v28 = vsub.f32 %v453_v17, %v461_v25  ;;  %vm548_vm2 = vcmp.ge.f32.partialorder %v546_v29, 0.0 }
  0x1c   : > { %vm550_vm3 = vcmp.lt.f32.partialorder %v546_v29, 16.0 }
  0x1d   : > { %5441 = vrot.lane.b32.xlu1 %v5420_v11, %s5922_s15  ;;  %v6078_v26 = vsub.f32 %v454_v16, %v462_v24  ;;  %vm549_vm0 = vcmp.ge.f32.partialorder %v547_v27, 0.0  ;;  %vm551_vm1 = vcmp.lt.f32.partialorder %v547_v27, 16.0  ;;  %v6088_v31 = vadd.f32 -1.0, %v6081_v28  ;;  %vm6098_vm6 = vmand %vm548_vm2, %vm550_vm3 }
  0x1e   : > { %5436 = vrot.lane.b32.xlu0 %v6031_v7, %s5922_s15  ;;  %vm6093_vm4 = vmand %vm549_vm0, %vm551_vm1  ;;  %vm8119_vm0 = vcmp.ge.f32.partialorder %v6081_v28, 0.0 }
  0x1f   : > { %v6085_v30 = vadd.f32 -1.0, %v6078_v26  ;;  %vm8118_vm7 = vcmp.ge.f32.partialorder %v6088_v31, 0.0  ;;  %vm8117_vm11 = vcmp.lt.f32.partialorder %v6088_v31, 16.0  ;;  %vm8116_vm13 = vcmp.ge.f32.partialorder %v6078_v26, 0.0 }
  0x20   : > { %vm6112_vm10 = vmand %vm6098_vm6, %vm8118_vm7  ;;  %vm8120_vm3 = vcmp.lt.f32.partialorder %v6078_v26, 16.0  ;;  %v6149_v52 = vadd.f32 1.0, %v6078_v26 }
  0x21   : > { %5451 = vrot.lane.b32.xlu1 %v6040_v10, %s5922_s15  ;;  %vm8123_vm5 = vcmp.ge.f32.partialorder %v6085_v30, 0.0  ;;  %vm8122_vm9 = vcmp.lt.f32.partialorder %v6085_v30, 16.0  ;;  %vm6131_vm1 = vmand %vm6112_vm10, %vm8117_vm11 }
  0x22   : > { %5446 = vrot.lane.b32.xlu0 %v6021_v3, %s5922_s15  ;;  %vm559_vm8 = vmand %vm6093_vm4, %vm8123_vm5 }
  0x23   : > { %vm6121_vm14 = vmand %vm559_vm8, %vm8122_vm9 }
  0x24   : > { %vm6143_vm2 = vmand %vm6093_vm4, %vm8116_vm13  ;;  %vm741_vm13 = vcmp.lt.f32.partialorder %v6081_v28, 16.0 }
  0x25   : > { %5461 = vrot.lane.b32.xlu1 %v5420_v11, %s5923_s16  ;;  %vm4772_vm8 = vmpackc.low %vm6121_vm14, %vm6121_vm14 }
  0x26   : > { %5456 = vrot.lane.b32.xlu0 %v6031_v7, %s5923_s16  ;;  %vm4775_vm10 = vmpackc.low %vm6131_vm1, %vm6131_vm1 }
  0x27   : > { %vm6172_vm11 = vmand %vm6143_vm2, %vm8120_vm3  ;;  %vm923_vm3 = vcmp.lt.f32.partialorder %v6149_v52, 16.0 }
  0x28   : > { %vm6187_vm7 = vmand %vm6098_vm6, %vm8119_vm0  ;;  %vm907_vm0 = vcmp.lt.s32.totalorder %v6065_v14, 15 }
  0x29   : > { %5471 = vrot.lane.b32.xlu1 %v6040_v10, %s5923_s16  ;;  %vm4800_vm2 = vmpackc.low %vm6172_vm11, %vm6172_vm11 }
  0x2a   : > { %5466 = vrot.lane.b32.xlu0 %v6021_v3, %s5923_s16  ;;  %vm6219_vm14 = vmand %vm6187_vm7, %vm741_vm13 }
  0x2b   : > { %vm4803_vm1 = vmpackc.low %vm6219_vm14, %vm6219_vm14 }
  0x2d   : > { %5481 = vrot.lane.b32.xlu1 %v5420_v11, %s5924_s17 }
  0x2e   : > { %5476 = vrot.lane.b32.xlu0 %v6031_v7, %s5924_s17 }
  0x31   : > { %5491 = vrot.lane.b32.xlu1 %v6040_v10, %s5924_s17 }
  0x32   : > { %5486 = vrot.lane.b32.xlu0 %v6021_v3, %s5924_s17 }
  0x35   : > { %5501 = vrot.lane.b32.xlu1 %v5420_v11, %s5925_s18 }
  0x36   : > { %5496 = vrot.lane.b32.xlu0 %v6031_v7, %s5925_s18 }
  0x39   : > { %5511 = vrot.lane.b32.xlu1 %v6040_v10, %s5925_s18 }
  0x3a   : > { %5506 = vrot.lane.b32.xlu0 %v6021_v3, %s5925_s18 }
  0x3d   : > { %5521 = vrot.lane.b32.xlu1 %v5420_v11, %s5926_s19 }
  0x3e   : > { %5516 = vrot.lane.b32.xlu0 %v6031_v7, %s5926_s19 }
  0x41   : > { %5531 = vrot.lane.b32.xlu1 %v6040_v10, %s5926_s19 }
  0x42   : > { %5526 = vrot.lane.b32.xlu0 %v6021_v3, %s5926_s19 }
  0x45   : > { %5541 = vrot.lane.b32.xlu1 %v5420_v11, %s5927_s20 }
  0x46   : > { %5536 = vrot.lane.b32.xlu0 %v6031_v7, %s5927_s20 }
  0x49   : > { %5551 = vrot.lane.b32.xlu1 %v6040_v10, %s5927_s20 }
  0x4a   : > { %5546 = vrot.lane.b32.xlu0 %v6021_v3, %s5927_s20 }
  0x4d   : > { %5561 = vrot.lane.b32.xlu1 %v5420_v11, %s5928_s21 }
  0x4e   : > { %5556 = vrot.lane.b32.xlu0 %v6031_v7, %s5928_s21 }
  0x51   : > { %5571 = vrot.lane.b32.xlu1 %v6040_v10, %s5928_s21 }
  0x52   : > { %5566 = vrot.lane.b32.xlu0 %v6021_v3, %s5928_s21 }
  0x87   : > { %v5427_v33 = vpop.permute.xlu1 %5426 }
  0x88   : > { %v5417_v35 = vpop.permute.xlu0 %5416  ;;  %v5429_v36 = vunpack.i.h.bf16 %v5427_v33  ;;  %v5428_v37 = vunpack.i.l.bf16 %v5427_v33 }
  0x89   : > { %v5419_v44 = vunpack.i.h.bf16 %v5417_v35  ;;  %v5418_v45 = vunpack.i.l.bf16 %v5417_v35 }
  0x8b   : > { %v5432_v39 = vpop.permute.xlu1 %5431 }
  0x8c   : > { %v5434_v40 = vunpack.i.h.bf16 %v5432_v39  ;;  %v5433_v41 = vunpack.i.l.bf16 %v5432_v39  ;;  %v5422_v42 = vpop.permute.xlu0 %5421  ;;  %v5659_v39 = vld [vmem:[%s8103_s1] sm:$0xff]  }
  0x8d   : > { %v5424_v46 = vunpack.i.h.bf16 %v5422_v42  ;;  %v5423_v47 = vunpack.i.l.bf16 %v5422_v42 }
  0x8e   : > { %v540_v49 = vsel %vm537_vm12, %v5428_v37, %v5433_v41  ;;  %v541_v50 = vsel %vm537_vm12, %v5429_v36, %v5434_v40  ;;  %v544_v62 = vsel %vm537_vm12, %v5433_v41, %v5428_v37  ;;  %v545_v15 = vsel %vm537_vm12, %v5434_v40, %v5429_v36 }
  0x8f   : > { %v538_v53 = vsel %vm537_vm12, %v5418_v45, %v5423_v47  ;;  %v539_v54 = vsel %vm537_vm12, %v5419_v44, %v5424_v46  ;;  %v542_v55 = vsel %vm537_vm12, %v5423_v47, %v5418_v45  ;;  %v543_v56 = vsel %vm537_vm12, %v5424_v46, %v5419_v44  ;;  %v5442_v57 = vpop.permute.xlu1 %5441 }
  0x90   : > { %v4773_v58 = vpack.c.bf16 %v539_v54, %v538_v53  ;;  %v4776_v59 = vpack.c.bf16 %v543_v56, %v542_v55  ;;  %v5444_v60 = vunpack.i.h.bf16 %v5442_v57  ;;  %v5437_v61 = vpop.permute.xlu0 %5436  ;;  %v5443_v63 = vunpack.i.l.bf16 %v5442_v57  ;;  %v5660_v55 = vld [vmem:[%s8103_s1 + $0x8] sm:$0xff]   ;;  %v5661_v56 = vld [vmem:[%s8103_s1 + $0x10] sm:$0xff]  }
  0x91   : > { %v5439_v7 = vunpack.i.h.bf16 %v5437_v61  ;;  %v5438_v11 = vunpack.i.l.bf16 %v5437_v61  ;;  %v4779_v16 = vpack.c.bf16 %v541_v50, %v540_v49  ;;  %vm919_vm12 = vcmp.ge.f32.partialorder %v6149_v52, 0.0  ;;  %v5684_v52 = vld [vmem:[%s8103_s1 + $0xc8] sm:$0xff]  }
  0x92   : > { %4774 = vmatprep.subr.msk.bf16.mxu0 %vm4772_vm8, %v4773_v58  ;;  %v4782_v35 = vpack.c.bf16 %v545_v15, %v544_v62  ;;  %vm921_vm7 = vmand %vm6093_vm4, %vm919_vm12  ;;  %v6301_v57 = vadd.f32 1.0, %v6081_v28 }
  0x93   : > { %4777 = vmatpush1.bf16.msk.msra.mxu0 %vm4775_vm10, %v4776_v59  ;;  %v728_v18 = vsel %vm726_vm15, %v5439_v7, %v5444_v60  ;;  %v732_v19 = vsel %vm726_vm15, %v5444_v60, %v5439_v7  ;;  %v727_v20 = vsel %vm726_vm15, %v5438_v11, %v5443_v63  ;;  %v5452_v21 = vpop.permute.xlu1 %5451  ;;  %v731_v24 = vsel %vm726_vm15, %v5443_v63, %v5438_v11  ;;  %vm6258_vm4 = vmand %vm921_vm7, %vm923_vm3  ;;  %v5662_v60 = vld [vmem:[%s8103_s1 + $0x18] sm:$0xff]  }
  0x94   : > { %4780 = vmatprep.subr.msk.bf16.mxu0 %vm4772_vm8, %v4779_v16  ;;  %v4801_v25 = vpack.c.bf16 %v728_v18, %v727_v20  ;;  %v5454_v27 = vunpack.i.h.bf16 %v5452_v21  ;;  %v5453_v29 = vunpack.i.l.bf16 %v5452_v21  ;;  %v5447_v33 = vpop.permute.xlu0 %5446  ;;  %vm608_vm8 = vcmask 261120  }
  0x95   : > { %v5449_v37 = vunpack.i.h.bf16 %v5447_v33  ;;  %v5448_v38 = vunpack.i.l.bf16 %v5447_v33  ;;  %v4804_v10 = vpack.c.bf16 %v732_v19, %v731_v24  ;;  %vm8121_vm11 = vcmp.ge.f32.partialorder %v6301_v57, 0.0 }
  0x96   : > { %vm920_vm14 = vmand %vm6098_vm6, %vm8121_vm11  ;;  %vm922_vm7 = vcmp.lt.f32.partialorder %v6301_v57, 16.0  ;;  %vm1088_vm11 = vcmp.lt.s32.totalorder %v6065_v14, 1 }
  0x97   : > { %4783 = vmatpush1.bf16.msk.msra.mxu0 %vm4775_vm10, %v4782_v35  ;;  %v730_v40 = vsel %vm726_vm15, %v5449_v37, %v5454_v27  ;;  %v734_v3 = vsel %vm726_vm15, %v5454_v27, %v5449_v37  ;;  %v729_v41 = vsel %vm726_vm15, %v5448_v38, %v5453_v29  ;;  %v5462_v42 = vpop.permute.xlu1 %5461  ;;  %v733_v43 = vsel %vm726_vm15, %v5453_v29, %v5448_v38  ;;  %vm4828_vm15 = vmpackc.low %vm6258_vm4, %vm6258_vm4  ;;  %v5663_v27 = vld [vmem:[%s8103_s1 + $0x20] sm:$0xff]  }
  0x98   : > { %4802 = vmatprep.subr.msk.bf16.mxu0 %vm4800_vm2, %v4801_v25  ;;  %v4807_v44 = vpack.c.bf16 %v730_v40, %v729_v41  ;;  %v5464_v45 = vunpack.i.h.bf16 %v5462_v42  ;;  %v5463_v46 = vunpack.i.l.bf16 %v5462_v42  ;;  %v5457_v47 = vpop.permute.xlu0 %5456  ;;  %v4810_v50 = vpack.c.bf16 %v734_v3, %v733_v43  ;;  %vm6330_vm6 = vmand %vm920_vm14, %vm922_vm7  ;;  %v5664_v3 = vld [vmem:[%s8103_s1 + $0x28] sm:$0xff]   ;;  %v5665_v41 = vld [vmem:[%s8103_s1 + $0x30] sm:$0xff]  }
  0x99   : > { %v5459_v48 = vunpack.i.h.bf16 %v5457_v47  ;;  %v5458_v32 = vunpack.i.l.bf16 %v5457_v47  ;;  %vm1100_vm10 = vcmp.ge.f32.partialorder %v6072_v22, 0.0  ;;  %vm1099_vm4 = vcmp.ge.f32.partialorder %v6074_v23, 0.0  ;;  %v5666_v42 = vld [vmem:[%s8103_s1 + $0x38] sm:$0xff]  }
  0x9a   : > { %4784 = vmatmul.mubr.msk.bf16.vlgmr.msra.gmra.mrb[0].mxu0 %vm608_vm8, %v5659_v39 }
  0x9b   : > { %4805 = vmatpush1.bf16.msk.msra.mxu0 %vm4803_vm1, %v4804_v10  ;;  %663 = vmatprep.mubr.bf16.mxu0 %v8124_v12  ;;  %v909_v51 = vsel %vm907_vm0, %v5459_v48, %v5464_v45  ;;  %v908_v53 = vsel %vm907_vm0, %v5458_v32, %v5463_v46  ;;  %v5472_v58 = vpop.permute.xlu1 %5471  ;;  %v913_v15 = vsel %vm907_vm0, %v5464_v45, %v5459_v48 }
  0x9c   : > { %4808 = vmatprep.subr.msk.bf16.mxu0 %vm4800_vm2, %v4807_v44  ;;  %v4829_v54 = vpack.c.bf16 %v909_v51, %v908_v53  ;;  %v5467_v59 = vpop.permute.xlu0 %5466  ;;  %v5474_v61 = vunpack.i.h.bf16 %v5472_v58  ;;  %v5473_v62 = vunpack.i.l.bf16 %v5472_v58  ;;  %vm1102_vm2 = vcmp.lt.f32.partialorder %v6072_v22, 16.0 }
  0x9d   : > { %v5469_v63 = vunpack.i.h.bf16 %v5467_v59  ;;  %v5468_v7 = vunpack.i.l.bf16 %v5467_v59  ;;  %v912_v16 = vsel %vm907_vm0, %v5463_v46, %v5458_v32 }
  0x9e   : > { %v4832_v29 = vpack.c.bf16 %v913_v15, %v912_v16 }
  0x9f   : > { %4811 = vmatpush1.bf16.msk.msra.mxu0 %vm4803_vm1, %v4810_v50  ;;  %v5482_v11 = vpop.permute.xlu1 %5481  ;;  %v911_v17 = vsel %vm907_vm0, %v5469_v63, %v5474_v61  ;;  %v910_v18 = vsel %vm907_vm0, %v5468_v7, %v5473_v62  ;;  %vm6324_vm1 = vmand %vm1100_vm10, %vm1102_vm2  ;;  %v915_v33 = vsel %vm907_vm0, %v5474_v61, %v5469_v63  ;;  %v914_v35 = vsel %vm907_vm0, %v5473_v62, %v5468_v7  ;;  %v5668_v7 = vld [vmem:[%s8103_s1 + $0x48] sm:$0xff]  }
  0xa0   : > { %4830 = vmatprep.subr.msk.bf16.mxu0 %vm4828_vm15, %v4829_v54  ;;  %v5477_v13 = vpop.permute.xlu0 %5476  ;;  %v5484_v20 = vunpack.i.h.bf16 %v5482_v11  ;;  %v5483_v21 = vunpack.i.l.bf16 %v5482_v11  ;;  %vm1106_vm10 = vmand %vm6324_vm1, %vm8123_vm5  ;;  %v4835_v36 = vpack.c.bf16 %v911_v17, %v910_v18  ;;  %v4838_v10 = vpack.c.bf16 %v915_v33, %v914_v35  ;;  %v5674_v33 = vld [vmem:[%s8103_s1 + $0x78] sm:$0xff]  }
  0xa1   : > { %v5479_v24 = vunpack.i.h.bf16 %v5477_v13  ;;  %v5478_v25 = vunpack.i.l.bf16 %v5477_v13  ;;  %vm4831_vm2 = vmpackc.low %vm6330_vm6, %vm6330_vm6  ;;  %v4885_v63 = vpack.c.bf16 %v6035_v9, %v6033_v8  ;;  %v5669_v8 = vld [vmem:[%s8103_s1 + $0x50] sm:$0xff]   ;;  %v5670_v9 = vld [vmem:[%s8103_s1 + $0x58] sm:$0xff]  }
  0xa2   : > { %4785 = vmatmul.mubr.msk.bf16.gmra.mrb[4].mxu0 %vm608_vm8, %v5660_v55  ;;  %vm6356_vm14 = vmand %vm1106_vm10, %vm8122_vm9  ;;  %vm8201_vm10 = vcmp.ge.f32.partialorder %v6088_v31, 0.0  ;;  %v5667_v55 = vld [vmem:[%s8103_s1 + $0x40] sm:$0xff]  }
  0xa3   : > { %673 = vmatprep.mubr.bf16.mxu0 %v8124_v12  ;;  %v1090_v37 = vsel %vm1088_vm11, %v5479_v24, %v5484_v20  ;;  %v1089_v38 = vsel %vm1088_vm11, %v5478_v25, %v5483_v21  ;;  %vm4856_vm0 = vmpackc.low %vm6356_vm14, %vm6356_vm14  ;;  %v5492_v43 = vpop.permute.xlu1 %5491  ;;  %v1094_v49 = vsel %vm1088_vm11, %v5484_v20, %v5479_v24  ;;  %v1093_v50 = vsel %vm1088_vm11, %v5483_v21, %v5478_v25  ;;  %v5671_v20 = vld [vmem:[%s8103_s1 + $0x60] sm:$0xff]  }
  0xa4   : > { %v4857_v40 = vpack.c.bf16 %v1090_v37, %v1089_v38  ;;  %v5487_v44 = vpop.permute.xlu0 %5486  ;;  %v5494_v46 = vunpack.i.h.bf16 %v5492_v43  ;;  %v5493_v47 = vunpack.i.l.bf16 %v5492_v43  ;;  %v4888_v21 = vpack.c.bf16 %v6023_v4, %v6017_v2  ;;  %v5681_v43 = vld [vmem:[%s8103_s1 + $0xb0] sm:$0xff]  }
  0xa5   : > { %v5489_v48 = vunpack.i.h.bf16 %v5487_v44  ;;  %v5488_v32 = vunpack.i.l.bf16 %v5487_v44  ;;  %v4891_v24 = vpack.c.bf16 %v6027_v6, %v6025_v5  ;;  %v4894_v4 = vpack.c.bf16 %v6015_v1, %v6013_v0  ;;  %v5672_v6 = vld [vmem:[%s8103_s1 + $0x68] sm:$0xff]   ;;  %v5673_v0 = vld [vmem:[%s8103_s1 + $0x70] sm:$0xff]  }
  0xa7   : > { %v1092_v53 = vsel %vm1088_vm11, %v5489_v48, %v5494_v46  ;;  %v1091_v54 = vsel %vm1088_vm11, %v5488_v32, %v5493_v47  ;;  %v1096_v58 = vsel %vm1088_vm11, %v5494_v46, %v5489_v48  ;;  %v1095_v59 = vsel %vm1088_vm11, %v5493_v47, %v5488_v32  ;;  %v5502_v11 = vpop.permute.xlu1 %5501  ;;  %v5675_v48 = vld [vmem:[%s8103_s1 + $0x80] sm:$0xff]  }
  0xa8   : > { %v4866_v62 = vpack.c.bf16 %v1096_v58, %v1095_v59  ;;  %vm8209_vm11 = vcmp.ge.f32.partialorder %v6081_v28, 0.0  ;;  %v5497_v13 = vpop.permute.xlu0 %5496  ;;  %v5504_v16 = vunpack.i.h.bf16 %v5502_v11  ;;  %v5503_v17 = vunpack.i.l.bf16 %v5502_v11  ;;  %v5677_v59 = vld [vmem:[%s8103_s1 + $0x90] sm:$0xff]  }
  0xa9   : > { %v5499_v18 = vunpack.i.h.bf16 %v5497_v13  ;;  %v5498_v19 = vunpack.i.l.bf16 %v5497_v13 }
  0xaa   : > { %4786 = vmatmul.mubr.msk.bf16.gmra.mrb[8].mxu0 %vm608_vm8, %v5661_v56  ;;  %v4860_v56 = vpack.c.bf16 %v1094_v49, %v1093_v50 }
  0xab   : > { %683 = vmatprep.mubr.bf16.mxu0 %v8124_v12  ;;  %v5512_v1 = vpop.permute.xlu1 %5511 }
  0xac   : > { %v5507_v34 = vpop.permute.xlu0 %5506  ;;  %v5514_v35 = vunpack.i.h.bf16 %v5512_v1 }
  0xad   : > { %v5509_v37 = vunpack.i.h.bf16 %v5507_v34  ;;  %v5508_v38 = vunpack.i.l.bf16 %v5507_v34 }
  0xaf   : > { %v5522_v39 = vpop.permute.xlu1 %5521 }
  0xb0   : > { %v5524_v44 = vunpack.i.h.bf16 %v5522_v39  ;;  %v5523_v45 = vunpack.i.l.bf16 %v5522_v39 }
  0xb2   : > { %4787 = vmatmul.mubr.msk.bf16.gmra.mrb[12].mxu0 %vm608_vm8, %v5662_v60  ;;  %v4863_v60 = vpack.c.bf16 %v1092_v53, %v1091_v54 }
  0xb3   : > { %834 = vmatprep.mubr.bf16.mxu0 %v8124_v12  ;;  %v5532_v61 = vpop.permute.xlu1 %5531 }
  0xb7   : > { %v6618_v13 = vpop.permute.xlu1 %5541 }
  0xb8   : > { %v5543_v2 = vunpack.i.l.bf16 %v6618_v13 }
  0xba   : > { %4812 = vmatmul.mubr.msk.bf16.vlgmr.msra.gmra.mrb[0].mxu0 %vm608_vm8, %v5663_v27 }
  0xbb   : > { %4833 = vmatpush1.bf16.msk.msra.mxu0 %vm4831_vm2, %v4832_v29  ;;  %844 = vmatprep.mubr.bf16.mxu0 %v8124_v12  ;;  %v1606_v29 = vadd.f32 1.0, %v6072_v22 }
  0xbc   : > { %4836 = vmatprep.subr.msk.bf16.mxu0 %vm4828_vm15, %v4835_v36  ;;  %vm1101_vm15 = vcmp.lt.f32.partialorder %v6074_v23, 16.0  ;;  %v5513_v36 = vunpack.i.l.bf16 %v5512_v1 }
  0xbd   : > { %vm6389_vm6 = vmand %vm1099_vm4, %vm1101_vm15  ;;  %vm8202_vm4 = vcmp.lt.f32.partialorder %v6088_v31, 16.0 }
  0xbe   : > { %vm1255_vm14 = vmand %vm6389_vm6, %vm8209_vm11  ;;  %vm8214_vm11 = vcmp.ge.f32.partialorder %v6301_v57, 0.0 }
  0xbf   : > { %4839 = vmatpush1.bf16.msk.msra.mxu0 %vm4831_vm2, %v4838_v10  ;;  %vm1105_vm2 = vmand %vm6389_vm6, %vm8201_vm10  ;;  %vm8205_vm10 = vcmp.ge.f32.partialorder %v6078_v26, 0.0  ;;  %v5517_v10 = vpop.permute.xlu0 %5516 }
  0xc0   : > { %4858 = vmatprep.subr.msk.bf16.mxu0 %vm4856_vm0, %v4857_v40  ;;  %vm6405_vm15 = vmand %vm1105_vm2, %vm8202_vm4  ;;  %vm8206_vm4 = vcmp.lt.f32.partialorder %v6078_v26, 16.0  ;;  %v5519_v46 = vunpack.i.h.bf16 %v5517_v10  ;;  %v5518_v47 = vunpack.i.l.bf16 %v5517_v10  ;;  %v471_v10 = vld [vmem:[%s8104_s2 + $0x30] sm:$0xff] }
  0xc1   : > { %vm1256_vm9 = vmand %vm6324_vm1, %vm8205_vm10 }
  0xc2   : > { %4813 = vmatmul.mubr.msk.bf16.gmra.mrb[4].mxu0 %vm608_vm8, %v5664_v3  ;;  %vm4859_vm2 = vmpackc.low %vm6405_vm15, %vm6405_vm15  ;;  %vm1421_vm15 = vcmp.lt.s32.totalorder %v6065_v14, 127 }
  0xc3   : > { %854 = vmatprep.mubr.bf16.mxu0 %v8124_v12  ;;  %vm6430_vm5 = vmand %vm1256_vm9, %vm8206_vm4  ;;  %v1427_v25 = vsel %vm1421_vm15, %v5504_v16, %v5499_v18  ;;  %v1426_v27 = vsel %vm1421_vm15, %v5503_v17, %v5498_v19  ;;  %v1423_v22 = vsel %vm1421_vm15, %v5499_v18, %v5504_v16  ;;  %v1422_v40 = vsel %vm1421_vm15, %v5498_v19, %v5503_v17  ;;  %v466_v16 = vld [vmem:[%s8104_s2 + $0x8] sm:$0xff]  ;;  %v465_v17 = vld [vmem:[%s8104_s2] sm:$0xff] }
  0xc4   : > { %vm4884_vm9 = vmpackc.low %vm6430_vm5, %vm6430_vm5  ;;  %v4913_v5 = vpack.c.bf16 %v1427_v25, %v1426_v27  ;;  %vm1608_vm5 = vcmp.ge.f32.partialorder %v1606_v29, 0.0  ;;  %v1429_v3 = vsel %vm1421_vm15, %v5514_v35, %v5509_v37  ;;  %v4916_v32 = vpack.c.bf16 %v1423_v22, %v1422_v40  ;;  %480 = vperm.xlu1 %5576, %v466_v16   ;;  %475 = vperm.xlu0 %5575, %v465_v17   ;;  %v5680_v22 = vld [vmem:[%s8103_s1 + $0xa8] sm:$0xff]   ;;  %v472_v40 = vld [vmem:[%s8104_s2 + $0x38] sm:$0xff] }
  0xc5   : > { %vm1431_vm10 = vmand %vm6324_vm1, %vm919_vm12  ;;  %v1425_v49 = vsel %vm1421_vm15, %v5509_v37, %v5514_v35  ;;  %v1424_v50 = vsel %vm1421_vm15, %v5508_v38, %v5513_v36  ;;  %v5544_v27 = vunpack.i.h.bf16 %v6618_v13  ;;  %v5685_v16 = vld [vmem:[%s8103_s1 + $0xd0] sm:$0xff]   ;;  %v5686_v17 = vld [vmem:[%s8103_s1 + $0xd8] sm:$0xff]  }
  0xc6   : > { %vm6497_vm4 = vmand %vm1431_vm10, %vm923_vm3  ;;  %vm1596_vm10 = vcmp.lt.s32.totalorder %v6065_v14, 113  ;;  %v5693_v37 = vld [vmem:[%s8103_s1 + $0x110] sm:$0xff]  }
  0xc7   : > { %vm4912_vm1 = vmpackc.low %vm6497_vm4, %vm6497_vm4  ;;  %v1602_v53 = vsel %vm1596_vm10, %v5524_v44, %v5519_v46  ;;  %v1601_v54 = vsel %vm1596_vm10, %v5523_v45, %v5518_v47  ;;  %v1598_v18 = vsel %vm1596_vm10, %v5519_v46, %v5524_v44  ;;  %v1597_v19 = vsel %vm1596_vm10, %v5518_v47, %v5523_v45  ;;  %v5552_v44 = vpop.permute.xlu1 %5551  ;;  %v5682_v46 = vld [vmem:[%s8103_s1 + $0xb8] sm:$0xff]  }
  0xc8   : > { %v4941_v58 = vpack.c.bf16 %v1602_v53, %v1601_v54  ;;  %v5554_v47 = vunpack.i.h.bf16 %v5552_v44 }
  0xca   : > { %4814 = vmatmul.mubr.msk.bf16.gmra.mrb[8].mxu0 %vm608_vm8, %v5665_v41  ;;  %v1428_v41 = vsel %vm1421_vm15, %v5513_v36, %v5508_v38  ;;  %v469_v36 = vld [vmem:[%s8104_s2 + $0x20] sm:$0xff]  ;;  %v470_v38 = vld [vmem:[%s8104_s2 + $0x28] sm:$0xff] }
  0xcb   : > { %864 = vmatprep.mubr.bf16.mxu0 %v8124_v12  ;;  %v4919_v51 = vpack.c.bf16 %v1429_v3, %v1428_v41  ;;  %v2160_v3 = vld [vmem:[%s8106_s4 + $0x8] sm:$0xff]  ;;  %v2159_v41 = vld [vmem:[%s8106_s4] sm:$0xff] }
  0xd2   : > { %4815 = vmatmul.mubr.msk.bf16.gmra.mrb[12].mxu0 %vm608_vm8, %v5666_v42 }
  0xd3   : > { %1015 = vmatprep.mubr.bf16.mxu0 %v8124_v12 }
  0xda   : > { %4840 = vmatmul.mubr.msk.bf16.vlgmr.msra.gmra.mrb[0].mxu0 %vm608_vm8, %v5667_v55 }
  0xdb   : > { %4861 = vmatpush1.bf16.msk.msra.mxu0 %vm4859_vm2, %v4860_v56  ;;  %1025 = vmatprep.mubr.bf16.mxu0 %v8124_v12  ;;  %v4922_v56 = vpack.c.bf16 %v1425_v49, %v1424_v50  ;;  %v5562_v50 = vpop.permute.xlu1 %5561 }
  0xdc   : > { %4864 = vmatprep.subr.msk.bf16.mxu0 %vm4856_vm0, %v4863_v60  ;;  %vm6471_vm0 = vmand %vm1255_vm14, %vm741_vm13  ;;  %v1605_v60 = vadd.f32 1.0, %v6074_v23 }
  0xdd   : > { %vm1430_vm14 = vmand %vm6389_vm6, %vm8214_vm11  ;;  %vm8220_vm11 = vcmp.lt.f32.partialorder %v6085_v30, 16.0 }
  0xde   : > { %vm6551_vm6 = vmand %vm1430_vm14, %vm922_vm7  ;;  %vm1607_vm4 = vcmp.ge.f32.partialorder %v1605_v60, 0.0 }
  0xdf   : > { %4867 = vmatpush1.bf16.msk.msra.mxu0 %vm4859_vm2, %v4866_v62  ;;  %vm4887_vm2 = vmpackc.low %vm6471_vm0, %vm6471_vm0  ;;  %v5527_v62 = vpop.permute.xlu0 %5526 }
  0xe0   : > { %4886 = vmatprep.subr.msk.bf16.mxu0 %vm4884_vm9, %v4885_v63  ;;  %v5678_v63 = vld [vmem:[%s8103_s1 + $0x98] sm:$0xff]   ;;  %v5529_v11 = vunpack.i.h.bf16 %v5527_v62  ;;  %v5528_v23 = vunpack.i.l.bf16 %v5527_v62  ;;  %v5683_v62 = vld [vmem:[%s8103_s1 + $0xc0] sm:$0xff]  }
  0xe2   : > { %4841 = vmatmul.mubr.msk.bf16.gmra.mrb[4].mxu0 %vm608_vm8, %v5668_v7 }
  0xe3   : > { %1035 = vmatprep.mubr.bf16.mxu0 %v8124_v12  ;;  %v6620_v15 = vpop.permute.xlu0 %5536 }
  0xe7   : > { %v5547_v45 = vpop.permute.xlu0 %5546 }
  0xe8   : > { %v5548_v49 = vunpack.i.l.bf16 %v5547_v45 }
  0xea   : > { %4842 = vmatmul.mubr.msk.bf16.gmra.mrb[8].mxu0 %vm608_vm8, %v5669_v8  ;;  %v5534_v8 = vunpack.i.h.bf16 %v5532_v61 }
  0xeb   : > { %1045 = vmatprep.mubr.bf16.mxu0 %v8124_v12 }
  0xec   : > { %v1600_v1 = vsel %vm1596_vm10, %v5529_v11, %v5534_v8 }
  0xf2   : > { %4843 = vmatmul.mubr.msk.bf16.gmra.mrb[12].mxu0 %vm608_vm8, %v5670_v9  ;;  %v5533_v9 = vunpack.i.l.bf16 %v5532_v61 }
  0xf3   : > { %1198 = vmatprep.mubr.bf16.mxu0 %v8124_v12 }
  0xf4   : > { %v1599_v34 = vsel %vm1596_vm10, %v5528_v23, %v5533_v9 }
  0xf5   : > { %v4950_v39 = vpack.c.bf16 %v1600_v1, %v1599_v34 }
  0xfa   : > { %4868 = vmatmul.mubr.msk.bf16.vlgmr.msra.gmra.mrb[0].mxu0 %vm608_vm8, %v5671_v20  ;;  %v1604_v20 = vsel %vm1596_vm10, %v5534_v8, %v5529_v11 }
  0xfb   : > { %4889 = vmatpush1.bf16.msk.msra.mxu0 %vm4887_vm2, %v4888_v21  ;;  %1208 = vmatprep.mubr.bf16.mxu0 %v8124_v12  ;;  %v1603_v21 = vsel %vm1596_vm10, %v5533_v9, %v5528_v23 }
  0xfc   : > { %4892 = vmatprep.subr.msk.bf16.mxu0 %vm4884_vm9, %v4891_v24  ;;  %vm1610_vm9 = vcmp.lt.f32.partialorder %v1606_v29, 16.0  ;;  %v467_v24 = vld [vmem:[%s8104_s2 + $0x10] sm:$0xff]  ;;  %v4947_v29 = vpack.c.bf16 %v1604_v20, %v1603_v21 }
  0xfd   : > { %vm6545_vm0 = vmand %vm1608_vm5, %vm1610_vm9  ;;  %485 = vperm.xlu1 %5576, %v467_v24  }
  0xfe   : > { %vm4915_vm9 = vmpackc.low %vm6551_vm6, %vm6551_vm6 }
  0xff   : > { %4895 = vmatpush1.bf16.msk.msra.mxu0 %vm4887_vm2, %v4894_v4  ;;  %vm8219_vm2 = vcmp.ge.f32.partialorder %v6085_v30, 0.0  ;;  %v5676_v30 = vld [vmem:[%s8103_s1 + $0x88] sm:$0xff]   ;;  %v5539_v4 = vunpack.i.h.bf16 %v6620_v15 }
 0x100   : > { %4914 = vmatprep.subr.msk.bf16.mxu0 %vm4912_vm1, %v4913_v5  ;;  %vm1614_vm5 = vmand %vm6545_vm0, %vm8219_vm2  ;;  %vm8225_vm2 = vcmp.ge.f32.partialorder %v6088_v31, 0.0  ;;  %v5538_v5 = vunpack.i.l.bf16 %v6620_v15 }
 0x101   : > { %vm6577_vm14 = vmand %vm1614_vm5, %vm8220_vm11  ;;  %495 = vperm.xlu1 %5576, %v469_v36   ;;  %v5692_v36 = vld [vmem:[%s8103_s1 + $0x108] sm:$0xff]  }
 0x102   : > { %4869 = vmatmul.mubr.msk.bf16.gmra.mrb[4].mxu0 %vm608_vm8, %v5672_v6  ;;  %vm4940_vm15 = vmpackc.low %vm6577_vm14, %vm6577_vm14  ;;  %v468_v6 = vld [vmem:[%s8104_s2 + $0x18] sm:$0xff]  ;;  %vm8233_vm14 = vcmp.ge.f32.partialorder %v6081_v28, 0.0 }
 0x103   : > { %1218 = vmatprep.mubr.bf16.mxu0 %v8124_v12  ;;  %490 = vperm.xlu0 %5575, %v468_v6   ;;  %v5687_v6 = vld [vmem:[%s8103_s1 + $0xe0] sm:$0xff]  }
 0x105   : > { %505 = vperm.xlu1 %5576, %v471_v10  }
 0x107   : > { %500 = vperm.xlu0 %5575, %v470_v38   ;;  %v5694_v38 = vld [vmem:[%s8103_s1 + $0x118] sm:$0xff]  }
 0x109   : > { %2172 = vperm.xlu1 %5576, %v2160_v3  }
 0x10a   : > { %4870 = vmatmul.mubr.msk.bf16.gmra.mrb[8].mxu0 %vm608_vm8, %v5673_v0  ;;  %v4944_v0 = vpack.c.bf16 %v1598_v18, %v1597_v19  ;;  %v5572_v18 = vpop.permute.xlu1 %5571 }
 0x10b   : > { %1228 = vmatprep.mubr.bf16.mxu0 %v8124_v12  ;;  %510 = vperm.xlu0 %5575, %v472_v40   ;;  %v5574_v20 = vunpack.i.h.bf16 %v5572_v18  ;;  %v5573_v21 = vunpack.i.l.bf16 %v5572_v18 }
 0x10f   : > { %2167 = vperm.xlu0 %5575, %v2159_v41  }
 0x112   : > { %4871 = vmatmul.mubr.msk.bf16.gmra.mrb[12].mxu0 %vm608_vm8, %v5674_v33 }
 0x113   : > { %1348 = vmatprep.mubr.bf16.mxu0 %v8124_v12 }
 0x11a   : > { %4896 = vmatmul.mubr.msk.bf16.vlgmr.msra.gmra.mrb[0].mxu0 %vm608_vm8, %v5675_v48  ;;  %v5553_v48 = vunpack.i.l.bf16 %v5552_v44 }
 0x11b   : > { %4917 = vmatpush1.bf16.msk.msra.mxu0 %vm4915_vm9, %v4916_v32  ;;  %1358 = vmatprep.mubr.bf16.mxu0 %v8124_v12  ;;  %v5549_v32 = vunpack.i.h.bf16 %v5547_v45 }
 0x11c   : > { %4920 = vmatprep.subr.msk.bf16.mxu0 %vm4912_vm1, %v4919_v51  ;;  %vm1609_vm1 = vcmp.lt.f32.partialorder %v1605_v60, 16.0  ;;  %v5557_v51 = vpop.permute.xlu0 %5556 }
 0x11d   : > { %vm6609_vm6 = vmand %vm1607_vm4, %vm1609_vm1  ;;  %vm1779_vm4 = vcmp.lt.s32.totalorder %v6065_v14, 112  ;;  %vm8229_vm1 = vcmp.ge.f32.partialorder %v6078_v26, 0.0  ;;  %v5559_v60 = vunpack.i.h.bf16 %v5557_v51  ;;  %v5558_v61 = vunpack.i.l.bf16 %v5557_v51 }
 0x11e   : > { %vm1613_vm5 = vmand %vm6609_vm6, %vm8225_vm2  ;;  %v1785_v33 = vsel %vm1779_vm4, %v5544_v27, %v5539_v4  ;;  %v1784_v35 = vsel %vm1779_vm4, %v5543_v2, %v5538_v5  ;;  %v1781_v53 = vsel %vm1779_vm4, %v5539_v4, %v5544_v27  ;;  %v1780_v54 = vsel %vm1779_vm4, %v5538_v5, %v5543_v2 }
 0x11f   : > { %4923 = vmatpush1.bf16.msk.msra.mxu0 %vm4915_vm9, %v4922_v56  ;;  %vm8226_vm9 = vcmp.lt.f32.partialorder %v6088_v31, 16.0  ;;  %v5679_v31 = vld [vmem:[%s8103_s1 + $0xa0] sm:$0xff]   ;;  %vm1789_vm2 = vmand %vm6545_vm0, %vm8229_vm1  ;;  %v1787_v55 = vsel %vm1779_vm4, %v5554_v47, %v5549_v32  ;;  %v1786_v56 = vsel %vm1779_vm4, %v5553_v48, %v5548_v49  ;;  %v1783_v28 = vsel %vm1779_vm4, %v5549_v32, %v5554_v47 }
 0x120   : > { %4942 = vmatprep.subr.msk.bf16.mxu0 %vm4940_vm15, %v4941_v58  ;;  %vm6642_vm11 = vmand %vm1613_vm5, %vm8226_vm9  ;;  %vm8230_vm9 = vcmp.lt.f32.partialorder %v6078_v26, 16.0  ;;  %v4969_v26 = vpack.c.bf16 %v1785_v33, %v1784_v35  ;;  %v1782_v8 = vsel %vm1779_vm4, %v5548_v49, %v5553_v48  ;;  %v4975_v9 = vpack.c.bf16 %v1787_v55, %v1786_v56  ;;  %v5567_v19 = vpop.permute.xlu0 %5566  ;;  %v5690_v33 = vld [vmem:[%s8103_s1 + $0xf8] sm:$0xff]   ;;  %v5691_v35 = vld [vmem:[%s8103_s1 + $0x100] sm:$0xff]  }
 0x121   : > { %vm4943_vm5 = vmpackc.low %vm6642_vm11, %vm6642_vm11  ;;  %v4978_v13 = vpack.c.bf16 %v1783_v28, %v1782_v8  ;;  %v5569_v24 = vunpack.i.h.bf16 %v5567_v19  ;;  %v5568_v25 = vunpack.i.l.bf16 %v5567_v19 }
 0x122   : > { %4897 = vmatmul.mubr.msk.bf16.gmra.mrb[4].mxu0 %vm608_vm8, %v5676_v30  ;;  %vm6678_vm1 = vmand %vm1789_vm2, %vm8230_vm9  ;;  %v5564_v30 = vunpack.i.h.bf16 %v5562_v50  ;;  %vm1954_vm2 = vcmp.lt.s32.totalorder %v6065_v14, 111  ;;  %v5689_v14 = vld [vmem:[%s8103_s1 + $0xf0] sm:$0xff]  }
 0x123   : > { %1368 = vmatprep.mubr.bf16.mxu0 %v8124_v12  ;;  %vm4968_vm10 = vmpackc.low %vm6678_vm1, %vm6678_vm1  ;;  %v1962_v5 = vsel %vm1954_vm2, %v5574_v20, %v5569_v24  ;;  %v1961_v7 = vsel %vm1954_vm2, %v5573_v21, %v5568_v25  ;;  %vm2447_vm1 = vcmask 64512  }
 0x124   : > { %v1960_v11 = vsel %vm1954_vm2, %v5564_v30, %v5559_v60  ;;  %v1956_v27 = vsel %vm1954_vm2, %v5559_v60, %v5564_v30  ;;  %v5003_v1 = vpack.c.bf16 %v1962_v5, %v1961_v7 }
 0x12a   : > { %4898 = vmatmul.mubr.msk.bf16.gmra.mrb[8].mxu0 %vm608_vm8, %v5677_v59  ;;  %v5563_v59 = vunpack.i.l.bf16 %v5562_v50 }
 0x12b   : > { %1378 = vmatprep.mubr.bf16.mxu0 %v8124_v12 }
 0x12c   : > { %v1959_v23 = vsel %vm1954_vm2, %v5563_v59, %v5558_v61  ;;  %v1955_v2 = vsel %vm1954_vm2, %v5558_v61, %v5563_v59 }
 0x12d   : > { %v4997_v15 = vpack.c.bf16 %v1960_v11, %v1959_v23 }
 0x132   : > { %4899 = vmatmul.mubr.msk.bf16.gmra.mrb[12].mxu0 %vm608_vm8, %v5678_v63  ;;  %v4972_v63 = vpack.c.bf16 %v1781_v53, %v1780_v54 }
 0x133   : > { %1523 = vmatprep.mubr.bf16.mxu0 %v8124_v12 }
 0x13a   : > { %4924 = vmatmul.mubr.msk.bf16.vlgmr.msra.gmra.mrb[0].mxu0 %vm608_vm8, %v5679_v31  ;;  %v5000_v31 = vpack.c.bf16 %v1956_v27, %v1955_v2 }
 0x13b   : > { %4945 = vmatpush1.bf16.msk.msra.mxu0 %vm4943_vm5, %v4944_v0  ;;  %1533 = vmatprep.mubr.bf16.mxu0 %v8124_v12  ;;  %v1957_v0 = vsel %vm1954_vm2, %v5568_v25, %v5573_v21 }
 0x13c   : > { %4948 = vmatprep.subr.msk.bf16.mxu0 %vm4940_vm15, %v4947_v29  ;;  %vm1788_vm15 = vmand %vm6609_vm6, %vm8233_vm14  ;;  %v5688_v29 = vld [vmem:[%s8103_s1 + $0xe8] sm:$0xff]   ;;  %vm3377_vm14 = vcmask 31744  }
 0x13d   : > { %vm6750_vm11 = vmand %vm1788_vm15, %vm741_vm13  ;;  %vm3384_vm15 = vcmask 1041408  }
 0x13e   : > { %vm4971_vm13 = vmpackc.low %vm6750_vm11, %vm6750_vm11 }
 0x13f   : > { %4951 = vmatpush1.bf16.msk.msra.mxu0 %vm4943_vm5, %v4950_v39  ;;  %vm1964_vm5 = vmand %vm6545_vm0, %vm919_vm12 }
 0x140   : > { %4970 = vmatprep.subr.msk.bf16.mxu0 %vm4968_vm10, %v4969_v26  ;;  %vm6776_vm12 = vmand %vm1964_vm5, %vm923_vm3  ;;  %vm8238_vm3 = vcmp.ge.f32.partialorder %v6301_v57, 0.0  ;;  %v1958_v57 = vsel %vm1954_vm2, %v5569_v24, %v5574_v20 }
 0x141   : > { %vm4996_vm0 = vmpackc.low %vm6776_vm12, %vm6776_vm12  ;;  %v5006_v34 = vpack.c.bf16 %v1958_v57, %v1957_v0 }
 0x142   : > { %4925 = vmatmul.mubr.msk.bf16.gmra.mrb[4].mxu0 %vm608_vm8, %v5680_v22  ;;  %vm1963_vm4 = vmand %vm6609_vm6, %vm8238_vm3 }
 0x143   : > { %1543 = vmatprep.mubr.bf16.mxu0 %v8124_v12  ;;  %vm6819_vm9 = vmand %vm1963_vm4, %vm922_vm7  ;;  %v476_v39 = vpop.permute.xlu0 %475  ;;  %v481_v40 = vpop.permute.xlu1 %480  ;;  %vm2210_vm7 = vcmask 523264  }
 0x144   : > { %vm4999_vm6 = vmpackc.low %vm6819_vm9, %vm6819_vm9 }
 0x14a   : > { %4926 = vmatmul.mubr.msk.bf16.gmra.mrb[8].mxu0 %vm608_vm8, %v5681_v43 }
 0x14b   : > { %1553 = vmatprep.mubr.bf16.mxu0 %v8124_v12 }
 0x152   : > { %4927 = vmatmul.mubr.msk.bf16.gmra.mrb[12].mxu0 %vm608_vm8, %v5682_v46 }
 0x153   : > { %1706 = vmatprep.mubr.bf16.mxu0 %v8124_v12 }
 0x15a   : > { %4952 = vmatmul.mubr.msk.bf16.vlgmr.msra.gmra.mrb[0].mxu0 %vm608_vm8, %v5683_v62 }
 0x15b   : > { %4973 = vmatpush1.bf16.msk.msra.mxu0 %vm4971_vm13, %v4972_v63  ;;  %1716 = vmatprep.mubr.bf16.mxu0 %v8124_v12 }
 0x15c   : > { %4976 = vmatprep.subr.msk.bf16.mxu0 %vm4968_vm10, %v4975_v9  ;;  %vm3347_vm10 = vcmask 1043456  }
 0x15f   : > { %4979 = vmatpush1.bf16.msk.msra.mxu0 %vm4971_vm13, %v4978_v13 }
 0x160   : > { %4998 = vmatprep.subr.msk.bf16.mxu0 %vm4996_vm0, %v4997_v15 }
 0x162   : > { %4953 = vmatmul.mubr.msk.bf16.gmra.mrb[4].mxu0 %vm608_vm8, %v5684_v52 }
 0x163   : > { %1726 = vmatprep.mubr.bf16.mxu0 %v8124_v12 }
 0x16a   : > { %4954 = vmatmul.mubr.msk.bf16.gmra.mrb[8].mxu0 %vm608_vm8, %v5685_v16 }
 0x16b   : > { %1736 = vmatprep.mubr.bf16.mxu0 %v8124_v12 }
 0x172   : > { %4955 = vmatmul.mubr.msk.bf16.gmra.mrb[12].mxu0 %vm608_vm8, %v5686_v17 }
 0x173   : > { %1881 = vmatprep.mubr.bf16.mxu0 %v8124_v12 }
 0x17a   : > { %4980 = vmatmul.mubr.msk.bf16.vlgmr.msra.gmra.mrb[0].mxu0 %vm608_vm8, %v5687_v6 }
 0x17b   : > { %5001 = vmatpush1.bf16.msk.msra.mxu0 %vm4999_vm6, %v5000_v31  ;;  %1891 = vmatprep.mubr.bf16.mxu0 %v8124_v12 }
 0x17c   : > { %5004 = vmatprep.subr.msk.bf16.mxu0 %vm4996_vm0, %v5003_v1  ;;  %v486_v53 = vpop.permute.xlu1 %485 }
 0x17f   : > { %5007 = vmatpush1.bf16.msk.msra.mxu0 %vm4999_vm6, %v5006_v34 }
 0x180   : > { %v496_v52 = vpop.permute.xlu1 %495 }
 0x182   : > { %4981 = vmatmul.mubr.msk.bf16.gmra.mrb[4].mxu0 %vm608_vm8, %v5688_v29  ;;  %v491_v59 = vpop.permute.xlu0 %490 }
 0x183   : > { %1901 = vmatprep.mubr.bf16.mxu0 %v8124_v12 }
 0x184   : > { %v506_v34 = vpop.permute.xlu1 %505 }
 0x186   : > { %v501_v24 = vpop.permute.xlu0 %500 }
 0x18a   : > { %4982 = vmatmul.mubr.msk.bf16.gmra.mrb[8].mxu0 %vm608_vm8, %v5689_v14 }
 0x18b   : > { %1911 = vmatprep.mubr.bf16.mxu0 %v8124_v12 }
 0x192   : > { %4983 = vmatmul.mubr.msk.bf16.gmra.mrb[12].mxu0 %vm608_vm8, %v5690_v33 }
 0x193   : > { %2056 = vmatprep.mubr.bf16.mxu0 %v8124_v12 }
 0x19a   : > { %5008 = vmatmul.mubr.msk.bf16.vlgmr.msra.gmra.mrb[0].mxu0 %vm608_vm8, %v5691_v35 }
 0x19b   : > { %2066 = vmatprep.mubr.bf16.mxu0 %v8124_v12 }
 0x1a2   : > { %5009 = vmatmul.mubr.msk.bf16.gmra.mrb[4].mxu0 %vm608_vm8, %v5692_v36 }
 0x1a3   : > { %2076 = vmatprep.mubr.bf16.mxu0 %v8124_v12 }
 0x1aa   : > { %5010 = vmatmul.mubr.msk.bf16.gmra.mrb[8].mxu0 %vm608_vm8, %v5693_v37 }
 0x1ab   : > { %2086 = vmatprep.mubr.bf16.mxu0 %v8124_v12 }
 0x1b2   : > { %5011 = vmatmul.mubr.msk.bf16.gmra.mrb[12].mxu0 %vm608_vm8, %v5694_v38  ;;  %v511_v38 = vpop.permute.xlu0 %510 }
 0x26d   : > { %v2058_v26 = vpop.f32.mrb[0].mxu0 }
 0x26e   : > { %v5236_v10 = vadd.f32 %v2058_v26, %v476_v39  ;;  %v2060_v22 = vpop.f32.mrb[1].mxu0 }
 0x26f   : > { %v5237_v3 = vadd.f32 %v2060_v22, %v476_v39  ;;  %v2062_v41 = vpop.f32.mrb[2].mxu0 }
 0x270   : > { %v2113_v43 = vmul.f32 0.2, %v5236_v10  ;;  %v5238_v44 = vadd.f32 %v2062_v41, %v481_v40  ;;  %v2064_v45 = vpop.f32.mrb[3].mxu0 }
 0x271   : > { %v2114_v46 = vmul.f32 0.2, %v5237_v3  ;;  %v5239_v47 = vadd.f32 %v2064_v45, %v481_v40 }
 0x272   : > { %v2115_v48 = vmul.f32 0.2, %v5238_v44  ;;  %v2129_v49 = vmax.f32 %v5236_v10, %v2113_v43 }
 0x273   : > { %v2116_v32 = vmul.f32 0.2, %v5239_v47  ;;  %v2130_v51 = vmax.f32 %v5237_v3, %v2114_v46 }
 0x274   : > { %v2131_v50 = vmax.f32 %v5238_v44, %v2115_v48 }
 0x275   : > { %v2132_v54 = vmax.f32 %v5239_v47, %v2116_v32  ;;  %v2068_v55 = vpop.f32.mrb[4].mxu0 }
 0x276   : > { %v5240_v56 = vadd.f32 %v2068_v55, %v486_v53  ;;  %v2070_v58 = vpop.f32.mrb[5].mxu0  ;;  %v6878_v30 = vpack.c.bf16 %v2131_v50, %v2129_v49 }
 0x277   : > { %v5241_v60 = vadd.f32 %v2070_v58, %v486_v53  ;;  %v2072_v61 = vpop.f32.mrb[6].mxu0  ;;  %v6880_v62 = vpack.c.bf16 %v2132_v54, %v2130_v51  ;;  %v5695_v53 = vld [vmem:[%s8105_s3] sm:$0xff]   ;;  %v2168_v54 = vpop.permute.xlu0 %2167 }
 0x278   : > { %8241 = vst [vmem:[#allocation2_spill] sm:$0xff] %v6878_v30  ;;  %v2117_v63 = vmul.f32 0.2, %v5240_v56  ;;  %v5242_v28 = vadd.f32 %v2072_v61, %v491_v59  ;;  %v2074_v8 = vpop.f32.mrb[7].mxu0 }
 0x279   : > { %8242 = vst [vmem:[#allocation3_spill] sm:$0xff] %v6880_v62  ;;  %v2118_v9 = vmul.f32 0.2, %v5241_v60  ;;  %v5243_v11 = vadd.f32 %v2074_v8, %v491_v59  ;;  %2220 = vmatprep.subr.bf16.mxu1 %v6880_v62  ;;  %v2173_v59 = vpop.permute.xlu1 %2172 }
 0x27a   : > { %v2119_v23 = vmul.f32 0.2, %v5242_v28  ;;  %2221 = vmatpush1.bf16.msra.mxu1 %v6878_v30  ;;  %v2133_v13 = vmax.f32 %v5240_v56, %v2117_v63 }
 0x27b   : > { %v2120_v42 = vmul.f32 0.2, %v5243_v11  ;;  %v2134_v16 = vmax.f32 %v5241_v60, %v2118_v9  ;;  %v5696_v9 = vld [vmem:[%s8105_s3 + $0x8] sm:$0xff]  }
 0x27c   : > { %v2135_v15 = vmax.f32 %v5242_v28, %v2119_v23  ;;  %v5697_v23 = vld [vmem:[%s8105_s3 + $0x10] sm:$0xff]  }
 0x27d   : > { %v2136_v17 = vmax.f32 %v5243_v11, %v2120_v42  ;;  %v2078_v18 = vpop.f32.mrb[8].mxu0 }
 0x27e   : > { %v5244_v19 = vadd.f32 %v2078_v18, %v496_v52  ;;  %v2080_v20 = vpop.f32.mrb[9].mxu0  ;;  %v6884_v21 = vpack.c.bf16 %v2135_v15, %v2133_v13 }
 0x27f   : > { %v5245_v25 = vadd.f32 %v2080_v20, %v496_v52  ;;  %v2082_v27 = vpop.f32.mrb[10].mxu0  ;;  %v6886_v2 = vpack.c.bf16 %v2136_v17, %v2134_v16 }
 0x280   : > { %8243 = vst [vmem:[#allocation4_spill] sm:$0xff] %v6884_v21  ;;  %v5246_v4 = vadd.f32 %v2082_v27, %v501_v24  ;;  %v2084_v5 = vpop.f32.mrb[11].mxu0  ;;  %v2121_v31 = vmul.f32 0.2, %v5244_v19 }
 0x281   : > { %8244 = vst [vmem:[#allocation5_spill] sm:$0xff] %v6886_v2  ;;  %v2122_v7 = vmul.f32 0.2, %v5245_v25  ;;  %v5247_v6 = vadd.f32 %v2084_v5, %v501_v24  ;;  %2222 = vmatprep.subr.bf16.mxu1 %v6886_v2 }
 0x282   : > { %v2123_v57 = vmul.f32 0.2, %v5246_v4  ;;  %2223 = vmatpush1.bf16.msra.mxu1 %v6884_v21  ;;  %v6896_v35 = vmax.f32 %v5244_v19, %v2121_v31 }
 0x283   : > { %v2124_v0 = vmul.f32 0.2, %v5247_v6  ;;  %v6892_v29 = vmax.f32 %v5245_v25, %v2122_v7 }
 0x284   : > { %v6890_v1 = vmax.f32 %v5246_v4, %v2123_v57  ;;  %8248 = vst [vmem:[#allocation9_spill] sm:$0xff] %v6896_v35 }
 0x285   : > { %8246 = vst [vmem:[#allocation7_spill] sm:$0xff] %v6892_v29  ;;  %v6894_v14 = vmax.f32 %v5247_v6, %v2124_v0  ;;  %v2088_v33 = vpop.f32.mrb[12].mxu0 }
 0x286   : > { %8245 = vst [vmem:[#allocation6_spill] sm:$0xff] %v6890_v1  ;;  %v5248_v36 = vadd.f32 %v2088_v33, %v506_v34  ;;  %v2090_v37 = vpop.f32.mrb[13].mxu0  ;;  %v6904_v3 = vpack.c.bf16 %v6890_v1, %v6896_v35 }
 0x287   : > { %8247 = vst [vmem:[#allocation8_spill] sm:$0xff] %v6894_v14  ;;  %v5249_v39 = vadd.f32 %v2090_v37, %v506_v34  ;;  %v2092_v26 = vpop.f32.mrb[14].mxu0  ;;  %v6900_v10 = vpack.c.bf16 %v6894_v14, %v6892_v29 }
 0x288   : > { %v5250_v22 = vadd.f32 %v2092_v26, %v511_v38  ;;  %v2094_v40 = vpop.f32.mrb[15].mxu0  ;;  %8250 = vst [vmem:[#allocation11_spill] sm:$0xff] %v6904_v3  ;;  %v2125_v44 = vmul.f32 0.2, %v5248_v36 }
 0x289   : > { %8249 = vst [vmem:[#allocation10_spill] sm:$0xff] %v6900_v10  ;;  %v2126_v41 = vmul.f32 0.2, %v5249_v39  ;;  %v5251_v43 = vadd.f32 %v2094_v40, %v511_v38  ;;  %2224 = vmatprep.subr.bf16.mxu1 %v6900_v10 }
 0x28a   : > { %v2127_v45 = vmul.f32 0.2, %v5250_v22  ;;  %2225 = vmatpush1.bf16.msra.mxu1 %v6904_v3  ;;  %v6914_v49 = vmax.f32 %v5248_v36, %v2125_v44 }
 0x28b   : > { %v2128_v46 = vmul.f32 0.2, %v5251_v43  ;;  %v6910_v48 = vmax.f32 %v5249_v39, %v2126_v41 }
 0x28c   : > { %v6908_v47 = vmax.f32 %v5250_v22, %v2127_v45  ;;  %8254 = vst [vmem:[#allocation15_spill] sm:$0xff] %v6914_v49 }
 0x28d   : > { %8252 = vst [vmem:[#allocation13_spill] sm:$0xff] %v6910_v48  ;;  %v6912_v32 = vmax.f32 %v5251_v43, %v2128_v46 }
 0x28e   : > { %8251 = vst [vmem:[#allocation12_spill] sm:$0xff] %v6908_v47  ;;  %v6922_v51 = vpack.c.bf16 %v6908_v47, %v6914_v49 }
 0x28f   : > { %8253 = vst [vmem:[#allocation14_spill] sm:$0xff] %v6912_v32  ;;  %v6918_v50 = vpack.c.bf16 %v6912_v32, %v6910_v48 }
 0x290   : > { %8256 = vst [vmem:[#allocation17_spill] sm:$0xff] %v6922_v51 }
 0x291   : > { %8255 = vst [vmem:[#allocation16_spill] sm:$0xff] %v6918_v50  ;;  %2226 = vmatprep.subr.bf16.mxu1 %v6918_v50 }
 0x292   : > { %2227 = vmatpush1.bf16.msra.mxu1 %v6922_v51 }
 0x295   : > { %5015 = vmatmul.mubr.msk.bf16.vlgmr.msra.gmra.mrb[0].mxu1 %vm2210_vm7, %v5695_v53 }
 0x296   : > { %2262 = vmatprep.mubr.bf16.mxu1 %v8124_v12 }
 0x29d   : > { %5016 = vmatmul.mubr.msk.bf16.gmra.mrb[4].mxu1 %vm2210_vm7, %v5696_v9 }
 0x29e   : > { %2272 = vmatprep.mubr.bf16.mxu1 %v8124_v12 }
 0x2a5   : > { %5017 = vmatmul.mubr.msk.bf16.gmra.mrb[8].mxu1 %vm2210_vm7, %v5697_v23 }
 0x368   : > { %v2254_v55 = vpop.f32.mrb[0].mxu1 }
 0x369   : > { %v2255_v56 = vadd.f32 %v2254_v55, %v2168_v54  ;;  %v2256_v58 = vpop.f32.mrb[1].mxu1 }
 0x36a   : > { %v2258_v60 = vpop.f32.mrb[2].mxu1  ;;  %v2257_v11 = vadd.f32 %v2256_v58, %v2168_v54 }
 0x36b   : > { %v2259_v61 = vadd.f32 %v2258_v60, %v2173_v59  ;;  %v2260_v63 = vpop.f32.mrb[3].mxu1  ;;  %2283 = vxpose.xlu0.b32.start.end [1/1] (short) %v2255_v56, 128 }
 0x36c   : > { %v2261_v28 = vadd.f32 %v2260_v63, %v2173_v59 }
 0x36e   : > { %v5577_v8 = vpack.i.bf16 %v2261_v28, %v2259_v61 }
 0x370   : > { %5578 = vxpose.xlu1.b32.start.end [1/1] (short) %v5577_v8, 128 }
 0x3a8   : > { %2315 = vxpose.xlu0.b32.start.end [1/1] (short) %v2257_v11, 128 }
 0x3eb   : > { %v2299_v42 = vpop.trf.xlu0 }
 0x3ef   : > { %v2300_v13 = vpop.trf.xlu0 }
 0x3f0   : > { %v5579_v15 = vpop.trf.xlu1  ;;  %v6940_v52 = vpack.c.bf16 %v2300_v13, %v2299_v42 }
 0x3f1   : > { %v5583_v16 = vunpack.i.h.bf16 %v5579_v15  ;;  %v5580_v18 = vunpack.i.l.bf16 %v5579_v15 }
 0x3f2   : > { %5195 = vmatprep.mubr.msk.bf16.mxu1 %vm2447_vm1, %v6940_v52 }
 0x3f3   : > { %v6946_v5 = vpop.trf.xlu0 }
 0x3f4   : > { %v5584_v17 = vpop.trf.xlu1 }
 0x3f5   : > { %v5588_v19 = vunpack.i.h.bf16 %v5584_v17  ;;  %v5585_v20 = vunpack.i.l.bf16 %v5584_v17 }
 0x3f7   : > { %v2435_v24 = vpack.c.bf16 %v5588_v19, %v5583_v16  ;;  %v2427_v25 = vpack.c.bf16 %v5585_v20, %v5580_v18  ;;  %v6948_v37 = vpop.trf.xlu0 }
 0x3f8   : > { %v5589_v27 = vpop.trf.xlu1 }
 0x3f9   : > { %5388 = vmatprep.subr.msk.bf16.mxu1 %vm2447_vm1, %v2435_v24  ;;  %v2497_v4 = vsel %vm2447_vm1, %v2427_v25, 0  ;;  %v5593_v7 = vunpack.i.h.bf16 %v5589_v27  ;;  %v5590_v31 = vunpack.i.l.bf16 %v5589_v27 }
 0x3fa   : > { %5180 = vmatpush3.bf16.xpose.msra.mxu1 %v2497_v4 }
 0x3fb   : > { %v6952_v43 = vpop.trf.xlu0 }
 0x3fc   : > { %v5594_v6 = vpop.trf.xlu1 }
 0x3fd   : > { %v5598_v57 = vunpack.i.h.bf16 %v5594_v6  ;;  %v5595_v0 = vunpack.i.l.bf16 %v5594_v6 }
 0x3ff   : > { %v2436_v34 = vpack.c.bf16 %v5598_v57, %v5593_v7  ;;  %v2428_v33 = vpack.c.bf16 %v5595_v0, %v5590_v31  ;;  %v6956_v58 = vpop.trf.xlu0 }
 0x400   : > { %v5599_v36 = vpop.trf.xlu1 }
 0x401   : > { %5389 = vmatprep.subr.msk.bf16.mxu1 %vm2447_vm1, %v2436_v34  ;;  %v2500_v38 = vsel %vm2447_vm1, %v2428_v33, 0  ;;  %v5603_v39 = vunpack.i.h.bf16 %v5599_v36  ;;  %v5600_v22 = vunpack.i.l.bf16 %v5599_v36 }
 0x402   : > { %5182 = vmatpush3.bf16.xpose.msra.mxu1 %v2500_v38 }
 0x403   : > { %v2305_v9 = vpop.trf.xlu0 }
 0x404   : > { %v5604_v26 = vpop.trf.xlu1 }
 0x405   : > { %v5608_v40 = vunpack.i.h.bf16 %v5604_v26  ;;  %v5605_v41 = vunpack.i.l.bf16 %v5604_v26 }
 0x407   : > { %v2437_v44 = vpack.c.bf16 %v5608_v40, %v5603_v39  ;;  %v2429_v45 = vpack.c.bf16 %v5605_v41, %v5600_v22  ;;  %v2306_v19 = vpop.trf.xlu0 }
 0x408   : > { %v5609_v46 = vpop.trf.xlu1 }
 0x409   : > { %5390 = vmatprep.subr.msk.bf16.mxu1 %vm2447_vm1, %v2437_v44  ;;  %v2503_v53 = vsel %vm2447_vm1, %v2429_v45, 0  ;;  %v5613_v54 = vunpack.i.h.bf16 %v5609_v46  ;;  %v5610_v56 = vunpack.i.l.bf16 %v5609_v46 }
 0x40a   : > { %5184 = vmatpush3.bf16.xpose.msra.mxu1 %v2503_v53 }
 0x40b   : > { %v2307_v6 = vpop.trf.xlu0 }
 0x40c   : > { %v5614_v55 = vpop.trf.xlu1 }
 0x40d   : > { %v5618_v59 = vunpack.i.h.bf16 %v5614_v55  ;;  %v5615_v60 = vunpack.i.l.bf16 %v5614_v55 }
 0x40f   : > { %v2438_v61 = vpack.c.bf16 %v5618_v59, %v5613_v54  ;;  %v2430_v63 = vpack.c.bf16 %v5615_v60, %v5610_v56  ;;  %v2308_v39 = vpop.trf.xlu0 }
 0x410   : > { %v5619_v28 = vpop.trf.xlu1 }
 0x411   : > { %5391 = vmatprep.subr.msk.bf16.mxu1 %vm2447_vm1, %v2438_v61  ;;  %v2506_v8 = vsel %vm2447_vm1, %v2430_v63, 0  ;;  %v5623_v11 = vunpack.i.h.bf16 %v5619_v28  ;;  %v5620_v42 = vunpack.i.l.bf16 %v5619_v28 }
 0x412   : > { %5186 = vmatpush3.bf16.xpose.msra.mxu1 %v2506_v8 }
 0x413   : > { %v2309_v46 = vpop.trf.xlu0 }
 0x414   : > { %v5624_v23 = vpop.trf.xlu1 }
 0x415   : > { %v5628_v13 = vunpack.i.h.bf16 %v5624_v23  ;;  %v5625_v15 = vunpack.i.l.bf16 %v5624_v23 }
 0x417   : > { %v2439_v16 = vpack.c.bf16 %v5628_v13, %v5623_v11  ;;  %v2431_v17 = vpack.c.bf16 %v5625_v15, %v5620_v42  ;;  %v2310_v63 = vpop.trf.xlu0  ;;  %v2348_v11 = vpack.c.bf16 %v6948_v37, %v6946_v5  ;;  %v2349_v42 = vpack.c.bf16 %v6956_v58, %v6952_v43 }
 0x418   : > { %v5629_v18 = vpop.trf.xlu1  ;;  %v2350_v15 = vpack.c.bf16 %v2306_v19, %v2305_v9  ;;  %v2351_v37 = vpack.c.bf16 %v2308_v39, %v2307_v6 }
 0x419   : > { %5392 = vmatprep.subr.msk.bf16.mxu1 %vm2447_vm1, %v2439_v16  ;;  %v2509_v20 = vsel %vm2447_vm1, %v2431_v17, 0  ;;  %v5633_v24 = vunpack.i.h.bf16 %v5629_v18  ;;  %v5630_v25 = vunpack.i.l.bf16 %v5629_v18  ;;  %v2352_v17 = vpack.c.bf16 %v2310_v63, %v2309_v46 }
 0x41a   : > { %5188 = vmatpush3.bf16.xpose.msra.mxu1 %v2509_v20 }
 0x41b   : > { %v2311_v8 = vpop.trf.xlu0 }
 0x41c   : > { %v5634_v27 = vpop.trf.xlu1 }
 0x41d   : > { %v5638_v4 = vunpack.i.h.bf16 %v5634_v27  ;;  %v5635_v7 = vunpack.i.l.bf16 %v5634_v27 }
 0x41f   : > { %v2440_v31 = vpack.c.bf16 %v5638_v4, %v5633_v24  ;;  %v2432_v57 = vpack.c.bf16 %v5635_v7, %v5630_v25  ;;  %v2312_v23 = vpop.trf.xlu0  ;;  %v6990_v7 = vpop.f32.mrb[4].mxu1 }
 0x420   : > { %v5639_v0 = vpop.trf.xlu1  ;;  %v2353_v58 = vpack.c.bf16 %v2312_v23, %v2311_v8  ;;  %8257 = vst [vmem:[#allocation18_spill] sm:$0xff] %v6990_v7  ;;  %v6993_v6 = vpop.f32.mrb[5].mxu1 }
 0x421   : > { %5393 = vmatprep.subr.msk.bf16.mxu1 %vm2447_vm1, %v2440_v31  ;;  %v2512_v34 = vsel %vm2447_vm1, %v2432_v57, 0  ;;  %v5643_v33 = vunpack.i.h.bf16 %v5639_v0  ;;  %v5640_v36 = vunpack.i.l.bf16 %v5639_v0  ;;  %8258 = vst [vmem:[#allocation19_spill] sm:$0xff] %v6993_v6  ;;  %v6995_v31 = vpop.f32.mrb[6].mxu1 }
 0x422   : > { %5190 = vmatpush3.bf16.xpose.msra.mxu1 %v2512_v34  ;;  %8259 = vst [vmem:[#allocation20_spill] sm:$0xff] %v6995_v31  ;;  %v6997_v57 = vpop.f32.mrb[7].mxu1 }
 0x423   : > { %v2313_v13 = vpop.trf.xlu0  ;;  %8260 = vst [vmem:[#allocation21_spill] sm:$0xff] %v6997_v57 }
 0x424   : > { %v5644_v38 = vpop.trf.xlu1 }
 0x425   : > { %v5648_v26 = vunpack.i.h.bf16 %v5644_v38  ;;  %v5645_v22 = vunpack.i.l.bf16 %v5644_v38 }
 0x427   : > { %v2441_v40 = vpack.c.bf16 %v5648_v26, %v5643_v33  ;;  %v2433_v41 = vpack.c.bf16 %v5645_v22, %v5640_v36  ;;  %v2314_v16 = vpop.trf.xlu0  ;;  %v7000_v33 = vpop.f32.mrb[8].mxu1 }
 0x428   : > { %v5649_v44 = vpop.trf.xlu1  ;;  %v2354_v19 = vpack.c.bf16 %v2314_v16, %v2313_v13  ;;  %8261 = vst [vmem:[#allocation22_spill] sm:$0xff] %v7000_v33  ;;  %v7003_v36 = vpop.f32.mrb[9].mxu1 }
 0x429   : > { %5394 = vmatprep.subr.msk.bf16.mxu1 %vm2447_vm1, %v2441_v40  ;;  %v2515_v45 = vsel %vm2447_vm1, %v2433_v41, 0  ;;  %v5653_v53 = vunpack.i.h.bf16 %v5649_v44  ;;  %v5650_v54 = vunpack.i.l.bf16 %v5649_v44  ;;  %8262 = vst [vmem:[#allocation23_spill] sm:$0xff] %v7003_v36  ;;  %v7005_v39 = vpop.f32.mrb[10].mxu1 }
 0x42a   : > { %5192 = vmatpush3.bf16.xpose.msra.mxu1 %v2515_v45  ;;  %8263 = vst [vmem:[#allocation24_spill] sm:$0xff] %v7005_v39  ;;  %v7007_v26 = vpop.f32.mrb[11].mxu1 }
 0x42b   : > { %v2331_v5 = vpop.trf.xlu0  ;;  %8264 = vst [vmem:[#allocation25_spill] sm:$0xff] %v7007_v26 }
 0x42c   : > { %v5654_v55 = vpop.trf.xlu1 }
 0x42d   : > { %v5658_v56 = vunpack.i.h.bf16 %v5654_v55  ;;  %v5655_v59 = vunpack.i.l.bf16 %v5654_v55 }
 0x42f   : > { %v2442_v60 = vpack.c.bf16 %v5658_v56, %v5653_v53  ;;  %v2434_v61 = vpack.c.bf16 %v5655_v59, %v5650_v54 }
 0x431   : > { %5395 = vmatprep.subr.msk.bf16.mxu1 %vm2447_vm1, %v2442_v60  ;;  %v2518_v28 = vsel %vm2447_vm1, %v2434_v61, 0 }
 0x432   : > { %5194 = vmatpush3.bf16.xpose.msra.mxu1 %v2518_v28 }
 0x439   : > { %5196 = vmatmul.mubr.msk.bf16.vlgmr.msra.gmra.mrb[12].mxu1 %vm2447_vm1, %v6940_v52  ;;  %v2332_v52 = vpop.trf.xlu0 }
 0x43a   : > { %5197 = vmatprep.mubr.msk.bf16.mxu1 %vm2447_vm1, %v2348_v11  ;;  %v2355_v24 = vpack.c.bf16 %v2332_v52, %v2331_v5 }
 0x43d   : > { %v2333_v43 = vpop.trf.xlu0 }
 0x441   : > { %5198 = vmatmul.mubr.msk.bf16.gmra.mrb[16].mxu1 %vm2447_vm1, %v2348_v11  ;;  %v2334_v9 = vpop.trf.xlu0 }
 0x442   : > { %5199 = vmatprep.mubr.msk.bf16.mxu1 %vm2447_vm1, %v2349_v42  ;;  %v2356_v27 = vpack.c.bf16 %v2334_v9, %v2333_v43 }
 0x445   : > { %v2335_v18 = vpop.trf.xlu0 }
 0x449   : > { %5200 = vmatmul.mubr.msk.bf16.gmra.mrb[20].mxu1 %vm2447_vm1, %v2349_v42  ;;  %v2336_v20 = vpop.trf.xlu0 }
 0x44a   : > { %5201 = vmatprep.mubr.msk.bf16.mxu1 %vm2447_vm1, %v2350_v15  ;;  %v2357_v34 = vpack.c.bf16 %v2336_v20, %v2335_v18 }
 0x44d   : > { %v2337_v25 = vpop.trf.xlu0 }
 0x451   : > { %5202 = vmatmul.mubr.msk.bf16.gmra.mrb[24].mxu1 %vm2447_vm1, %v2350_v15  ;;  %v2338_v4 = vpop.trf.xlu0 }
 0x452   : > { %5203 = vmatprep.mubr.msk.bf16.mxu1 %vm2447_vm1, %v2351_v37  ;;  %v2358_v22 = vpack.c.bf16 %v2338_v4, %v2337_v25 }
 0x455   : > { %v2339_v0 = vpop.trf.xlu0 }
 0x459   : > { %5204 = vmatmul.mubr.msk.bf16.gmra.mrb[28].mxu1 %vm2447_vm1, %v2351_v37  ;;  %v2340_v38 = vpop.trf.xlu0 }
 0x45a   : > { %5205 = vmatprep.mubr.msk.bf16.mxu1 %vm2447_vm1, %v2352_v17  ;;  %v2359_v44 = vpack.c.bf16 %v2340_v38, %v2339_v0 }
 0x45d   : > { %v2341_v40 = vpop.trf.xlu0 }
 0x461   : > { %5206 = vmatmul.mubr.msk.bf16.gmra.mrb[32].mxu1 %vm2447_vm1, %v2352_v17  ;;  %v2342_v41 = vpop.trf.xlu0 }
 0x462   : > { %5207 = vmatprep.mubr.msk.bf16.mxu1 %vm2447_vm1, %v2353_v58  ;;  %v2360_v46 = vpack.c.bf16 %v2342_v41, %v2341_v40 }
 0x465   : > { %v2343_v45 = vpop.trf.xlu0 }
 0x469   : > { %5208 = vmatmul.mubr.msk.bf16.gmra.mrb[36].mxu1 %vm2447_vm1, %v2353_v58  ;;  %v2344_v53 = vpop.trf.xlu0 }
 0x46a   : > { %5209 = vmatprep.mubr.msk.bf16.mxu1 %vm2447_vm1, %v2354_v19  ;;  %v2361_v55 = vpack.c.bf16 %v2344_v53, %v2343_v45 }
 0x46d   : > { %v2345_v54 = vpop.trf.xlu0 }
 0x471   : > { %5210 = vmatmul.mubr.msk.bf16.gmra.mrb[40].mxu1 %vm2447_vm1, %v2354_v19  ;;  %v2346_v56 = vpop.trf.xlu0 }
 0x472   : > { %5211 = vmatprep.mubr.msk.bf16.mxu1 %vm2447_vm1, %v2355_v24  ;;  %v2362_v59 = vpack.c.bf16 %v2346_v56, %v2345_v54 }
 0x479   : > { %5212 = vmatmul.mubr.msk.bf16.gmra.mrb[44].mxu1 %vm2447_vm1, %v2355_v24 }
 0x47a   : > { %5213 = vmatprep.mubr.msk.bf16.mxu1 %vm2447_vm1, %v2356_v27 }
 0x481   : > { %5214 = vmatmul.mubr.msk.bf16.gmra.mrb[48].mxu1 %vm2447_vm1, %v2356_v27 }
 0x482   : > { %5215 = vmatprep.mubr.msk.bf16.mxu1 %vm2447_vm1, %v2357_v34 }
 0x489   : > { %5216 = vmatmul.mubr.msk.bf16.gmra.mrb[52].mxu1 %vm2447_vm1, %v2357_v34 }
 0x48a   : > { %5217 = vmatprep.mubr.msk.bf16.mxu1 %vm2447_vm1, %v2358_v22 }
 0x491   : > { %5218 = vmatmul.mubr.msk.bf16.gmra.mrb[56].mxu1 %vm2447_vm1, %v2358_v22 }
 0x492   : > { %5219 = vmatprep.mubr.msk.bf16.mxu1 %vm2447_vm1, %v2359_v44 }
 0x499   : > { %5220 = vmatmul.mubr.msk.bf16.gmra.mrb[60].mxu1 %vm2447_vm1, %v2359_v44 }
 0x49a   : > { %5221 = vmatprep.mubr.msk.bf16.mxu1 %vm2447_vm1, %v2360_v46 }
 0x4a1   : > { %5222 = vmatmul.mubr.msk.bf16.gmra.mrb[64].mxu1 %vm2447_vm1, %v2360_v46 }
 0x4a2   : > { %5223 = vmatprep.mubr.msk.bf16.mxu1 %vm2447_vm1, %v2361_v55 }
 0x4a9   : > { %5224 = vmatmul.mubr.msk.bf16.gmra.mrb[68].mxu1 %vm2447_vm1, %v2361_v55 }
 0x4aa   : > { %5225 = vmatprep.mubr.msk.bf16.mxu1 %vm2447_vm1, %v2362_v59 }
 0x4b1   : > { %5226 = vmatmul.mubr.msk.bf16.gmra.mrb[72].mxu1 %vm2447_vm1, %v2362_v59 }
 0x50c   : > { %v7020_v60 = vpop.f32.mrb[12].mxu1 }
 0x50d   : > { %v7022_v61 = vpop.f32.mrb[13].mxu1 }
 0x50e   : > { %v7024_v63 = vpop.f32.mrb[14].mxu1  ;;  %v2737_v28 = vmax.f32 %v7020_v60, %v7022_v61 }
 0x50f   : > { %v7028_v8 = vpop.f32.mrb[15].mxu1 }
 0x510   : > { %v2740_v11 = vmax.f32 %v7024_v63, %v7028_v8  ;;  %2738 = vmax.xlane.f32.xlu1 %v2737_v28 }
 0x512   : > { %2741 = vmax.xlane.f32.xlu0 %v2740_v11 }
 0x514   : > { %v7032_v23 = vpop.f32.mrb[16].mxu1 }
 0x515   : > { %v7034_v42 = vpop.f32.mrb[17].mxu1 }
 0x516   : > { %v2743_v13 = vmax.f32 %v7032_v23, %v7034_v42  ;;  %v7038_v15 = vpop.f32.mrb[18].mxu1 }
 0x517   : > { %v7040_v16 = vpop.f32.mrb[19].mxu1 }
 0x518   : > { %2744 = vmax.xlane.f32.xlu1 %v2743_v13  ;;  %v2746_v5 = vmax.f32 %v7038_v15, %v7040_v16 }
 0x51c   : > { %2747 = vmax.xlane.f32.xlu1 %v2746_v5  ;;  %v7044_v37 = vpop.f32.mrb[20].mxu1 }
 0x51d   : > { %v7046_v52 = vpop.f32.mrb[21].mxu1 }
 0x51e   : > { %v2749_v17 = vmax.f32 %v7044_v37, %v7046_v52  ;;  %v7050_v43 = vpop.f32.mrb[22].mxu1 }
 0x51f   : > { %v7052_v58 = vpop.f32.mrb[23].mxu1 }
 0x520   : > { %2750 = vmax.xlane.f32.xlu1 %v2749_v17  ;;  %v2752_v9 = vmax.f32 %v7050_v43, %v7052_v58 }
 0x524   : > { %2753 = vmax.xlane.f32.xlu1 %v2752_v9  ;;  %v7056_v18 = vpop.f32.mrb[24].mxu1 }
 0x525   : > { %v7058_v19 = vpop.f32.mrb[25].mxu1 }
 0x526   : > { %v2755_v20 = vmax.f32 %v7056_v18, %v7058_v19  ;;  %v7062_v24 = vpop.f32.mrb[26].mxu1 }
 0x527   : > { %v7064_v25 = vpop.f32.mrb[27].mxu1 }
 0x528   : > { %2756 = vmax.xlane.f32.xlu1 %v2755_v20  ;;  %v2758_v27 = vmax.f32 %v7062_v24, %v7064_v25 }
 0x52c   : > { %2759 = vmax.xlane.f32.xlu1 %v2758_v27  ;;  %v7068_v4 = vpop.f32.mrb[28].mxu1 }
 0x52d   : > { %v7070_v0 = vpop.f32.mrb[29].mxu1 }
 0x52e   : > { %v2761_v34 = vmax.f32 %v7068_v4, %v7070_v0  ;;  %v7074_v38 = vpop.f32.mrb[30].mxu1 }
 0x52f   : > { %v7076_v22 = vpop.f32.mrb[31].mxu1 }
 0x530   : > { %2762 = vmax.xlane.f32.xlu1 %v2761_v34  ;;  %v2764_v40 = vmax.f32 %v7074_v38, %v7076_v22 }
 0x534   : > { %2765 = vmax.xlane.f32.xlu1 %v2764_v40  ;;  %v7080_v41 = vpop.f32.mrb[32].mxu1 }
 0x535   : > { %v7082_v44 = vpop.f32.mrb[33].mxu1 }
 0x536   : > { %v2767_v45 = vmax.f32 %v7080_v41, %v7082_v44  ;;  %v7086_v46 = vpop.f32.mrb[34].mxu1 }
 0x537   : > { %v7088_v53 = vpop.f32.mrb[35].mxu1 }
 0x538   : > { %2768 = vmax.xlane.f32.xlu1 %v2767_v45  ;;  %v2770_v54 = vmax.f32 %v7086_v46, %v7088_v53 }
 0x53c   : > { %2771 = vmax.xlane.f32.xlu1 %v2770_v54  ;;  %v7092_v55 = vpop.f32.mrb[36].mxu1 }
 0x53d   : > { %v7094_v56 = vpop.f32.mrb[37].mxu1 }
 0x53e   : > { %v2773_v59 = vmax.f32 %v7092_v55, %v7094_v56  ;;  %v7098_v28 = vpop.f32.mrb[38].mxu1 }
 0x53f   : > { %v7100_v11 = vpop.f32.mrb[39].mxu1 }
 0x540   : > { %2774 = vmax.xlane.f32.xlu1 %v2773_v59  ;;  %v2776_v13 = vmax.f32 %v7098_v28, %v7100_v11 }
 0x544   : > { %2777 = vmax.xlane.f32.xlu1 %v2776_v13  ;;  %v7104_v5 = vpop.f32.mrb[40].mxu1 }
 0x545   : > { %v7106_v17 = vpop.f32.mrb[41].mxu1 }
 0x546   : > { %v2779_v9 = vmax.f32 %v7104_v5, %v7106_v17  ;;  %v7110_v20 = vpop.f32.mrb[42].mxu1 }
 0x547   : > { %v7112_v27 = vpop.f32.mrb[43].mxu1 }
 0x548   : > { %2780 = vmax.xlane.f32.xlu1 %v2779_v9  ;;  %v2782_v34 = vmax.f32 %v7110_v20, %v7112_v27 }
 0x54c   : > { %2783 = vmax.xlane.f32.xlu1 %v2782_v34  ;;  %v7116_v40 = vpop.f32.mrb[44].mxu1 }
 0x54d   : > { %v7118_v45 = vpop.f32.mrb[45].mxu1 }
 0x54e   : > { %v2785_v54 = vmax.f32 %v7116_v40, %v7118_v45  ;;  %v7122_v59 = vpop.f32.mrb[46].mxu1 }
 0x54f   : > { %v7124_v13 = vpop.f32.mrb[47].mxu1 }
 0x550   : > { %v2788_v12 = vmax.f32 %v7122_v59, %v7124_v13  ;;  %2786 = vmax.xlane.f32.xlu1 %v2785_v54 }
 0x552   : > { %2789 = vmax.xlane.f32.xlu0 %v2788_v12 }
 0x554   : > { %v7128_v9 = vpop.f32.mrb[48].mxu1 }
 0x555   : > { %v7130_v32 = vpop.f32.mrb[49].mxu1 }
 0x556   : > { %8265 = vst [vmem:[#allocation26_spill] sm:$0xff] %v7130_v32  ;;  %v2791_v34 = vmax.f32 %v7128_v9, %v7130_v32  ;;  %v7134_v47 = vpop.f32.mrb[50].mxu1 }
 0x557   : > { %8266 = vst [vmem:[#allocation27_spill] sm:$0xff] %v7134_v47  ;;  %v7136_v48 = vpop.f32.mrb[51].mxu1 }
 0x558   : > { %8267 = vst [vmem:[#allocation28_spill] sm:$0xff] %v7136_v48  ;;  %v2794_v49 = vmax.f32 %v7134_v47, %v7136_v48  ;;  %2792 = vmax.xlane.f32.xlu1 %v2791_v34 }
 0x55a   : > { %2795 = vmax.xlane.f32.xlu0 %v2794_v49 }
 0x55c   : > { %v7140_v14 = vpop.f32.mrb[52].mxu1 }
 0x55d   : > { %8268 = vst [vmem:[#allocation29_spill] sm:$0xff] %v7140_v14  ;;  %v7142_v54 = vpop.f32.mrb[53].mxu1 }
 0x55e   : > { %8269 = vst [vmem:[#allocation30_spill] sm:$0xff] %v7142_v54  ;;  %v2797_v12 = vmax.f32 %v7140_v14, %v7142_v54  ;;  %v7146_v1 = vpop.f32.mrb[54].mxu1 }
 0x55f   : > { %8270 = vst [vmem:[#allocation31_spill] sm:$0xff] %v7146_v1  ;;  %v7148_v29 = vpop.f32.mrb[55].mxu1 }
 0x560   : > { %8271 = vst [vmem:[#allocation32_spill] sm:$0xff] %v7148_v29  ;;  %v2800_v35 = vmax.f32 %v7146_v1, %v7148_v29  ;;  %2798 = vmax.xlane.f32.xlu1 %v2797_v12 }
 0x562   : > { %2801 = vmax.xlane.f32.xlu0 %v2800_v35 }
 0x564   : > { %v7152_v51 = vpop.f32.mrb[56].mxu1 }
 0x565   : > { %8272 = vst [vmem:[#allocation33_spill] sm:$0xff] %v7152_v51  ;;  %v7154_v34 = vpop.f32.mrb[57].mxu1 }
 0x566   : > { %8273 = vst [vmem:[#allocation34_spill] sm:$0xff] %v7154_v34  ;;  %v2803_v49 = vmax.f32 %v7152_v51, %v7154_v34  ;;  %v7158_v50 = vpop.f32.mrb[58].mxu1 }
 0x567   : > { %8274 = vst [vmem:[#allocation35_spill] sm:$0xff] %v7158_v50  ;;  %v7160_v3 = vpop.f32.mrb[59].mxu1 }
 0x568   : > { %8275 = vst [vmem:[#allocation36_spill] sm:$0xff] %v7160_v3  ;;  %v2806_v10 = vmax.f32 %v7158_v50, %v7160_v3  ;;  %2804 = vmax.xlane.f32.xlu1 %v2803_v49 }
 0x56a   : > { %2807 = vmax.xlane.f32.xlu0 %v2806_v10 }
 0x56c   : > { %v7164_v21 = vpop.f32.mrb[60].mxu1 }
 0x56d   : > { %8276 = vst [vmem:[#allocation37_spill] sm:$0xff] %v7164_v21  ;;  %v7166_v12 = vpop.f32.mrb[61].mxu1 }
 0x56e   : > { %8277 = vst [vmem:[#allocation38_spill] sm:$0xff] %v7166_v12  ;;  %v2809_v35 = vmax.f32 %v7164_v21, %v7166_v12  ;;  %v7170_v2 = vpop.f32.mrb[62].mxu1 }
 0x56f   : > { %v7172_v30 = vpop.f32.mrb[63].mxu1 }
 0x570   : > { %2810 = vmax.xlane.f32.xlu1 %v2809_v35 }
 0x574   : > { %v7176_v26 = vpop.f32.mrb[64].mxu1 }
 0x575   : > { %v7178_v39 = vpop.f32.mrb[65].mxu1 }
 0x576   : > { %v7182_v49 = vpop.f32.mrb[66].mxu1 }
 0x577   : > { %v7184_v36 = vpop.f32.mrb[67].mxu1 }
 0x57c   : > { %v7188_v57 = vpop.f32.mrb[68].mxu1 }
 0x57d   : > { %v7190_v35 = vpop.f32.mrb[69].mxu1 }
 0x57e   : > { %v7194_v31 = vpop.f32.mrb[70].mxu1 }
 0x57f   : > { %v7196_v6 = vpop.f32.mrb[71].mxu1 }
 0x584   : > { %v7200_v7 = vpop.f32.mrb[72].mxu1 }
 0x585   : > { %v7202_v12 = vpop.f32.mrb[73].mxu1 }
 0x586   : > { %v7206_v21 = vpop.f32.mrb[74].mxu1 }
 0x587   : > { %v7208_v3 = vpop.f32.mrb[75].mxu1 }
 0x59d   : > { %v2739_v50 = vpop.xlane.xlu1 %2738 }
 0x59e   : > { %v2833_v34 = vsub.f32 %v7020_v60, %v2739_v50  ;;  %v2834_v51 = vsub.f32 %v7022_v61, %v2739_v50 }
 0x59f   : > { %v2742_v10 = vpop.xlane.xlu0 %2741 }
 0x5a0   : > { %v2897_v29 = vmul.f32 1.442695, %v2833_v34  ;;  %v2899_v1 = vmul.f32 1.442695, %v2834_v51  ;;  %v2835_v54 = vsub.f32 %v7024_v63, %v2742_v10  ;;  %v2836_v14 = vsub.f32 %v7028_v8, %v2742_v10 }
 0x5a2   : > { %5704 = vpow2.f32 %v2897_v29  ;;  %v2901_v33 = vmul.f32 1.442695, %v2835_v54  ;;  %v2903_v48 = vmul.f32 1.442695, %v2836_v14 }
 0x5a3   : > { %5706 = vpow2.f32 %v2899_v1 }
 0x5a4   : > { %5708 = vpow2.f32 %v2901_v33 }
 0x5a5   : > { %5710 = vpow2.f32 %v2903_v48  ;;  %v2745_v47 = vpop.xlane.xlu1 %2744 }
 0x5a6   : > { %v2837_v62 = vsub.f32 %v7032_v23, %v2745_v47  ;;  %v2838_v60 = vsub.f32 %v7034_v42, %v2745_v47 }
 0x5a8   : > { %v2905_v32 = vmul.f32 1.442695, %v2837_v62  ;;  %v2907_v50 = vmul.f32 1.442695, %v2838_v60 }
 0x5a9   : > { %v2748_v61 = vpop.xlane.xlu1 %2747 }
 0x5aa   : > { %5712 = vpow2.f32 %v2905_v32  ;;  %v2839_v51 = vsub.f32 %v7038_v15, %v2748_v61  ;;  %v2840_v63 = vsub.f32 %v7040_v16, %v2748_v61 }
 0x5ab   : > { %5714 = vpow2.f32 %v2907_v50  ;;  %v8278_v50 = vmax.f32 %v7176_v26, %v7178_v39 }
 0x5ac   : > { %v7220_v29 = vpop.eup %5704  ;;  %v2909_v14 = vmul.f32 1.442695, %v2839_v51  ;;  %v2911_v1 = vmul.f32 1.442695, %v2840_v63 }
 0x5ad   : > { %v7222_v33 = vpop.eup %5706  ;;  %v2751_v48 = vpop.xlane.xlu1 %2750 }
 0x5ae   : > { %v7224_v8 = vpop.eup %5708  ;;  %5716 = vpow2.f32 %v2909_v14  ;;  %v2841_v62 = vsub.f32 %v7044_v37, %v2751_v48  ;;  %v2842_v47 = vsub.f32 %v7046_v52, %v2751_v48  ;;  %v3025_v32 = vadd.f32 %v7222_v33, %v7220_v29 }
 0x5af   : > { %v7230_v23 = vpop.eup %5710  ;;  %5718 = vpow2.f32 %v2911_v1 }
 0x5b0   : > { %v2913_v42 = vmul.f32 1.442695, %v2841_v62  ;;  %v2915_v15 = vmul.f32 1.442695, %v2842_v47  ;;  %3026 = vadd.xlane.f32.xlu1 %v3025_v32  ;;  %v3028_v16 = vadd.f32 %v7230_v23, %v7224_v8 }
 0x5b1   : > { %v2754_v54 = vpop.xlane.xlu1 %2753 }
 0x5b2   : > { %5720 = vpow2.f32 %v2913_v42  ;;  %v2843_v34 = vsub.f32 %v7050_v43, %v2754_v54  ;;  %v2844_v37 = vsub.f32 %v7052_v58, %v2754_v54  ;;  %3029 = vadd.xlane.f32.xlu0 %v3028_v16  ;;  %v8279_v58 = vmax.f32 %v7170_v2, %v7172_v30 }
 0x5b3   : > { %5722 = vpow2.f32 %v2915_v15 }
 0x5b4   : > { %v7236_v52 = vpop.eup %5712  ;;  %v2917_v10 = vmul.f32 1.442695, %v2843_v34  ;;  %v2919_v60 = vmul.f32 1.442695, %v2844_v37  ;;  %2816 = vmax.xlane.f32.xlu1 %v8278_v50  ;;  %v8280_v34 = vmax.f32 %v7188_v57, %v7190_v35 }
 0x5b5   : > { %v7241_v61 = vpop.eup %5714  ;;  %v2757_v51 = vpop.xlane.xlu1 %2756 }
 0x5b6   : > { %5724 = vpow2.f32 %v2917_v10  ;;  %v2845_v63 = vsub.f32 %v7056_v18, %v2757_v51  ;;  %v2846_v43 = vsub.f32 %v7058_v19, %v2757_v51  ;;  %2813 = vmax.xlane.f32.xlu0 %v8279_v58  ;;  %v3031_v14 = vadd.f32 %v7241_v61, %v7236_v52 }
 0x5b7   : > { %5726 = vpow2.f32 %v2919_v60 }
 0x5b8   : > { %v7250_v1 = vpop.eup %5716  ;;  %v2921_v48 = vmul.f32 1.442695, %v2845_v63  ;;  %v2923_v62 = vmul.f32 1.442695, %v2846_v43  ;;  %3032 = vadd.xlane.f32.xlu1 %v3031_v14  ;;  %v8281_v43 = vmax.f32 %v7182_v49, %v7184_v36 }
 0x5b9   : > { %v7252_v47 = vpop.eup %5718  ;;  %v2760_v32 = vpop.xlane.xlu1 %2759 }
 0x5ba   : > { %5728 = vpow2.f32 %v2921_v48  ;;  %v2847_v18 = vsub.f32 %v7062_v24, %v2760_v32  ;;  %v2848_v19 = vsub.f32 %v7064_v25, %v2760_v32  ;;  %v3034_v42 = vadd.f32 %v7252_v47, %v7250_v1 }
 0x5bb   : > { %5730 = vpow2.f32 %v2923_v62 }
 0x5bc   : > { %v7258_v15 = vpop.eup %5720  ;;  %v2925_v16 = vmul.f32 1.442695, %v2847_v18  ;;  %v2927_v54 = vmul.f32 1.442695, %v2848_v19  ;;  %2822 = vmax.xlane.f32.xlu1 %v8280_v34  ;;  %3035 = vadd.xlane.f32.xlu0 %v3034_v42  ;;  %v8282_v19 = vmax.f32 %v7200_v7, %v7202_v12 }
 0x5bd   : > { %v7263_v37 = vpop.eup %5722  ;;  %v2763_v10 = vpop.xlane.xlu1 %2762 }
 0x5be   : > { %5732 = vpow2.f32 %v2925_v16  ;;  %v2849_v24 = vsub.f32 %v7068_v4, %v2763_v10  ;;  %v2850_v25 = vsub.f32 %v7070_v0, %v2763_v10  ;;  %v3037_v60 = vadd.f32 %v7263_v37, %v7258_v15 }
 0x5bf   : > { %5734 = vpow2.f32 %v2927_v54 }
 0x5c0   : > { %v7269_v50 = vpop.eup %5724  ;;  %v2929_v51 = vmul.f32 1.442695, %v2849_v24  ;;  %v2931_v63 = vmul.f32 1.442695, %v2850_v25  ;;  %3038 = vadd.xlane.f32.xlu1 %v3037_v60  ;;  %2819 = vmax.xlane.f32.xlu0 %v8281_v43  ;;  %v8283_v25 = vmax.f32 %v7194_v31, %v7196_v6 }
 0x5c1   : > { %v7274_v58 = vpop.eup %5726  ;;  %v2766_v14 = vpop.xlane.xlu1 %2765 }
 0x5c2   : > { %5736 = vpow2.f32 %v2929_v51  ;;  %v2851_v4 = vsub.f32 %v7074_v38, %v2766_v14  ;;  %v2852_v0 = vsub.f32 %v7076_v22, %v2766_v14  ;;  %v3040_v48 = vadd.f32 %v7274_v58, %v7269_v50 }
 0x5c3   : > { %5738 = vpow2.f32 %v2931_v63 }
 0x5c4   : > { %v7280_v62 = vpop.eup %5728  ;;  %v2933_v32 = vmul.f32 1.442695, %v2851_v4  ;;  %v2935_v18 = vmul.f32 1.442695, %v2852_v0  ;;  %2828 = vmax.xlane.f32.xlu1 %v8282_v19  ;;  %3041 = vadd.xlane.f32.xlu0 %v3040_v48 }
 0x5c5   : > { %v7285_v42 = vpop.eup %5730  ;;  %v2769_v16 = vpop.xlane.xlu1 %2768 }
 0x5c6   : > { %5740 = vpow2.f32 %v2933_v32  ;;  %v2853_v38 = vsub.f32 %v7080_v41, %v2769_v16  ;;  %v2854_v22 = vsub.f32 %v7082_v44, %v2769_v16  ;;  %v3043_v54 = vadd.f32 %v7285_v42, %v7280_v62 }
 0x5c7   : > { %5742 = vpow2.f32 %v2935_v18 }
 0x5c8   : > { %v7291_v34 = vpop.eup %5732  ;;  %v2937_v10 = vmul.f32 1.442695, %v2853_v38  ;;  %v2939_v24 = vmul.f32 1.442695, %v2854_v22  ;;  %3044 = vadd.xlane.f32.xlu1 %v3043_v54  ;;  %2825 = vmax.xlane.f32.xlu0 %v8283_v25  ;;  %v8284_v38 = vmax.f32 %v7206_v21, %v7208_v3 }
 0x5c9   : > { %v7296_v60 = vpop.eup %5734  ;;  %v2772_v51 = vpop.xlane.xlu1 %2771 }
 0x5ca   : > { %5744 = vpow2.f32 %v2937_v10  ;;  %v2855_v41 = vsub.f32 %v7086_v46, %v2772_v51  ;;  %v2856_v44 = vsub.f32 %v7088_v53, %v2772_v51  ;;  %v3046_v63 = vadd.f32 %v7296_v60, %v7291_v34 }
 0x5cb   : > { %5746 = vpow2.f32 %v2939_v24 }
 0x5cc   : > { %v7302_v43 = vpop.eup %5736  ;;  %v2941_v14 = vmul.f32 1.442695, %v2855_v41  ;;  %v2943_v4 = vmul.f32 1.442695, %v2856_v44  ;;  %3047 = vadd.xlane.f32.xlu0 %v3046_v63 }
 0x5cd   : > { %v7304_v0 = vpop.eup %5738  ;;  %v2775_v48 = vpop.xlane.xlu1 %2774 }
 0x5ce   : > { %5748 = vpow2.f32 %v2941_v14  ;;  %v2857_v32 = vsub.f32 %v7092_v55, %v2775_v48  ;;  %v2858_v18 = vsub.f32 %v7094_v56, %v2775_v48  ;;  %v3049_v46 = vadd.f32 %v7304_v0, %v7302_v43 }
 0x5cf   : > { %5750 = vpow2.f32 %v2943_v4 }
 0x5d0   : > { %v7310_v53 = vpop.eup %5740  ;;  %v2945_v19 = vmul.f32 1.442695, %v2857_v32  ;;  %v2947_v16 = vmul.f32 1.442695, %v2858_v18  ;;  %3050 = vadd.xlane.f32.xlu1 %v3049_v46  ;;  %2831 = vmax.xlane.f32.xlu0 %v8284_v38 }
 0x5d1   : > { %v7315_v22 = vpop.eup %5742  ;;  %v2778_v54 = vpop.xlane.xlu1 %2777 }
 0x5d2   : > { %5752 = vpow2.f32 %v2945_v19  ;;  %v2859_v55 = vsub.f32 %v7098_v28, %v2778_v54  ;;  %v2860_v56 = vsub.f32 %v7100_v11, %v2778_v54  ;;  %v3052_v10 = vadd.f32 %v7315_v22, %v7310_v53 }
 0x5d3   : > { %5754 = vpow2.f32 %v2947_v16 }
 0x5d4   : > { %v7321_v24 = vpop.eup %5744  ;;  %v2949_v25 = vmul.f32 1.442695, %v2859_v55  ;;  %v2951_v51 = vmul.f32 1.442695, %v2860_v56  ;;  %3053 = vadd.xlane.f32.xlu0 %v3052_v10 }
 0x5d5   : > { %v7323_v41 = vpop.eup %5746  ;;  %v2781_v44 = vpop.xlane.xlu1 %2780 }
 0x5d6   : > { %5756 = vpow2.f32 %v2949_v25  ;;  %v2861_v63 = vsub.f32 %v7104_v5, %v2781_v44  ;;  %v2862_v14 = vsub.f32 %v7106_v17, %v2781_v44  ;;  %v3055_v28 = vadd.f32 %v7323_v41, %v7321_v24 }
 0x5d7   : > { %5758 = vpow2.f32 %v2951_v51 }
 0x5d8   : > { %v7329_v11 = vpop.eup %5748  ;;  %v2953_v4 = vmul.f32 1.442695, %v2861_v63  ;;  %v2955_v48 = vmul.f32 1.442695, %v2862_v14  ;;  %3056 = vadd.xlane.f32.xlu1 %v3055_v28 }
 0x5d9   : > { %v7331_v32 = vpop.eup %5750  ;;  %v2784_v18 = vpop.xlane.xlu1 %2783 }
 0x5da   : > { %5760 = vpow2.f32 %v2953_v4  ;;  %v2863_v46 = vsub.f32 %v7110_v20, %v2784_v18  ;;  %v2864_v19 = vsub.f32 %v7112_v27, %v2784_v18  ;;  %v3058_v5 = vadd.f32 %v7331_v32, %v7329_v11 }
 0x5db   : > { %5762 = vpow2.f32 %v2955_v48 }
 0x5dc   : > { %v7337_v17 = vpop.eup %5752  ;;  %v2957_v16 = vmul.f32 1.442695, %v2863_v46  ;;  %v2959_v38 = vmul.f32 1.442695, %v2864_v19  ;;  %3059 = vadd.xlane.f32.xlu0 %v3058_v5 }
 0x5dd   : > { %v7339_v54 = vpop.eup %5754  ;;  %v2787_v55 = vpop.xlane.xlu1 %2786 }
 0x5de   : > { %5764 = vpow2.f32 %v2957_v16  ;;  %v2865_v56 = vsub.f32 %v7116_v40, %v2787_v55  ;;  %v2866_v10 = vsub.f32 %v7118_v45, %v2787_v55  ;;  %v3061_v20 = vadd.f32 %v7339_v54, %v7337_v17 }
 0x5df   : > { %5766 = vpow2.f32 %v2959_v38  ;;  %v2790_v27 = vpop.xlane.xlu0 %2789 }
 0x5e0   : > { %v7345_v25 = vpop.eup %5756  ;;  %v2961_v51 = vmul.f32 1.442695, %v2865_v56  ;;  %v2963_v44 = vmul.f32 1.442695, %v2866_v10  ;;  %3062 = vadd.xlane.f32.xlu1 %v3061_v20  ;;  %v2867_v63 = vsub.f32 %v7122_v59, %v2790_v27  ;;  %v2868_v14 = vsub.f32 %v7124_v13, %v2790_v27  ;;  %v8286_v13 = vld [vmem:[#allocation26_spill] sm:$0xff]  ;;  %v8287_v10 = vld [vmem:[#allocation27_spill] sm:$0xff] }
 0x5e1   : > { %v7349_v28 = vpop.eup %5758  ;;  %v8288_v27 = vld [vmem:[#allocation28_spill] sm:$0xff] }
 0x5e2   : > { %5768 = vpow2.f32 %v2961_v51  ;;  %v2965_v40 = vmul.f32 1.442695, %v2867_v63  ;;  %v2967_v4 = vmul.f32 1.442695, %v2868_v14  ;;  %v3064_v45 = vadd.f32 %v7349_v28, %v7345_v25 }
 0x5e3   : > { %5770 = vpow2.f32 %v2963_v44 }
 0x5e4   : > { %v7353_v48 = vpop.eup %5760  ;;  %5772 = vpow2.f32 %v2965_v40  ;;  %3065 = vadd.xlane.f32.xlu0 %v3064_v45 }
 0x5e5   : > { %8285 = vst [vmem:[#allocation39_spill] sm:$0xff] %v7353_v48  ;;  %v7355_v18 = vpop.eup %5762  ;;  %5774 = vpow2.f32 %v2967_v4  ;;  %v2793_v46 = vpop.xlane.xlu1 %2792 }
 0x5e6   : > { %v2869_v59 = vsub.f32 %v7128_v9, %v2793_v46  ;;  %v2870_v19 = vsub.f32 %v8286_v13, %v2793_v46  ;;  %v3067_v5 = vadd.f32 %v7355_v18, %v7353_v48 }
 0x5e7   : > { %v2796_v16 = vpop.xlane.xlu0 %2795 }
 0x5e8   : > { %v7361_v38 = vpop.eup %5764  ;;  %v2969_v55 = vmul.f32 1.442695, %v2869_v59  ;;  %v2971_v56 = vmul.f32 1.442695, %v2870_v19  ;;  %3068 = vadd.xlane.f32.xlu1 %v3067_v5  ;;  %v2871_v20 = vsub.f32 %v8287_v10, %v2796_v16  ;;  %v2872_v51 = vsub.f32 %v8288_v27, %v2796_v16  ;;  %v8292_v59 = vld [vmem:[#allocation29_spill] sm:$0xff]  ;;  %v8293_v19 = vld [vmem:[#allocation30_spill] sm:$0xff] }
 0x5e9   : > { %v7365_v44 = vpop.eup %5766  ;;  %v8295_v27 = vld [vmem:[#allocation31_spill] sm:$0xff] }
 0x5ea   : > { %5776 = vpow2.f32 %v2969_v55  ;;  %v2973_v63 = vmul.f32 1.442695, %v2871_v20  ;;  %v2975_v9 = vmul.f32 1.442695, %v2872_v51  ;;  %v3070_v14 = vadd.f32 %v7365_v44, %v7361_v38 }
 0x5eb   : > { %5778 = vpow2.f32 %v2971_v56 }
 0x5ec   : > { %v7369_v40 = vpop.eup %5768  ;;  %5780 = vpow2.f32 %v2973_v63  ;;  %3071 = vadd.xlane.f32.xlu0 %v3070_v14  ;;  %v8296_v63 = vld [vmem:[#allocation32_spill] sm:$0xff] }
 0x5ed   : > { %8289 = vst [vmem:[#allocation26_spill] sm:$0xff] %v7369_v40  ;;  %v7371_v4 = vpop.eup %5770  ;;  %5782 = vpow2.f32 %v2975_v9  ;;  %v2799_v45 = vpop.xlane.xlu1 %2798 }
 0x5ee   : > { %8290 = vst [vmem:[#allocation27_spill] sm:$0xff] %v7371_v4  ;;  %v7373_v46 = vpop.eup %5772  ;;  %v2873_v13 = vsub.f32 %v8292_v59, %v2799_v45  ;;  %v2874_v5 = vsub.f32 %v8293_v19, %v2799_v45  ;;  %v3073_v16 = vadd.f32 %v7371_v4, %v7369_v40 }
 0x5ef   : > { %8291 = vst [vmem:[#allocation28_spill] sm:$0xff] %v7373_v46  ;;  %v7379_v55 = vpop.eup %5774  ;;  %v2802_v56 = vpop.xlane.xlu0 %2801 }
 0x5f0   : > { %8294 = vst [vmem:[#allocation29_spill] sm:$0xff] %v7379_v55  ;;  %v2977_v10 = vmul.f32 1.442695, %v2873_v13  ;;  %v2979_v20 = vmul.f32 1.442695, %v2874_v5  ;;  %3074 = vadd.xlane.f32.xlu1 %v3073_v16  ;;  %v2875_v51 = vsub.f32 %v8295_v27, %v2802_v56  ;;  %v2876_v9 = vsub.f32 %v8296_v63, %v2802_v56  ;;  %v8297_v16 = vld [vmem:[#allocation33_spill] sm:$0xff] }
 0x5f1   : > { %v3076_v14 = vadd.f32 %v7379_v55, %v7373_v46  ;;  %v8298_v56 = vld [vmem:[#allocation34_spill] sm:$0xff]  ;;  %v8300_v46 = vld [vmem:[#allocation36_spill] sm:$0xff] }
 0x5f2   : > { %5784 = vpow2.f32 %v2977_v10  ;;  %v2981_v59 = vmul.f32 1.442695, %v2875_v51  ;;  %v2983_v48 = vmul.f32 1.442695, %v2876_v9 }
 0x5f3   : > { %5786 = vpow2.f32 %v2979_v20  ;;  %3077 = vadd.xlane.f32.xlu0 %v3076_v14 }
 0x5f4   : > { %v7385_v45 = vpop.eup %5776  ;;  %5788 = vpow2.f32 %v2981_v59  ;;  %v8299_v59 = vld [vmem:[#allocation35_spill] sm:$0xff] }
 0x5f5   : > { %v7387_v19 = vpop.eup %5778  ;;  %5790 = vpow2.f32 %v2983_v48  ;;  %v2805_v13 = vpop.xlane.xlu1 %2804 }
 0x5f6   : > { %v7389_v5 = vpop.eup %5780  ;;  %v2877_v27 = vsub.f32 %v8297_v16, %v2805_v13  ;;  %v2878_v63 = vsub.f32 %v8298_v56, %v2805_v13  ;;  %v3079_v10 = vadd.f32 %v7387_v19, %v7385_v45 }
 0x5f7   : > { %v7395_v51 = vpop.eup %5782  ;;  %v2808_v20 = vpop.xlane.xlu0 %2807 }
 0x5f8   : > { %v2985_v9 = vmul.f32 1.442695, %v2877_v27  ;;  %v2987_v14 = vmul.f32 1.442695, %v2878_v63  ;;  %3080 = vadd.xlane.f32.xlu1 %v3079_v10  ;;  %v2879_v40 = vsub.f32 %v8299_v59, %v2808_v20  ;;  %v2880_v48 = vsub.f32 %v8300_v46, %v2808_v20  ;;  %v8303_v10 = vld [vmem:[#allocation37_spill] sm:$0xff]  ;;  %v8304_v46 = vld [vmem:[#allocation38_spill] sm:$0xff] }
 0x5f9   : > { %v3082_v55 = vadd.f32 %v7395_v51, %v7389_v5 }
 0x5fa   : > { %5792 = vpow2.f32 %v2985_v9  ;;  %v2989_v16 = vmul.f32 1.442695, %v2879_v40  ;;  %v2991_v4 = vmul.f32 1.442695, %v2880_v48 }
 0x5fb   : > { %5794 = vpow2.f32 %v2987_v14  ;;  %3083 = vadd.xlane.f32.xlu0 %v3082_v55 }
 0x5fc   : > { %v7401_v13 = vpop.eup %5784  ;;  %5796 = vpow2.f32 %v2989_v16 }
 0x5fd   : > { %8301 = vst [vmem:[#allocation30_spill] sm:$0xff] %v7401_v13  ;;  %v7403_v56 = vpop.eup %5786  ;;  %5798 = vpow2.f32 %v2991_v4  ;;  %v2811_v27 = vpop.xlane.xlu1 %2810 }
 0x5fe   : > { %v7405_v63 = vpop.eup %5788  ;;  %v2881_v59 = vsub.f32 %v8303_v10, %v2811_v27  ;;  %v2882_v20 = vsub.f32 %v8304_v46, %v2811_v27  ;;  %v3085_v9 = vadd.f32 %v7403_v56, %v7401_v13 }
 0x5ff   : > { %8302 = vst [vmem:[#allocation31_spill] sm:$0xff] %v7405_v63  ;;  %v7411_v40 = vpop.eup %5790 }
 0x600   : > { %8305 = vst [vmem:[#allocation32_spill] sm:$0xff] %v7411_v40  ;;  %v2993_v14 = vmul.f32 1.442695, %v2881_v59  ;;  %v2995_v55 = vmul.f32 1.442695, %v2882_v20  ;;  %3086 = vadd.xlane.f32.xlu1 %v3085_v9  ;;  %v3088_v48 = vadd.f32 %v7411_v40, %v7405_v63 }
 0x602   : > { %5800 = vpow2.f32 %v2993_v14  ;;  %3089 = vadd.xlane.f32.xlu0 %v3088_v48 }
 0x603   : > { %5802 = vpow2.f32 %v2995_v55 }
 0x604   : > { %v7415_v4 = vpop.eup %5792 }
 0x605   : > { %8306 = vst [vmem:[#allocation33_spill] sm:$0xff] %v7415_v4  ;;  %v7417_v16 = vpop.eup %5794 }
 0x606   : > { %8307 = vst [vmem:[#allocation34_spill] sm:$0xff] %v7417_v16  ;;  %v7419_v10 = vpop.eup %5796  ;;  %v3091_v27 = vadd.f32 %v7417_v16, %v7415_v4 }
 0x607   : > { %8308 = vst [vmem:[#allocation35_spill] sm:$0xff] %v7419_v10  ;;  %v7423_v46 = vpop.eup %5798 }
 0x608   : > { %8309 = vst [vmem:[#allocation36_spill] sm:$0xff] %v7423_v46  ;;  %3092 = vadd.xlane.f32.xlu1 %v3091_v27  ;;  %v3094_v59 = vadd.f32 %v7423_v46, %v7419_v10 }
 0x60a   : > { %3095 = vadd.xlane.f32.xlu0 %v3094_v59 }
 0x60c   : > { %v7427_v20 = vpop.eup %5800 }
 0x60d   : > { %8310 = vst [vmem:[#allocation37_spill] sm:$0xff] %v7427_v20  ;;  %v7429_v9 = vpop.eup %5802 }
 0x60e   : > { %8311 = vst [vmem:[#allocation38_spill] sm:$0xff] %v7429_v9  ;;  %v3097_v14 = vadd.f32 %v7429_v9, %v7427_v20 }
 0x610   : > { %3098 = vadd.xlane.f32.xlu1 %v3097_v14 }
 0x63d   : > { %v3027_v55 = vpop.xlane.xlu1 %3026 }
 0x63e   : > { %5804 = vrcp.f32 %v3027_v55 }
 0x63f   : > { %v3030_v48 = vpop.xlane.xlu0 %3029 }
 0x640   : > { %5806 = vrcp.f32 %v3030_v48 }
 0x641   : > { %v2817_v4 = vpop.xlane.xlu1 %2816 }
 0x642   : > { %v2885_v16 = vsub.f32 %v7176_v26, %v2817_v4  ;;  %v2886_v27 = vsub.f32 %v7178_v39, %v2817_v4 }
 0x643   : > { %v2814_v13 = vpop.xlane.xlu0 %2813 }
 0x644   : > { %v3001_v10 = vmul.f32 1.442695, %v2885_v16  ;;  %v3003_v59 = vmul.f32 1.442695, %v2886_v27  ;;  %v2883_v46 = vsub.f32 %v7170_v2, %v2814_v13  ;;  %v2884_v63 = vsub.f32 %v7172_v30, %v2814_v13 }
 0x645   : > { %v3033_v40 = vpop.xlane.xlu1 %3032 }
 0x646   : > { %5808 = vpow2.f32 %v3001_v10  ;;  %v2997_v20 = vmul.f32 1.442695, %v2883_v46  ;;  %v2999_v14 = vmul.f32 1.442695, %v2884_v63 }
 0x647   : > { %5810 = vpow2.f32 %v3003_v59 }
 0x648   : > { %v5805_v55 = vpop.eup %5804  ;;  %5812 = vpow2.f32 %v2997_v20 }
 0x649   : > { %5814 = vpow2.f32 %v2999_v14  ;;  %v7437_v48 = vpop.xlane.xlu1 %2822  ;;  %v3036_v26 = vpop.xlane.xlu0 %3035  ;;  %v3154_v39 = vmul.f32 %v5805_v55, %v7222_v33  ;;  %v3153_v30 = vmul.f32 %v5805_v55, %v7220_v29 }
 0x64a   : > { %v5807_v9 = vpop.eup %5806  ;;  %5816 = vrcp.f32 %v3033_v40 }
 0x64b   : > { %5818 = vrcp.f32 %v3036_v26  ;;  %v3156_v2 = vmul.f32 %v5807_v9, %v7230_v23  ;;  %v3155_v13 = vmul.f32 %v5807_v9, %v7224_v8 }
 0x64d   : > { %v3039_v4 = vpop.xlane.xlu1 %3038  ;;  %v2820_v63 = vpop.xlane.xlu0 %2819  ;;  %v3218_v16 = vpack.c.bf16 %v3156_v2, %v3154_v39  ;;  %v3217_v10 = vpack.c.bf16 %v3155_v13, %v3153_v30 }
 0x64e   : > { %v2887_v46 = vsub.f32 %v7182_v49, %v2820_v63  ;;  %v2888_v20 = vsub.f32 %v7184_v36, %v2820_v63  ;;  %5820 = vrcp.f32 %v3039_v4 }
 0x64f   : > { %3249 = vmatprep.subr.bf16.mxu1 %v3218_v16 }
 0x650   : > { %v7445_v27 = vpop.eup %5808  ;;  %v3005_v40 = vmul.f32 1.442695, %v2887_v46  ;;  %v3007_v33 = vmul.f32 1.442695, %v2888_v20  ;;  %3250 = vmatpush1.bf16.xpose.msra.mxu1 %v3217_v10 }
 0x651   : > { %v7447_v59 = vpop.eup %5810  ;;  %v7449_v29 = vpop.xlane.xlu1 %2828 }
 0x652   : > { %v3042_v8 = vpop.xlane.xlu0 %3041  ;;  %v7451_v23 = vpop.eup %5812  ;;  %5822 = vpow2.f32 %v3005_v40  ;;  %v3103_v49 = vadd.f32 %v7447_v59, %v7445_v27 }
 0x653   : > { %v7455_v9 = vpop.eup %5814  ;;  %5824 = vpow2.f32 %v3007_v33 }
 0x654   : > { %v5817_v36 = vpop.eup %5816  ;;  %5826 = vrcp.f32 %v3042_v8  ;;  %3104 = vadd.xlane.f32.xlu1 %v3103_v49  ;;  %v3100_v14 = vadd.f32 %v7455_v9, %v7451_v23 }
 0x655   : > { %v5819_v55 = vpop.eup %5818  ;;  %v3045_v39 = vpop.xlane.xlu1 %3044  ;;  %v3158_v13 = vmul.f32 %v5817_v36, %v7241_v61  ;;  %v3157_v63 = vmul.f32 %v5817_v36, %v7236_v52 }
 0x656   : > { %v2826_v26 = vpop.xlane.xlu0 %2825  ;;  %3101 = vadd.xlane.f32.xlu0 %v3100_v14  ;;  %v3160_v4 = vmul.f32 %v5819_v55, %v7252_v47  ;;  %v3159_v16 = vmul.f32 %v5819_v55, %v7250_v1  ;;  %5828 = vrcp.f32 %v3045_v39 }
 0x657   : > { %v2891_v2 = vsub.f32 %v7194_v31, %v2826_v26  ;;  %v2892_v30 = vsub.f32 %v7196_v6, %v2826_v26 }
 0x658   : > { %v3220_v20 = vpack.c.bf16 %v3160_v4, %v3158_v13  ;;  %v3219_v33 = vpack.c.bf16 %v3159_v16, %v3157_v63  ;;  %v5821_v8 = vpop.eup %5820 }
 0x659   : > { %v3013_v10 = vmul.f32 1.442695, %v2891_v2  ;;  %v3015_v46 = vmul.f32 1.442695, %v2892_v30  ;;  %v3162_v14 = vmul.f32 %v5821_v8, %v7263_v37  ;;  %v3161_v26 = vmul.f32 %v5821_v8, %v7258_v15 }
 0x65a   : > { %v3048_v40 = vpop.xlane.xlu0 %3047  ;;  %3251 = vmatprep.subr.bf16.mxu1 %v3220_v20 }
 0x65b   : > { %5830 = vpow2.f32 %v3013_v10  ;;  %3252 = vmatpush1.bf16.xpose.msra.mxu1 %v3219_v33 }
 0x65c   : > { %5832 = vpow2.f32 %v3015_v46  ;;  %v7465_v6 = vpop.eup %5822 }
 0x65d   : > { %5834 = vrcp.f32 %v3048_v40  ;;  %v7467_v31 = vpop.eup %5824  ;;  %v3051_v47 = vpop.xlane.xlu1 %3050 }
 0x65e   : > { %v2832_v61 = vpop.xlane.xlu0 %2831  ;;  %v5827_v52 = vpop.eup %5826  ;;  %v3106_v36 = vadd.f32 %v7467_v31, %v7465_v6  ;;  %5836 = vrcp.f32 %v3051_v47 }
 0x65f   : > { %v2895_v1 = vsub.f32 %v7206_v21, %v2832_v61  ;;  %v2896_v49 = vsub.f32 %v7208_v3, %v2832_v61  ;;  %v3164_v55 = vmul.f32 %v5827_v52, %v7274_v58  ;;  %v3163_v39 = vmul.f32 %v5827_v52, %v7269_v50  ;;  %v2161_v3 = vld [vmem:[%s8106_s4 + $0x10] sm:$0xff] }
 0x660   : > { %3107 = vadd.xlane.f32.xlu0 %v3106_v36  ;;  %v5829_v63 = vpop.eup %5828 }
 0x661   : > { %v3021_v2 = vmul.f32 1.442695, %v2895_v1  ;;  %v3023_v30 = vmul.f32 1.442695, %v2896_v49  ;;  %v3222_v13 = vpack.c.bf16 %v3164_v55, %v3162_v14  ;;  %v3221_v21 = vpack.c.bf16 %v3163_v39, %v3161_v26 }
 0x662   : > { %v3054_v4 = vpop.xlane.xlu0 %3053  ;;  %v3166_v10 = vmul.f32 %v5829_v63, %v7285_v42  ;;  %v3165_v20 = vmul.f32 %v5829_v63, %v7280_v62  ;;  %v2889_v62 = vsub.f32 %v7188_v57, %v7437_v48  ;;  %v2890_v26 = vsub.f32 %v7190_v35, %v7437_v48 }
 0x663   : > { %5838 = vpow2.f32 %v3021_v2  ;;  %3253 = vmatprep.subr.bf16.mxu1 %v3222_v13 }
 0x664   : > { %5840 = vpow2.f32 %v3023_v30  ;;  %3254 = vmatpush1.bf16.xpose.msra.mxu1 %v3221_v21  ;;  %v3009_v13 = vmul.f32 1.442695, %v2889_v62  ;;  %v2894_v21 = vsub.f32 %v7202_v12, %v7449_v29 }
 0x665   : > { %v7480_v37 = vpop.eup %5830  ;;  %5842 = vrcp.f32 %v3054_v4  ;;  %2177 = vperm.xlu1 %5576, %v2161_v3   ;;  %v3057_v50 = vpop.xlane.xlu1 %3056 }
 0x666   : > { %v7482_v15 = vpop.eup %5832  ;;  %5844 = vrcp.f32 %v3057_v50 }
 0x667   : > { %v5835_v58 = vpop.eup %5834  ;;  %v3112_v16 = vadd.f32 %v7482_v15, %v7480_v37 }
 0x668   : > { %v3168_v46 = vmul.f32 %v5835_v58, %v7296_v60  ;;  %v3167_v40 = vmul.f32 %v5835_v58, %v7291_v34  ;;  %v5837_v52 = vpop.eup %5836 }
 0x669   : > { %3113 = vadd.xlane.f32.xlu0 %v3112_v16  ;;  %v3060_v8 = vpop.xlane.xlu0 %3059  ;;  %v3170_v60 = vmul.f32 %v5837_v52, %v7304_v0  ;;  %v3169_v14 = vmul.f32 %v5837_v52, %v7302_v43  ;;  %v3011_v0 = vmul.f32 1.442695, %v2890_v26  ;;  %v2893_v43 = vsub.f32 %v7200_v7, %v7449_v29 }
 0x66a   : > { %v3224_v33 = vpack.c.bf16 %v3168_v46, %v3166_v10  ;;  %v3223_v61 = vpack.c.bf16 %v3167_v40, %v3165_v20  ;;  %5846 = vrcp.f32 %v3060_v8  ;;  %v3019_v10 = vmul.f32 1.442695, %v2894_v21 }
 0x66b   : > { %v3017_v58 = vmul.f32 1.442695, %v2893_v43 }
 0x66c   : > { %3255 = vmatprep.subr.bf16.mxu1 %v3224_v33 }
 0x66d   : > { %v7490_v47 = vpop.eup %5838  ;;  %3256 = vmatpush1.bf16.xpose.msra.mxu1 %v3223_v61  ;;  %v3063_v42 = vpop.xlane.xlu1 %3062 }
 0x66e   : > { %v7492_v1 = vpop.eup %5840  ;;  %5848 = vrcp.f32 %v3063_v42 }
 0x66f   : > { %v5843_v49 = vpop.eup %5842  ;;  %v3118_v34 = vadd.f32 %v7492_v1, %v7490_v47 }
 0x670   : > { %v3172_v36 = vmul.f32 %v5843_v49, %v7315_v22  ;;  %v3171_v55 = vmul.f32 %v5843_v49, %v7310_v53  ;;  %v5845_v57 = vpop.eup %5844  ;;  %v8312_v49 = vld [vmem:[#allocation39_spill] sm:$0xff] }
 0x671   : > { %3119 = vadd.xlane.f32.xlu0 %v3118_v34  ;;  %v3066_v2 = vpop.xlane.xlu0 %3065  ;;  %v3174_v53 = vmul.f32 %v5845_v57, %v7323_v41  ;;  %v3173_v3 = vmul.f32 %v5845_v57, %v7321_v24 }
 0x672   : > { %v3226_v39 = vpack.c.bf16 %v3172_v36, %v3170_v60  ;;  %v3225_v30 = vpack.c.bf16 %v3171_v55, %v3169_v14  ;;  %5850 = vrcp.f32 %v3066_v2 }
 0x673   : > { %5852 = vpow2.f32 %v3009_v13 }
 0x674   : > { %3257 = vmatprep.subr.bf16.mxu1 %v3226_v39  ;;  %v5847_v4 = vpop.eup %5846 }
 0x675   : > { %3258 = vmatpush1.bf16.xpose.msra.mxu1 %v3225_v30  ;;  %v3069_v22 = vpop.xlane.xlu1 %3068  ;;  %v3176_v35 = vmul.f32 %v5847_v4, %v7331_v32  ;;  %v3175_v48 = vmul.f32 %v5847_v4, %v7329_v11  ;;  %v8314_v30 = vld [vmem:[#allocation29_spill] sm:$0xff] }
 0x676   : > { %5854 = vrcp.f32 %v3069_v22 }
 0x677   : > { %v3228_v63 = vpack.c.bf16 %v3176_v35, %v3174_v53  ;;  %v3227_v50 = vpack.c.bf16 %v3175_v48, %v3173_v3  ;;  %5856 = vpow2.f32 %v3011_v0  ;;  %v8315_v0 = vld [vmem:[#allocation28_spill] sm:$0xff]  ;;  %v8316_v53 = vld [vmem:[#allocation26_spill] sm:$0xff] }
 0x678   : > { %v5849_v16 = vpop.eup %5848 }
 0x679   : > { %3259 = vmatprep.subr.bf16.mxu1 %v3228_v63  ;;  %v3072_v7 = vpop.xlane.xlu0 %3071  ;;  %v3178_v32 = vmul.f32 %v5849_v16, %v7339_v54  ;;  %v3177_v29 = vmul.f32 %v5849_v16, %v7337_v17  ;;  %v2162_v54 = vld [vmem:[%s8106_s4 + $0x18] sm:$0xff] }
 0x67a   : > { %5858 = vrcp.f32 %v3072_v7 }
 0x67b   : > { %5860 = vpow2.f32 %v3017_v58 }
 0x67c   : > { %v5851_v41 = vpop.eup %5850  ;;  %5862 = vpow2.f32 %v3019_v10 }
 0x67d   : > { %3260 = vmatpush1.bf16.xpose.msra.mxu1 %v3227_v50  ;;  %v3075_v11 = vpop.xlane.xlu1 %3074  ;;  %v3180_v12 = vmul.f32 %v5851_v41, %v7349_v28  ;;  %v3179_v24 = vmul.f32 %v5851_v41, %v7345_v25  ;;  %v7516_v33 = vpop.eup %5852 }
 0x67e   : > { %5864 = vrcp.f32 %v3075_v11 }
 0x67f   : > { %v3230_v46 = vpack.c.bf16 %v3180_v12, %v3178_v32  ;;  %v3229_v40 = vpack.c.bf16 %v3179_v24, %v3177_v29  ;;  %v2163_v24 = vld [vmem:[%s8106_s4 + $0x20] sm:$0xff] }
 0x680   : > { %v3078_v20 = vpop.xlane.xlu0 %3077  ;;  %v5855_v8 = vpop.eup %5854 }
 0x681   : > { %5866 = vrcp.f32 %v3078_v20  ;;  %3261 = vmatprep.subr.bf16.mxu1 %v3230_v46  ;;  %v7518_v61 = vpop.eup %5856  ;;  %v3182_v17 = vmul.f32 %v5855_v8, %v7355_v18  ;;  %v3181_v62 = vmul.f32 %v5855_v8, %v8312_v49  ;;  %v8319_v8 = vld [vmem:[#allocation30_spill] sm:$0xff] }
 0x682   : > { %v3109_v60 = vadd.f32 %v7518_v61, %v7516_v33 }
 0x684   : > { %v5859_v28 = vpop.eup %5858 }
 0x685   : > { %3262 = vmatpush1.bf16.xpose.msra.mxu1 %v3229_v40  ;;  %v3081_v25 = vpop.xlane.xlu1 %3080  ;;  %v3184_v52 = vmul.f32 %v5859_v28, %v7365_v44  ;;  %v3183_v42 = vmul.f32 %v5859_v28, %v7361_v38  ;;  %v7527_v34 = vpop.eup %5860  ;;  %v8313_v44 = vld [vmem:[#allocation27_spill] sm:$0xff] }
 0x686   : > { %5868 = vrcp.f32 %v3081_v25  ;;  %v7531_v14 = vpop.eup %5862 }
 0x687   : > { %2182 = vperm.xlu0 %5575, %v2162_v54   ;;  %v3232_v36 = vpack.c.bf16 %v3184_v52, %v3182_v17  ;;  %v3231_v26 = vpack.c.bf16 %v3183_v42, %v3181_v62  ;;  %v3115_v38 = vadd.f32 %v7531_v14, %v7527_v34  ;;  %v8320_v17 = vld [vmem:[#allocation34_spill] sm:$0xff]  ;;  %v8321_v52 = vld [vmem:[#allocation36_spill] sm:$0xff]  ;;  %v8322_v62 = vld [vmem:[#allocation35_spill] sm:$0xff] }
 0x688   : > { %v3084_v55 = vpop.xlane.xlu0 %3083  ;;  %v5865_v39 = vpop.eup %5864 }
 0x689   : > { %5870 = vrcp.f32 %v3084_v55  ;;  %3110 = vadd.xlane.f32.xlu1 %v3109_v60  ;;  %3263 = vmatprep.subr.bf16.mxu1 %v3232_v36  ;;  %v3186_v2 = vmul.f32 %v5865_v39, %v8313_v44  ;;  %v3185_v35 = vmul.f32 %v5865_v39, %v8316_v53  ;;  %v8323_v36 = vld [vmem:[#allocation33_spill] sm:$0xff] }
 0x68b   : > { %v5867_v18 = vpop.eup %5866 }
 0x68c   : > { %v3188_v57 = vmul.f32 %v5867_v18, %v8314_v30  ;;  %v3187_v43 = vmul.f32 %v5867_v18, %v8315_v0  ;;  %v8325_v0 = vld [vmem:[#allocation37_spill] sm:$0xff] }
 0x68d   : > { %3264 = vmatpush1.bf16.xpose.msra.mxu1 %v3231_v26  ;;  %3116 = vadd.xlane.f32.xlu1 %v3115_v38  ;;  %v3087_v13 = vpop.xlane.xlu1 %3086 }
 0x68e   : > { %5872 = vrcp.f32 %v3087_v13  ;;  %v3234_v4 = vpack.c.bf16 %v3188_v57, %v3186_v2  ;;  %v3233_v21 = vpack.c.bf16 %v3187_v43, %v3185_v35  ;;  %v8324_v57 = vld [vmem:[#allocation38_spill] sm:$0xff] }
 0x68f   : > { %v3090_v22 = vpop.xlane.xlu0 %3089 }
 0x690   : > { %3265 = vmatprep.subr.bf16.mxu1 %v3234_v4  ;;  %5874 = vrcp.f32 %v3090_v22  ;;  %v5869_v48 = vpop.eup %5868 }
 0x691   : > { %v3190_v63 = vmul.f32 %v5869_v48, %v7387_v19  ;;  %v3189_v11 = vmul.f32 %v5869_v48, %v7385_v45  ;;  %v2164_v45 = vld [vmem:[%s8106_s4 + $0x28] sm:$0xff] }
 0x693   : > { %v5871_v3 = vpop.eup %5870 }
 0x694   : > { %v3192_v50 = vmul.f32 %v5871_v3, %v7395_v51  ;;  %v3191_v16 = vmul.f32 %v5871_v3, %v7389_v5  ;;  %v8317_v51 = vld [vmem:[#allocation32_spill] sm:$0xff]  ;;  %v8318_v5 = vld [vmem:[#allocation31_spill] sm:$0xff] }
 0x695   : > { %3266 = vmatpush1.bf16.xpose.msra.mxu1 %v3233_v21  ;;  %v3093_v58 = vpop.xlane.xlu1 %3092 }
 0x696   : > { %5876 = vrcp.f32 %v3093_v58  ;;  %v3236_v7 = vpack.c.bf16 %v3192_v50, %v3190_v63  ;;  %v3235_v12 = vpack.c.bf16 %v3191_v16, %v3189_v11  ;;  %v8326_v11 = vld [vmem:[#allocation18_spill] sm:$0xff] }
 0x697   : > { %v3096_v10 = vpop.xlane.xlu0 %3095 }
 0x698   : > { %v5873_v41 = vpop.eup %5872  ;;  %3267 = vmatprep.subr.bf16.mxu1 %v3236_v7  ;;  %5878 = vrcp.f32 %v3096_v10 }
 0x699   : > { %v3194_v19 = vmul.f32 %v5873_v41, %v7403_v56  ;;  %v3193_v54 = vmul.f32 %v5873_v41, %v8319_v8 }
 0x69a   : > { %v5875_v32 = vpop.eup %5874 }
 0x69b   : > { %v3196_v29 = vmul.f32 %v5875_v32, %v8317_v51  ;;  %v3195_v20 = vmul.f32 %v5875_v32, %v8318_v5  ;;  %v8329_v51 = vld [vmem:[#allocation21_spill] sm:$0xff] }
 0x69d   : > { %3268 = vmatpush1.bf16.xpose.msra.mxu1 %v3235_v12  ;;  %v3238_v46 = vpack.c.bf16 %v3196_v29, %v3194_v19  ;;  %v3237_v25 = vpack.c.bf16 %v3195_v20, %v3193_v54  ;;  %v3099_v39 = vpop.xlane.xlu1 %3098  ;;  %v8327_v12 = vld [vmem:[#allocation19_spill] sm:$0xff]  ;;  %v8328_v19 = vld [vmem:[#allocation20_spill] sm:$0xff] }
 0x69e   : > { %2187 = vperm.xlu1 %5576, %v2163_v24   ;;  %5880 = vrcp.f32 %v3099_v39 }
 0x69f   : > { %3269 = vmatprep.subr.bf16.mxu1 %v3238_v46 }
 0x6a0   : > { %v5877_v40 = vpop.eup %5876 }
 0x6a1   : > { %v3198_v56 = vmul.f32 %v5877_v40, %v8320_v17  ;;  %v3197_v55 = vmul.f32 %v5877_v40, %v8323_v36  ;;  %v8333_v36 = vld [vmem:[#allocation25_spill] sm:$0xff] }
 0x6a2   : > { %v5879_v28 = vpop.eup %5878  ;;  %2192 = vperm.xlu1 %5576, %v2164_v45  }
 0x6a3   : > { %v3200_v42 = vmul.f32 %v5879_v28, %v8321_v52  ;;  %v3199_v60 = vmul.f32 %v5879_v28, %v8322_v62  ;;  %v8332_v62 = vld [vmem:[#allocation24_spill] sm:$0xff] }
 0x6a5   : > { %3270 = vmatpush1.bf16.xpose.msra.mxu1 %v3237_v25  ;;  %v3240_v49 = vpack.c.bf16 %v3200_v42, %v3198_v56  ;;  %v3239_v26 = vpack.c.bf16 %v3199_v60, %v3197_v55  ;;  %v8330_v56 = vld [vmem:[#allocation22_spill] sm:$0xff]  ;;  %v8331_v42 = vld [vmem:[#allocation23_spill] sm:$0xff] }
 0x6a7   : > { %3271 = vmatprep.subr.bf16.mxu1 %v3240_v49 }
 0x6a8   : > { %v5881_v44 = vpop.eup %5880 }
 0x6a9   : > { %v3202_v13 = vmul.f32 %v5881_v44, %v8324_v57  ;;  %v3201_v43 = vmul.f32 %v5881_v44, %v8325_v0  ;;  %v8334_v57 = vld [vmem:[#allocation3_spill] sm:$0xff] }
 0x6aa   : > { %v8339_v0 = vld [vmem:[#allocation11_spill] sm:$0xff] }
 0x6ad   : > { %3272 = vmatpush1.bf16.xpose.msra.mxu1 %v3239_v26 }
 0x6e1   : > { %v3105_v38 = vpop.xlane.xlu1 %3104 }
 0x6e3   : > { %v3102_v18 = vpop.xlane.xlu0 %3101 }
 0x6e4   : > { %5882 = vrcp.f32 %v3102_v18 }
 0x6e5   : > { %5884 = vrcp.f32 %v3105_v38  ;;  %v2178_v10 = vpop.permute.xlu1 %2177 }
 0x6e6   : > { %v2265_v32 = vadd.f32 %v8326_v11, %v2178_v10  ;;  %v2267_v24 = vadd.f32 %v8327_v12, %v2178_v10 }
 0x6ed   : > { %v3108_v2 = vpop.xlane.xlu0 %3107 }
 0x6ee   : > { %v5883_v30 = vpop.eup %5882  ;;  %5886 = vrcp.f32 %v3108_v2 }
 0x6ef   : > { %v3204_v4 = vmul.f32 %v5883_v30, %v7455_v9  ;;  %v3203_v22 = vmul.f32 %v5883_v30, %v7451_v23  ;;  %v5885_v48 = vpop.eup %5884 }
 0x6f0   : > { %v3206_v3 = vmul.f32 %v5885_v48, %v7447_v59  ;;  %v3205_v50 = vmul.f32 %v5885_v48, %v7445_v27 }
 0x6f1   : > { %v3242_v53 = vpack.c.bf16 %v3204_v4, %v3202_v13  ;;  %v3241_v35 = vpack.c.bf16 %v3203_v22, %v3201_v43  ;;  %v8335_v13 = vld [vmem:[#allocation2_spill] sm:$0xff]  ;;  %v8336_v4 = vld [vmem:[#allocation5_spill] sm:$0xff] }
 0x6f2   : > { %v8342_v43 = vld [vmem:[#allocation17_spill] sm:$0xff]  ;;  %v3302_v22 = vld [vmem:[%s8107_s5] sm:$0x3] }
 0x6f3   : > { %3273 = vmatprep.subr.bf16.mxu1 %v3242_v53 }
 0x6f4   : > { %3274 = vmatpush1.bf16.xpose.msra.mxu1 %v3241_v35 }
 0x6f6   : > { %v3114_v16 = vpop.xlane.xlu0 %3113 }
 0x6f7   : > { %5888 = vrcp.f32 %v3114_v16 }
 0x6f8   : > { %v5887_v21 = vpop.eup %5886 }
 0x6f9   : > { %v3208_v63 = vmul.f32 %v5887_v21, %v7467_v31  ;;  %v3207_v58 = vmul.f32 %v5887_v21, %v7465_v6 }
 0x6fb   : > { %v3244_v7 = vpack.c.bf16 %v3208_v63, %v3206_v3  ;;  %v3243_v9 = vpack.c.bf16 %v3207_v58, %v3205_v50 }
 0x6fd   : > { %3275 = vmatprep.subr.bf16.mxu1 %v3244_v7 }
 0x6fe   : > { %3276 = vmatpush1.bf16.xpose.msra.mxu1 %v3243_v9  ;;  %v3120_v23 = vpop.xlane.xlu0 %3119 }
 0x701   : > { %v5889_v20 = vpop.eup %5888 }
 0x702   : > { %v3212_v54 = vmul.f32 %v5889_v20, %v7482_v15  ;;  %v3211_v25 = vmul.f32 %v5889_v20, %v7480_v37 }
 0x706   : > { %v2183_v41 = vpop.permute.xlu0 %2182 }
 0x707   : > { %v2269_v59 = vadd.f32 %v8328_v19, %v2183_v41  ;;  %v2271_v31 = vadd.f32 %v8329_v51, %v2183_v41  ;;  %v3354_v51 = vld [vmem:[%s8108_s6] sm:$0xf] }
 0x709   : > { %v2443_v29 = vpack.c.bf16 %v2269_v59, %v2265_v32  ;;  %v2444_v27 = vpack.c.bf16 %v2271_v31, %v2267_v24  ;;  %v5698_v59 = vld [vmem:[%s8109_s7] sm:$0xff]  }
 0x70b   : > { %3281 = vmatprep.mubr.bf16.mxu1 %v2444_v27 }
 0x716   : > { %v3111_v6 = vpop.xlane.xlu1 %3110 }
 0x717   : > { %5890 = vrcp.f32 %v3111_v6 }
 0x718   : > { %5892 = vrcp.f32 %v3120_v23 }
 0x71a   : > { %v3117_v46 = vpop.xlane.xlu1 %3116 }
 0x71b   : > { %5894 = vrcp.f32 %v3117_v46 }
 0x71e   : > { %v2188_v5 = vpop.permute.xlu1 %2187 }
 0x71f   : > { %v2275_v52 = vadd.f32 %v8330_v56, %v2188_v5  ;;  %v2277_v49 = vadd.f32 %v8331_v42, %v2188_v5 }
 0x721   : > { %v5891_v45 = vpop.eup %5890 }
 0x722   : > { %v2193_v40 = vpop.permute.xlu1 %2192  ;;  %v3210_v8 = vmul.f32 %v5891_v45, %v7518_v61  ;;  %v3209_v28 = vmul.f32 %v5891_v45, %v7516_v33  ;;  %v5893_v17 = vpop.eup %5892  ;;  %v5699_v45 = vld [vmem:[%s8109_s7 + $0x8] sm:$0xff]  }
 0x723   : > { %v2279_v60 = vadd.f32 %v8332_v62, %v2193_v40  ;;  %v2281_v55 = vadd.f32 %v8333_v36, %v2193_v40  ;;  %v3216_v33 = vmul.f32 %v5893_v17, %v7492_v1  ;;  %v3215_v2 = vmul.f32 %v5893_v17, %v7490_v47  ;;  %v8338_v1 = vld [vmem:[#allocation10_spill] sm:$0xff]  ;;  %v8341_v47 = vld [vmem:[#allocation16_spill] sm:$0xff] }
 0x724   : > { %v3246_v26 = vpack.c.bf16 %v3212_v54, %v3210_v8  ;;  %v3245_v39 = vpack.c.bf16 %v3211_v25, %v3209_v28  ;;  %v5700_v40 = vld [vmem:[%s8112_s10] sm:$0xff]   ;;  %v3365_v8 = vld [vmem:[%s8110_s8 + $0x10] sm:$0xff]  ;;  %v3366_v25 = vld [vmem:[%s8110_s8 + $0x18] sm:$0xff] }
 0x725   : > { %v5895_v18 = vpop.eup %5894  ;;  %v2445_v38 = vpack.c.bf16 %v2279_v60, %v2275_v52  ;;  %v2446_v61 = vpack.c.bf16 %v2281_v55, %v2277_v49  ;;  %v3363_v54 = vld [vmem:[%s8110_s8] sm:$0xff]  ;;  %v3364_v52 = vld [vmem:[%s8110_s8 + $0x8] sm:$0xff] }
 0x726   : > { %3277 = vmatprep.subr.bf16.mxu1 %v3246_v26  ;;  %v3214_v15 = vmul.f32 %v5895_v18, %v7531_v14  ;;  %v3213_v44 = vmul.f32 %v5895_v18, %v7527_v34  ;;  %v8337_v14 = vld [vmem:[#allocation4_spill] sm:$0xff]  ;;  %v8340_v34 = vmov 0  }
 0x727   : > { %3278 = vmatpush1.bf16.xpose.msra.mxu1 %v3245_v39 }
 0x728   : > { %v3248_v37 = vpack.c.bf16 %v3216_v33, %v3214_v15  ;;  %v3247_v30 = vpack.c.bf16 %v3215_v2, %v3213_v44 }
 0x72a   : > { %3279 = vmatprep.subr.bf16.mxu1 %v3248_v37 }
 0x72f   : > { %3280 = vmatpush1.bf16.xpose.msra.mxu1 %v3247_v30 }
 0x730   : > { %3306 = vmatprep.subr.bf16.mxu1 %v8334_v57 }
 0x736   : > { %3282 = vmatmul.mubr.bf16.vlgmr.msra.gmra.mrb[76].mxu1 %v2443_v29 }
 0x737   : > { %3291 = vmatprep.mubr.bf16.mxu1 %v2446_v61  ;;  %3307 = vmatpush1.bf16.msra.mxu1 %v8335_v13 }
 0x738   : > { %3308 = vmatprep.subr.bf16.mxu1 %v8336_v4 }
 0x73b   : > { %3309 = vmatpush1.bf16.msra.mxu1 %v8337_v14 }
 0x73c   : > { %3310 = vmatprep.subr.bf16.mxu1 %v8338_v1 }
 0x73e   : > { %3292 = vmatmul.mubr.bf16.gmra.mrb[80].mxu1 %v2445_v38 }
 0x73f   : > { %3311 = vmatpush1.bf16.msra.mxu1 %v8339_v0  ;;  %3338 = vmatprep.mubr.bf16.mxu1 %v8340_v34 }
 0x740   : > { %3312 = vmatprep.subr.bf16.mxu1 %v8341_v47 }
 0x743   : > { %3313 = vmatpush1.bf16.msra.mxu1 %v8342_v43 }
 0x746   : > { %5034 = vmatmul.mubr.msk.bf16.vlgmr.msra.gmra.mrb[84].mxu1 %vm2210_vm7, %v3302_v22  ;;  %v3656_v22 = vld [vmem:[%s8113_s11] sm:$0xff] }
 0x747   : > { %5232 = vmatprep.mubr.msk.bf16.mxu1 %vm3377_vm14, %v5698_v59  ;;  %v3725_v59 = vld [vmem:[%s8114_s12 + $0x108] sm:$0xff] }
 0x809   : > { %v3283_v53 = vpop.f32.mrb[76].mxu1 }
 0x80a   : > { %v3285_v35 = vpop.f32.mrb[77].mxu1 }
 0x80b   : > { %v3287_v48 = vpop.f32.mrb[78].mxu1 }
 0x80c   : > { %v3514_v21 = vpack.c.bf16 %v3287_v48, %v3283_v53  ;;  %v3289_v3 = vpop.f32.mrb[79].mxu1  ;;  %v5701_v53 = vld [vmem:[%s8112_s10 + $0x8] sm:$0xff]   ;;  %v3658_v48 = vld [vmem:[%s8113_s11 + $0x10] sm:$0xff] }
 0x80d   : > { %v3515_v63 = vpack.c.bf16 %v3289_v3, %v3285_v35  ;;  %v3657_v35 = vld [vmem:[%s8113_s11 + $0x8] sm:$0xff] }
 0x80e   : > { %v3693_v3 = vld [vmem:[%s8114_s12 + $0x8] sm:$0xff] }
 0x811   : > { %v3293_v50 = vpop.f32.mrb[80].mxu1 }
 0x812   : > { %v3295_v58 = vpop.f32.mrb[81].mxu1 }
 0x813   : > { %v3297_v7 = vpop.f32.mrb[82].mxu1 }
 0x814   : > { %v3516_v9 = vpack.c.bf16 %v3297_v7, %v3293_v50  ;;  %v3299_v16 = vpop.f32.mrb[83].mxu1  ;;  %v3701_v7 = vld [vmem:[%s8114_s12 + $0x48] sm:$0xff] }
 0x815   : > { %v3517_v23 = vpack.c.bf16 %v3299_v16, %v3295_v58 }
 0x819   : > { %v3340_v10 = vpop.f32.mrb[84].mxu1 }
 0x81a   : > { %v3348_v41 = vsel %vm3347_vm10, %v3340_v10, 0.0  ;;  %v3342_v11 = vpop.f32.mrb[85].mxu1  ;;  %v3713_v10 = vld [vmem:[%s8114_s12 + $0xa8] sm:$0xff] }
 0x81b   : > { %v3349_v32 = vsel %vm3347_vm10, %v3342_v11, 0.0  ;;  %v3344_v12 = vpop.f32.mrb[86].mxu1 }
 0x81c   : > { %v3350_v24 = vadd.f32 %v3349_v32, %v3348_v41  ;;  %v3345_v19 = vpop.f32.mrb[87].mxu1  ;;  %v3717_v32 = vld [vmem:[%s8114_s12 + $0xc8] sm:$0xff] }
 0x81d   : > { %v3721_v12 = vld [vmem:[%s8114_s12 + $0xe8] sm:$0xff] }
 0x81e   : > { %3351 = vadd.xlane.f32.xlu1 %v3350_v24  ;;  %v5074_v19 = vcombine.high %v3717_v32, %v3721_v12 }
 0x8ab   : > { %v3352_v31 = vpop.xlane.xlu1 %3351 }
 0x8ac   : > { %v3353_v29 = vmul.f32 0.00390625, %v3352_v31  ;;  %v5073_v31 = vcombine.low %v3717_v32, %v3721_v12  ;;  %v8348_v32 = vld [vmem:[#allocation13_spill] sm:$0xff] }
 0x8ae   : > { %v3355_v27 = vadd.f32 %v3354_v51, %v3353_v29  ;;  %v3729_v51 = vld [vmem:[%s8114_s12 + $0x128] sm:$0xff] }
 0x8af   : > { %v5082_v29 = vcombine.high %v3725_v59, %v3729_v51 }
 0x8b0   : > { %v3356_v6 = vmul.f32 0.2, %v3355_v27 }
 0x8b2   : > { %v3357_v46 = vmax.f32 %v3355_v27, %v3356_v6  ;;  %v3733_v27 = vld [vmem:[%s8114_s12 + $0x148] sm:$0xff] }
 0x8b3   : > { %v3737_v6 = vld [vmem:[%s8114_s12 + $0x168] sm:$0xff] }
 0x8b4   : > { %v3362_v5 = vpack.c.bf16 %v3357_v46, %v3357_v46  ;;  %v5081_v46 = vcombine.low %v3725_v59, %v3729_v51  ;;  %v8350_v59 = vld [vmem:[#allocation14_spill] sm:$0xff] }
 0x8b6   : > { %5396 = vmatprep.subr.msk.bf16.mxu1 %vm3384_vm15, %v3362_v5  ;;  %v3386_v20 = vsel %vm3384_vm15, %v3362_v5, 0  ;;  %v5090_v5 = vcombine.high %v3733_v27, %v3737_v6 }
 0x8b7   : > { %5231 = vmatpush3.bf16.msra.mxu1 %v3386_v20  ;;  %v3741_v20 = vld [vmem:[%s8114_s12 + $0x188] sm:$0xff] }
 0x8b8   : > { %3534 = vmatprep.subr.bf16.mxu1 %v3515_v63  ;;  %v3697_v63 = vld [vmem:[%s8114_s12 + $0x28] sm:$0xff] }
 0x8b9   : > { %v5049_v50 = vcombine.low %v3693_v3, %v3697_v63  ;;  %v5050_v58 = vcombine.high %v3693_v3, %v3697_v63  ;;  %v8345_v3 = vld [vmem:[#allocation6_spill] sm:$0xff] }
 0x8ba   : > { %5233 = vmatmul.mubr.msk.bf16.vlgmr.msra.gmra.mrb[88].mxu1 %vm3377_vm14, %v5699_v45  ;;  %v3745_v45 = vld [vmem:[%s8114_s12 + $0x1a8] sm:$0xff] }
 0x8bb   : > { %3535 = vmatpush1.bf16.msra.mxu1 %v3514_v21  ;;  %3566 = vmatprep.mubr.bf16.mxu1 %v8340_v34  ;;  %v3659_v21 = vld [vmem:[%s8113_s11 + $0x18] sm:$0xff] }
 0x8bc   : > { %3536 = vmatprep.subr.bf16.mxu1 %v3517_v23  ;;  %v3709_v23 = vld [vmem:[%s8114_s12 + $0x88] sm:$0xff]  ;;  %4513 = vmatprep.subr.bf16.mxu0 %v5050_v58 }
 0x8bd   : > { %4514 = vmatpush1.bf16.msra.mxu0 %v5049_v50  ;;  %v5066_v11 = vcombine.high %v3709_v23, %v3713_v10  ;;  %v5065_v24 = vcombine.low %v3709_v23, %v3713_v10  ;;  %v8346_v50 = vld [vmem:[#allocation8_spill] sm:$0xff]  ;;  %v3692_v23 = vld [vmem:[%s8114_s12] sm:$0xff] }
 0x8be   : > { %v3696_v10 = vld [vmem:[%s8114_s12 + $0x20] sm:$0xff] }
 0x8bf   : > { %3537 = vmatpush1.bf16.msra.mxu1 %v3516_v9  ;;  %v3705_v9 = vld [vmem:[%s8114_s12 + $0x68] sm:$0xff] }
 0x8c0   : > { %3603 = vmatprep.subr.bf16.mxu1 %v8334_v57  ;;  %v5058_v16 = vcombine.high %v3701_v7, %v3705_v9  ;;  %v5057_v41 = vcombine.low %v3701_v7, %v3705_v9 }
 0x8c2   : > { %5041 = vmatmul.mubr.msk.bf16.vlgmr.msra.gmra.mrb[92].mxu1 %vm608_vm8, %v5700_v40  ;;  %4515 = vmatprep.subr.bf16.mxu0 %v5058_v16  ;;  %v5089_v40 = vcombine.low %v3733_v27, %v3737_v6  ;;  %v5048_v27 = vcombine.high %v3692_v23, %v3696_v10  ;;  %v3700_v6 = vld [vmem:[%s8114_s12 + $0x40] sm:$0xff] }
 0x8c3   : > { %3604 = vmatpush1.bf16.msra.mxu1 %v8335_v13  ;;  %3576 = vmatprep.mubr.bf16.mxu1 %v8340_v34 }
 0x8c4   : > { %3605 = vmatprep.subr.bf16.mxu1 %v8336_v4  ;;  %4516 = vmatpush1.bf16.msra.mxu0 %v5057_v41  ;;  %v8347_v41 = vld [vmem:[#allocation15_spill] sm:$0xff] }
 0x8c5   : > { %4517 = vmatprep.subr.bf16.mxu0 %v5066_v11 }
 0x8c7   : > { %3606 = vmatpush1.bf16.msra.mxu1 %v8337_v14 }
 0x8c8   : > { %4518 = vmatpush1.bf16.msra.mxu0 %v5065_v24  ;;  %v8349_v24 = vld [vmem:[#allocation12_spill] sm:$0xff] }
 0x8c9   : > { %4519 = vmatprep.subr.bf16.mxu0 %v5074_v19 }
 0x8ca   : > { %5042 = vmatmul.mubr.msk.bf16.gmra.mrb[96].mxu1 %vm608_vm8, %v5701_v53  ;;  %v8343_v53 = vld [vmem:[#allocation9_spill] sm:$0xff] }
 0x8cb   : > { %3635 = vmatprep.mubr.bf16.mxu1 %v8340_v34 }
 0x8cc   : > { %4520 = vmatpush1.bf16.msra.mxu0 %v5073_v31 }
 0x8cd   : > { %4521 = vmatprep.subr.bf16.mxu0 %v5082_v29 }
 0x8d0   : > { %4522 = vmatpush1.bf16.msra.mxu0 %v5081_v46  ;;  %v3704_v46 = vld [vmem:[%s8114_s12 + $0x60] sm:$0xff] }
 0x8d1   : > { %4523 = vmatprep.subr.bf16.mxu0 %v5090_v5  ;;  %v5702_v5 = vld [vmem:[%s8111_s9] sm:$0xff]  }
 0x8d4   : > { %4524 = vmatpush1.bf16.msra.mxu0 %v5089_v40  ;;  %v3708_v40 = vld [vmem:[%s8114_s12 + $0x80] sm:$0xff] }
 0x98d   : > { %v5234_v28 = vpop.f32.mrb[88].mxu1 }
 0x98e   : > { %v3431_v17 = vadd.f32 %v5234_v28, %v3365_v8  ;;  %v3422_v56 = vpop.f32.mrb[89].mxu1  ;;  %v5098_v8 = vcombine.high %v3741_v20, %v3745_v45  ;;  %v3753_v28 = vld [vmem:[%s8114_s12 + $0x1e8] sm:$0xff] }
 0x98f   : > { %v3423_v42 = vadd.f32 %v3422_v56, %v3363_v54  ;;  %v5235_v49 = vpop.f32.mrb[90].mxu1  ;;  %v3749_v54 = vld [vmem:[%s8114_s12 + $0x1c8] sm:$0xff] }
 0x990   : > { %v3439_v62 = vsub.f32 0.0, %v3431_v17  ;;  %v3434_v60 = vadd.f32 %v5235_v49, %v3366_v25  ;;  %v3425_v36 = vpop.f32.mrb[91].mxu1  ;;  %v5097_v25 = vcombine.low %v3741_v20, %v3745_v45  ;;  %4525 = vmatprep.subr.bf16.mxu0 %v5098_v8  ;;  %v5106_v17 = vcombine.high %v3749_v54, %v3753_v28  ;;  %v3757_v56 = vld [vmem:[%s8114_s12 + $0x208] sm:$0xff]  ;;  %v3712_v8 = vld [vmem:[%s8114_s12 + $0xa0] sm:$0xff] }
 0x991   : > { %v3437_v55 = vsub.f32 0.0, %v3423_v42  ;;  %v3426_v26 = vadd.f32 %v3425_v36, %v3364_v52  ;;  %v3761_v52 = vld [vmem:[%s8114_s12 + $0x228] sm:$0xff]  ;;  %v5105_v42 = vcombine.low %v3749_v54, %v3753_v28  ;;  %v5047_v20 = vcombine.low %v3692_v23, %v3696_v10  ;;  %v3800_v23 = vld [vmem:[%s8114_s12 + $0x360] sm:$0xff] }
 0x992   : > { %v3445_v39 = vmul.f32 1.442695, %v3439_v62  ;;  %v3440_v61 = vsub.f32 0.0, %v3434_v60  ;;  %4526 = vmatpush1.bf16.msra.mxu0 %v5097_v25  ;;  %v5114_v49 = vcombine.high %v3757_v56, %v3761_v52  ;;  %v3765_v62 = vld [vmem:[%s8114_s12 + $0x248] sm:$0xff]  ;;  %v5113_v36 = vcombine.low %v3757_v56, %v3761_v52  ;;  %v3716_v25 = vld [vmem:[%s8114_s12 + $0xc0] sm:$0xff] }
 0x993   : > { %v3441_v18 = vmul.f32 1.442695, %v3437_v55  ;;  %v3438_v38 = vsub.f32 0.0, %v3426_v26  ;;  %4527 = vmatprep.subr.bf16.mxu0 %v5106_v17  ;;  %v3769_v60 = vld [vmem:[%s8114_s12 + $0x268] sm:$0xff]  ;;  %v5056_v45 = vcombine.high %v3700_v6, %v3704_v46  ;;  %v5055_v54 = vcombine.low %v3700_v6, %v3704_v46  ;;  %v3720_v17 = vld [vmem:[%s8114_s12 + $0xe0] sm:$0xff] }
 0x994   : > { %5896 = vpow2.f32 %v3445_v39  ;;  %v3447_v33 = vmul.f32 1.442695, %v3440_v61  ;;  %v5122_v55 = vcombine.high %v3765_v62, %v3769_v60  ;;  %v3773_v26 = vld [vmem:[%s8114_s12 + $0x288] sm:$0xff]  ;;  %v5064_v28 = vcombine.high %v3708_v40, %v3712_v8  ;;  %v3816_v6 = vld [vmem:[%s8114_s12 + $0x3e0] sm:$0xff] }
 0x995   : > { %5898 = vpow2.f32 %v3441_v18  ;;  %v3443_v15 = vmul.f32 1.442695, %v3438_v38  ;;  %v3777_v39 = vld [vmem:[%s8114_s12 + $0x2a8] sm:$0xff]  ;;  %v5121_v18 = vcombine.low %v3765_v62, %v3769_v60  ;;  %v5063_v52 = vcombine.low %v3708_v40, %v3712_v8 }
 0x996   : > { %4528 = vmatpush1.bf16.msra.mxu0 %v5105_v42  ;;  %v5130_v38 = vcombine.high %v3773_v26, %v3777_v39  ;;  %v3781_v61 = vld [vmem:[%s8114_s12 + $0x2c8] sm:$0xff]  ;;  %v3724_v42 = vld [vmem:[%s8114_s12 + $0x100] sm:$0xff]  ;;  %v5071_v62 = vcombine.low %v3716_v25, %v3720_v17 }
 0x997   : > { %5900 = vpow2.f32 %v3443_v15  ;;  %4529 = vmatprep.subr.bf16.mxu0 %v5114_v49  ;;  %v3785_v15 = vld [vmem:[%s8114_s12 + $0x2e8] sm:$0xff]  ;;  %v3728_v49 = vld [vmem:[%s8114_s12 + $0x120] sm:$0xff] }
 0x998   : > { %5902 = vpow2.f32 %v3447_v33  ;;  %v5129_v33 = vcombine.low %v3773_v26, %v3777_v39  ;;  %v5703_v56 = vld [vmem:[%s8111_s9 + $0x8] sm:$0xff]   ;;  %v5080_v60 = vcombine.high %v3724_v42, %v3728_v49  ;;  %v5079_v26 = vcombine.low %v3724_v42, %v3728_v49 }
 0x999   : > { %v3813_v46 = vld [vmem:[%s8114_s12 + $0x3c8] sm:$0xff] }
 0x99a   : > { %4530 = vmatpush1.bf16.msra.mxu0 %v5113_v36  ;;  %v3732_v36 = vld [vmem:[%s8114_s12 + $0x140] sm:$0xff] }
 0x99b   : > { %4531 = vmatprep.subr.bf16.mxu0 %v5122_v55  ;;  %v3736_v55 = vld [vmem:[%s8114_s12 + $0x160] sm:$0xff] }
 0x99c   : > { %v5088_v39 = vcombine.high %v3732_v36, %v3736_v55 }
 0x99e   : > { %v5897_v37 = vpop.eup %5896  ;;  %4532 = vmatpush1.bf16.msra.mxu0 %v5121_v18  ;;  %v3740_v18 = vld [vmem:[%s8114_s12 + $0x180] sm:$0xff] }
 0x99f   : > { %v5899_v44 = vpop.eup %5898  ;;  %v3451_v2 = vadd.f32 1.0, %v5897_v37  ;;  %4533 = vmatprep.subr.bf16.mxu0 %v5130_v38  ;;  %v5138_v37 = vcombine.high %v3781_v61, %v3785_v15  ;;  %v3744_v38 = vld [vmem:[%s8114_s12 + $0x1a0] sm:$0xff] }
 0x9a0   : > { %v3449_v30 = vadd.f32 1.0, %v5899_v44  ;;  %v3789_v44 = vld [vmem:[%s8114_s12 + $0x308] sm:$0xff] }
 0x9a1   : > { %5904 = vrcp.f32 %v3451_v2  ;;  %v5901_v57 = vpop.eup %5900  ;;  %v3793_v2 = vld [vmem:[%s8114_s12 + $0x328] sm:$0xff] }
 0x9a2   : > { %5906 = vrcp.f32 %v3449_v30  ;;  %v3450_v13 = vadd.f32 1.0, %v5901_v57  ;;  %v5903_v4 = vpop.eup %5902  ;;  %4534 = vmatpush1.bf16.msra.mxu0 %v5129_v33  ;;  %v5137_v30 = vcombine.low %v3781_v61, %v3785_v15  ;;  %v5146_v57 = vcombine.high %v3789_v44, %v3793_v2  ;;  %v3748_v33 = vld [vmem:[%s8114_s12 + $0x1c0] sm:$0xff] }
 0x9a3   : > { %v3452_v14 = vadd.f32 1.0, %v5903_v4  ;;  %4535 = vmatprep.subr.bf16.mxu0 %v5138_v37  ;;  %v3801_v4 = vld [vmem:[%s8114_s12 + $0x368] sm:$0xff]  ;;  %v5087_v61 = vcombine.low %v3732_v36, %v3736_v55  ;;  %v5096_v15 = vcombine.high %v3740_v18, %v3744_v38  ;;  %v3752_v37 = vld [vmem:[%s8114_s12 + $0x1e0] sm:$0xff] }
 0x9a4   : > { %5908 = vrcp.f32 %v3450_v13  ;;  %v3797_v13 = vld [vmem:[%s8114_s12 + $0x348] sm:$0xff] }
 0x9a5   : > { %5910 = vrcp.f32 %v3452_v14  ;;  %v5145_v14 = vcombine.low %v3789_v44, %v3793_v2  ;;  %v5095_v44 = vcombine.low %v3740_v18, %v3744_v38  ;;  %v5104_v2 = vcombine.high %v3748_v33, %v3752_v37  ;;  %v3702_v38 = vld [vmem:[%s8114_s12 + $0x50] sm:$0xff] }
 0x9a6   : > { %4536 = vmatpush1.bf16.msra.mxu0 %v5137_v30  ;;  %v3756_v30 = vld [vmem:[%s8114_s12 + $0x200] sm:$0xff] }
 0x9a7   : > { %4537 = vmatprep.subr.bf16.mxu0 %v5146_v57  ;;  %v3760_v57 = vld [vmem:[%s8114_s12 + $0x220] sm:$0xff] }
 0x9aa   : > { %4538 = vmatpush1.bf16.msra.mxu0 %v5145_v14  ;;  %v3764_v14 = vld [vmem:[%s8114_s12 + $0x240] sm:$0xff] }
 0x9ab   : > { %v5905_v1 = vpop.eup %5904 }
 0x9ac   : > { %3478 = vperm.xlu0 %5575, %v5905_v1   ;;  %v5907_v0 = vpop.eup %5906  ;;  %v5154_v1 = vcombine.high %v3797_v13, %v3801_v4 }
 0x9ae   : > { %v5909_v47 = vpop.eup %5908  ;;  %4539 = vmatprep.subr.bf16.mxu0 %v5154_v1  ;;  %v3768_v1 = vld [vmem:[%s8114_s12 + $0x260] sm:$0xff] }
 0x9af   : > { %v5911_v43 = vpop.eup %5910 }
 0x9b0   : > { %3468 = vperm.xlu0 %5575, %v5907_v0   ;;  %v5153_v0 = vcombine.low %v3797_v13, %v3801_v4  ;;  %v5103_v13 = vcombine.low %v3748_v33, %v3752_v37  ;;  %v5112_v4 = vcombine.high %v3756_v30, %v3760_v57  ;;  %v3706_v37 = vld [vmem:[%s8114_s12 + $0x70] sm:$0xff] }
 0x9b2   : > { %4540 = vmatpush1.bf16.msra.mxu0 %v5153_v0  ;;  %v5111_v0 = vcombine.low %v3756_v30, %v3760_v57 }
 0x9b4   : > { %3473 = vperm.xlu0 %5575, %v5909_v47  }
 0x9b8   : > { %3483 = vperm.xlu0 %5575, %v5911_v43  }
 0x9bc   : > { %3662 = vperm.xlu0 %5575, %v3656_v22  }
 0x9c0   : > { %3667 = vperm.xlu0 %5575, %v3657_v35  }
 0x9c4   : > { %3672 = vperm.xlu0 %5575, %v3658_v48   ;;  %v8344_v48 = vld [vmem:[#allocation7_spill] sm:$0xff] }
 0x9c8   : > { %3677 = vperm.xlu0 %5575, %v3659_v21  }
 0xa2b   : > { %v3479_v47 = vpop.permute.xlu0 %3478 }
 0xa2c   : > { %v3498_v11 = vmul.f32 %v3479_v47, %v8347_v41  ;;  %v3499_v12 = vmul.f32 %v3479_v47, %v8348_v32  ;;  %v5120_v47 = vcombine.high %v3764_v14, %v3768_v1  ;;  %v3804_v32 = vld [vmem:[%s8114_s12 + $0x380] sm:$0xff] }
 0xa2f   : > { %v3469_v43 = vpop.permute.xlu0 %3468 }
 0xa30   : > { %v3494_v35 = vmul.f32 %v3469_v43, %v8343_v53  ;;  %v3495_v21 = vmul.f32 %v3469_v43, %v8344_v48  ;;  %v3772_v43 = vld [vmem:[%s8114_s12 + $0x280] sm:$0xff]  ;;  %v5119_v53 = vcombine.low %v3764_v14, %v3768_v1  ;;  %v3710_v14 = vld [vmem:[%s8114_s12 + $0x90] sm:$0xff] }
 0xa31   : > { %v3780_v48 = vld [vmem:[%s8114_s12 + $0x2c0] sm:$0xff]  ;;  %v3714_v1 = vld [vmem:[%s8114_s12 + $0xb0] sm:$0xff] }
 0xa33   : > { %v3474_v22 = vpop.permute.xlu0 %3473 }
 0xa34   : > { %v3496_v63 = vmul.f32 %v3474_v22, %v8345_v3  ;;  %v3497_v58 = vmul.f32 %v3474_v22, %v8346_v50  ;;  %v3776_v22 = vld [vmem:[%s8114_s12 + $0x2a0] sm:$0xff] }
 0xa35   : > { %v5127_v3 = vcombine.low %v3772_v43, %v3776_v22  ;;  %v3788_v50 = vld [vmem:[%s8114_s12 + $0x300] sm:$0xff] }
 0xa36   : > { %v3506_v7 = vpack.c.bf16 %v3496_v63, %v3494_v35  ;;  %v3507_v9 = vpack.c.bf16 %v3497_v58, %v3495_v21  ;;  %v5128_v35 = vcombine.high %v3772_v43, %v3776_v22  ;;  %v3784_v21 = vld [vmem:[%s8114_s12 + $0x2e0] sm:$0xff]  ;;  %v3715_v43 = vld [vmem:[%s8114_s12 + $0xb8] sm:$0xff] }
 0xa37   : > { %v3484_v16 = vpop.permute.xlu0 %3483  ;;  %v5136_v63 = vcombine.high %v3780_v48, %v3784_v21  ;;  %v3792_v58 = vld [vmem:[%s8114_s12 + $0x320] sm:$0xff] }
 0xa38   : > { %v3500_v19 = vmul.f32 %v3484_v16, %v8349_v24  ;;  %v3501_v51 = vmul.f32 %v3484_v16, %v8350_v59  ;;  %3607 = vmatprep.subr.bf16.mxu1 %v3507_v9  ;;  %v5144_v9 = vcombine.high %v3788_v50, %v3792_v58  ;;  %v3796_v16 = vld [vmem:[%s8114_s12 + $0x340] sm:$0xff]  ;;  %v5143_v10 = vcombine.low %v3788_v50, %v3792_v58  ;;  %v3805_v24 = vld [vmem:[%s8114_s12 + $0x388] sm:$0xff] }
 0xa39   : > { %3608 = vmatpush1.bf16.msra.mxu1 %v3506_v7  ;;  %v5135_v7 = vcombine.low %v3780_v48, %v3784_v21  ;;  %v5152_v41 = vcombine.high %v3796_v16, %v3800_v23  ;;  %v5059_v48 = vcombine.low %v3702_v38, %v3706_v37 }
 0xa3a   : > { %v3508_v31 = vpack.c.bf16 %v3500_v19, %v3498_v11  ;;  %v3509_v29 = vpack.c.bf16 %v3501_v51, %v3499_v12  ;;  %v5151_v11 = vcombine.low %v3796_v16, %v3800_v23  ;;  %v3808_v12 = vld [vmem:[%s8114_s12 + $0x3a0] sm:$0xff]  ;;  %v3809_v51 = vld [vmem:[%s8114_s12 + $0x3a8] sm:$0xff]  ;;  %v3718_v23 = vld [vmem:[%s8114_s12 + $0xd0] sm:$0xff] }
 0xa3b   : > { %v5159_v19 = vcombine.low %v3804_v32, %v3808_v12  ;;  %v5160_v59 = vcombine.high %v3804_v32, %v3808_v12  ;;  %v3663_v49 = vpop.permute.xlu0 %3662  ;;  %v3723_v32 = vld [vmem:[%s8114_s12 + $0xf8] sm:$0xff] }
 0xa3c   : > { %3609 = vmatprep.subr.bf16.mxu1 %v3509_v29  ;;  %v5162_v29 = vcombine.high %v3805_v24, %v3809_v51 }
 0xa3d   : > { %3610 = vmatpush1.bf16.msra.mxu1 %v3508_v31  ;;  %v5161_v31 = vcombine.low %v3805_v24, %v3809_v51  ;;  %v5067_v24 = vcombine.low %v3710_v14, %v3714_v1 }
 0xa3e   : > { %4460 = vmatprep.subr.bf16.mxu1 %v5048_v27  ;;  %4541 = vmatprep.subr.bf16.mxu0 %v5162_v29  ;;  %v3812_v27 = vld [vmem:[%s8114_s12 + $0x3c0] sm:$0xff]  ;;  %v3730_v29 = vld [vmem:[%s8114_s12 + $0x130] sm:$0xff] }
 0xa3f   : > { %4542 = vmatpush1.bf16.msra.mxu0 %v5161_v31 }
 0xa40   : > { %5045 = vmatmul.mubr.msk.bf16.vlgmr.msra.gmra.mrb[92].mxu1 %vm2210_vm7, %v5702_v5  ;;  %v5168_v5 = vcombine.high %v3812_v27, %v3816_v6 }
 0xa41   : > { %3645 = vmatprep.mubr.bf16.mxu1 %v8340_v34  ;;  %4461 = vmatpush1.bf16.msra.mxu1 %v5047_v20  ;;  %v5072_v34 = vcombine.high %v3716_v25, %v3720_v17  ;;  %v3817_v20 = vld [vmem:[%s8114_s12 + $0x3e8] sm:$0xff]  ;;  %v3695_v25 = vld [vmem:[%s8114_s12 + $0x18] sm:$0xff] }
 0xa42   : > { %4462 = vmatprep.subr.bf16.mxu1 %v5056_v45  ;;  %v5167_v45 = vcombine.low %v3812_v27, %v3816_v6  ;;  %v5169_v40 = vcombine.low %v3813_v46, %v3817_v20  ;;  %v5170_v8 = vcombine.high %v3813_v46, %v3817_v20  ;;  %v3727_v27 = vld [vmem:[%s8114_s12 + $0x118] sm:$0xff] }
 0xa43   : > { %v3731_v6 = vld [vmem:[%s8114_s12 + $0x138] sm:$0xff] }
 0xa44   : > { %4543 = vmatprep.subr.bf16.mxu0 %v5170_v8  ;;  %v3738_v8 = vld [vmem:[%s8114_s12 + $0x170] sm:$0xff] }
 0xa45   : > { %4463 = vmatpush1.bf16.msra.mxu1 %v5055_v54  ;;  %v3694_v54 = vld [vmem:[%s8114_s12 + $0x10] sm:$0xff]  ;;  %4544 = vmatpush1.bf16.msra.mxu0 %v5169_v40 }
 0xa46   : > { %4464 = vmatprep.subr.bf16.mxu1 %v5064_v28  ;;  %v3698_v28 = vld [vmem:[%s8114_s12 + $0x30] sm:$0xff] }
 0xa47   : > { %v5051_v17 = vcombine.low %v3694_v54, %v3698_v28  ;;  %v3734_v40 = vld [vmem:[%s8114_s12 + $0x150] sm:$0xff] }
 0xa48   : > { %5046 = vmatmul.mubr.msk.bf16.gmra.mrb[96].mxu1 %vm2210_vm7, %v5703_v56  ;;  %v5052_v56 = vcombine.high %v3694_v54, %v3698_v28  ;;  %v3735_v54 = vld [vmem:[%s8114_s12 + $0x158] sm:$0xff] }
 0xa49   : > { %4465 = vmatpush1.bf16.msra.mxu1 %v5063_v52  ;;  %v3699_v52 = vld [vmem:[%s8114_s12 + $0x38] sm:$0xff] }
 0xa4a   : > { %4466 = vmatprep.subr.bf16.mxu1 %v5072_v34  ;;  %v5053_v34 = vcombine.low %v3695_v25, %v3699_v52  ;;  %v5054_v42 = vcombine.high %v3695_v25, %v3699_v52  ;;  %v3739_v28 = vld [vmem:[%s8114_s12 + $0x178] sm:$0xff] }
 0xa4b   : > { %v5094_v52 = vcombine.high %v3735_v54, %v3739_v28 }
 0xa4c   : > { %4619 = vmatprep.subr.bf16.mxu0 %v5054_v42  ;;  %v3746_v42 = vld [vmem:[%s8114_s12 + $0x1b0] sm:$0xff] }
 0xa4d   : > { %4467 = vmatpush1.bf16.msra.mxu1 %v5071_v62  ;;  %v3668_v62 = vpop.permute.xlu0 %3667 }
 0xa4e   : > { %4468 = vmatprep.subr.bf16.mxu1 %v5080_v60 }
 0xa51   : > { %4469 = vmatpush1.bf16.msra.mxu1 %v5079_v26 }
 0xa52   : > { %4470 = vmatprep.subr.bf16.mxu1 %v5088_v39 }
 0xa55   : > { %4471 = vmatpush1.bf16.msra.mxu1 %v5087_v61  ;;  %v3673_v61 = vpop.permute.xlu0 %3672 }
 0xa56   : > { %4472 = vmatprep.subr.bf16.mxu1 %v5096_v15 }
 0xa59   : > { %4473 = vmatpush1.bf16.msra.mxu1 %v5095_v44  ;;  %v3703_v44 = vld [vmem:[%s8114_s12 + $0x58] sm:$0xff] }
 0xa5a   : > { %4474 = vmatprep.subr.bf16.mxu1 %v5104_v2  ;;  %v3707_v2 = vld [vmem:[%s8114_s12 + $0x78] sm:$0xff] }
 0xa5b   : > { %v5061_v21 = vcombine.low %v3703_v44, %v3707_v2 }
 0xa5d   : > { %4475 = vmatpush1.bf16.msra.mxu1 %v5103_v13  ;;  %v5060_v13 = vcombine.high %v3702_v38, %v3706_v37  ;;  %v3751_v38 = vld [vmem:[%s8114_s12 + $0x1d8] sm:$0xff] }
 0xa5e   : > { %4476 = vmatprep.subr.bf16.mxu1 %v5112_v4  ;;  %v5062_v4 = vcombine.high %v3703_v44, %v3707_v2  ;;  %v3758_v2 = vld [vmem:[%s8114_s12 + $0x210] sm:$0xff] }
 0xa61   : > { %4477 = vmatpush1.bf16.msra.mxu1 %v5111_v0 }
 0xa62   : > { %4478 = vmatprep.subr.bf16.mxu1 %v5120_v47  ;;  %v3711_v47 = vld [vmem:[%s8114_s12 + $0x98] sm:$0xff] }
 0xa65   : > { %4479 = vmatpush1.bf16.msra.mxu1 %v5119_v53  ;;  %v3678_v53 = vpop.permute.xlu0 %3677 }
 0xa66   : > { %4480 = vmatprep.subr.bf16.mxu1 %v5128_v35 }
 0xa69   : > { %4481 = vmatpush1.bf16.msra.mxu1 %v5127_v3  ;;  %v5068_v3 = vcombine.high %v3710_v14, %v3714_v1 }
 0xa6a   : > { %4482 = vmatprep.subr.bf16.mxu1 %v5136_v63 }
 0xa6d   : > { %4483 = vmatpush1.bf16.msra.mxu1 %v5135_v7  ;;  %v5070_v7 = vcombine.high %v3711_v47, %v3715_v43 }
 0xa6e   : > { %4484 = vmatprep.subr.bf16.mxu1 %v5144_v9 }
 0xa71   : > { %4485 = vmatpush1.bf16.msra.mxu1 %v5143_v10 }
 0xa72   : > { %4486 = vmatprep.subr.bf16.mxu1 %v5152_v41  ;;  %v3722_v41 = vld [vmem:[%s8114_s12 + $0xf0] sm:$0xff] }
 0xa73   : > { %v5076_v51 = vcombine.high %v3718_v23, %v3722_v41  ;;  %v5075_v46 = vcombine.low %v3718_v23, %v3722_v41 }
 0xa75   : > { %4487 = vmatpush1.bf16.msra.mxu1 %v5151_v11  ;;  %v3719_v11 = vld [vmem:[%s8114_s12 + $0xd8] sm:$0xff] }
 0xa76   : > { %4488 = vmatprep.subr.bf16.mxu1 %v5160_v59  ;;  %v3726_v59 = vld [vmem:[%s8114_s12 + $0x110] sm:$0xff]  ;;  %v5078_v31 = vcombine.high %v3719_v11, %v3723_v32 }
 0xa77   : > { %v5084_v20 = vcombine.high %v3726_v59, %v3730_v29  ;;  %v5083_v25 = vcombine.low %v3726_v59, %v3730_v29  ;;  %v3787_v59 = vld [vmem:[%s8114_s12 + $0x2f8] sm:$0xff] }
 0xa79   : > { %4489 = vmatpush1.bf16.msra.mxu1 %v5159_v19  ;;  %v5069_v19 = vcombine.low %v3711_v47, %v3715_v43  ;;  %v3766_v43 = vld [vmem:[%s8114_s12 + $0x250] sm:$0xff] }
 0xa7a   : > { %4490 = vmatprep.subr.bf16.mxu1 %v5168_v5  ;;  %v5077_v5 = vcombine.low %v3719_v11, %v3723_v32  ;;  %v3782_v32 = vld [vmem:[%s8114_s12 + $0x2d0] sm:$0xff] }
 0xa7d   : > { %4491 = vmatpush1.bf16.msra.mxu1 %v5167_v45  ;;  %v5086_v45 = vcombine.high %v3727_v27, %v3731_v6 }
 0xa7e   : > { %4566 = vmatprep.subr.bf16.mxu1 %v5052_v56  ;;  %v5092_v56 = vcombine.high %v3734_v40, %v3738_v8 }
 0xb13   : > { %v3637_v60 = vpop.f32.mrb[92].mxu1 }
 0xb14   : > { %v3639_v36 = vpop.f32.mrb[93].mxu1  ;;  %v3680_v26 = vadd.f32 %v3663_v49, %v3637_v60  ;;  %v5091_v60 = vcombine.low %v3734_v40, %v3738_v8 }
 0xb15   : > { %v3641_v55 = vpop.f32.mrb[94].mxu1  ;;  %v3681_v15 = vadd.f32 %v3663_v49, %v3639_v36  ;;  %v3743_v49 = vld [vmem:[%s8114_s12 + $0x198] sm:$0xff]  ;;  %v5093_v36 = vcombine.low %v3735_v54, %v3739_v28  ;;  %v3798_v28 = vld [vmem:[%s8114_s12 + $0x350] sm:$0xff] }
 0xb16   : > { %v3682_v39 = vadd.f32 %v3668_v62, %v3641_v55  ;;  %v3643_v18 = vpop.f32.mrb[95].mxu1 }
 0xb17   : > { %v3683_v33 = vadd.f32 %v3668_v62, %v3643_v18  ;;  %v3747_v62 = vld [vmem:[%s8114_s12 + $0x1b8] sm:$0xff]  ;;  %v3754_v18 = vld [vmem:[%s8114_s12 + $0x1f0] sm:$0xff] }
 0xb18   : > { %v7875_v30 = vpack.c.bf16 %v3682_v39, %v3680_v26  ;;  %v5102_v26 = vcombine.high %v3743_v49, %v3747_v62  ;;  %v3750_v39 = vld [vmem:[%s8114_s12 + $0x1d0] sm:$0xff] }
 0xb19   : > { %v3689_v57 = vpack.c.bf16 %v3683_v33, %v3681_v15  ;;  %v5101_v33 = vcombine.low %v3743_v49, %v3747_v62  ;;  %v5108_v37 = vcombine.high %v3750_v39, %v3754_v18  ;;  %v5107_v14 = vcombine.low %v3750_v39, %v3754_v18  ;;  %v3806_v62 = vld [vmem:[%s8114_s12 + $0x390] sm:$0xff] }
 0xb1b   : > { %v3647_v0 = vpop.f32.mrb[96].mxu1  ;;  %4492 = vmatprep.mubr.bf16.mxu1 %v3689_v57  ;;  %4545 = vmatprep.mubr.bf16.mxu0 %v3689_v57 }
 0xb1c   : > { %v3649_v22 = vpop.f32.mrb[97].mxu1  ;;  %4493 = vmatmul.mubr.bf16.vlgmr.msra.gmra.mrb[100].mxu1 %v7875_v30  ;;  %4546 = vmatmul.mubr.bf16.vlgmr.msra.gmra.mrb[16].mxu0 %v7875_v30  ;;  %v3684_v63 = vadd.f32 %v3673_v61, %v3647_v0 }
 0xb1d   : > { %4567 = vmatpush1.bf16.msra.mxu1 %v5051_v17  ;;  %4620 = vmatpush1.bf16.msra.mxu0 %v5053_v34  ;;  %v3651_v35 = vpop.f32.mrb[98].mxu1  ;;  %v3685_v9 = vadd.f32 %v3673_v61, %v3649_v22  ;;  %v5085_v17 = vcombine.low %v3727_v27, %v3731_v6  ;;  %v3742_v34 = vld [vmem:[%s8114_s12 + $0x190] sm:$0xff]  ;;  %v3755_v61 = vld [vmem:[%s8114_s12 + $0x1f8] sm:$0xff] }
 0xb1e   : > { %v3686_v50 = vadd.f32 %v3678_v53, %v3651_v35  ;;  %v3653_v58 = vpop.f32.mrb[99].mxu1  ;;  %4568 = vmatprep.subr.bf16.mxu1 %v5060_v13  ;;  %4621 = vmatprep.subr.bf16.mxu0 %v5062_v4  ;;  %v5100_v55 = vcombine.high %v3742_v34, %v3746_v42  ;;  %v5099_v15 = vcombine.low %v3742_v34, %v3746_v42  ;;  %v3759_v13 = vld [vmem:[%s8114_s12 + $0x218] sm:$0xff]  ;;  %v3770_v22 = vld [vmem:[%s8114_s12 + $0x270] sm:$0xff] }
 0xb1f   : > { %v3687_v16 = vadd.f32 %v3678_v53, %v3653_v58  ;;  %v5110_v44 = vcombine.high %v3751_v38, %v3755_v61  ;;  %v3763_v4 = vld [vmem:[%s8114_s12 + $0x238] sm:$0xff]  ;;  %v5109_v1 = vcombine.low %v3751_v38, %v3755_v61  ;;  %v3778_v58 = vld [vmem:[%s8114_s12 + $0x2b0] sm:$0xff] }
 0xb20   : > { %v7894_v10 = vpack.c.bf16 %v3686_v50, %v3684_v63  ;;  %v5118_v47 = vcombine.high %v3759_v13, %v3763_v4  ;;  %v3767_v53 = vld [vmem:[%s8114_s12 + $0x258] sm:$0xff]  ;;  %v3774_v50 = vld [vmem:[%s8114_s12 + $0x290] sm:$0xff] }
 0xb21   : > { %v7905_v12 = vpack.c.bf16 %v3687_v16, %v3685_v9  ;;  %4569 = vmatpush1.bf16.msra.mxu1 %v5059_v48  ;;  %4622 = vmatpush1.bf16.msra.mxu0 %v5061_v21  ;;  %v3771_v35 = vld [vmem:[%s8114_s12 + $0x278] sm:$0xff]  ;;  %v5117_v21 = vcombine.low %v3759_v13, %v3763_v4  ;;  %v5123_v16 = vcombine.low %v3766_v43, %v3770_v22  ;;  %v3790_v6 = vld [vmem:[%s8114_s12 + $0x310] sm:$0xff] }
 0xb22   : > { %4570 = vmatprep.subr.bf16.mxu1 %v5068_v3  ;;  %4623 = vmatprep.subr.bf16.mxu0 %v5070_v7  ;;  %v5124_v3 = vcombine.high %v3766_v43, %v3770_v22  ;;  %v5126_v63 = vcombine.high %v3767_v53, %v3771_v35  ;;  %v3775_v7 = vld [vmem:[%s8114_s12 + $0x298] sm:$0xff]  ;;  %v5125_v23 = vcombine.low %v3767_v53, %v3771_v35  ;;  %v3814_v61 = vld [vmem:[%s8114_s12 + $0x3d0] sm:$0xff] }
 0xb23   : > { %4502 = vmatprep.mubr.bf16.mxu1 %v7905_v12  ;;  %4555 = vmatprep.mubr.bf16.mxu0 %v7905_v12  ;;  %v3779_v9 = vld [vmem:[%s8114_s12 + $0x2b8] sm:$0xff]  ;;  %v5132_v41 = vcombine.high %v3774_v50, %v3778_v58 }
 0xb24   : > { %4503 = vmatmul.mubr.bf16.gmra.mrb[104].mxu1 %v7894_v10  ;;  %4556 = vmatmul.mubr.bf16.gmra.mrb[20].mxu0 %v7894_v10  ;;  %v5134_v11 = vcombine.high %v3775_v7, %v3779_v9 }
 0xb25   : > { %4571 = vmatpush1.bf16.msra.mxu1 %v5067_v24  ;;  %4624 = vmatpush1.bf16.msra.mxu0 %v5069_v19  ;;  %v3786_v24 = vld [vmem:[%s8114_s12 + $0x2f0] sm:$0xff]  ;;  %v3783_v19 = vld [vmem:[%s8114_s12 + $0x2d8] sm:$0xff] }
 0xb26   : > { %4598 = vmatprep.mubr.bf16.mxu1 %v3689_v57  ;;  %4651 = vmatprep.mubr.bf16.mxu0 %v3689_v57  ;;  %v3762_v57 = vld [vmem:[%s8114_s12 + $0x230] sm:$0xff]  ;;  %v5140_v29 = vcombine.high %v3782_v32, %v3786_v24  ;;  %v5142_v27 = vcombine.high %v3783_v19, %v3787_v59  ;;  %v5141_v40 = vcombine.low %v3783_v19, %v3787_v59 }
 0xb27   : > { %4572 = vmatprep.subr.bf16.mxu1 %v5076_v51  ;;  %4625 = vmatprep.subr.bf16.mxu0 %v5078_v31  ;;  %v5116_v0 = vcombine.high %v3758_v2, %v3762_v57  ;;  %v5115_v48 = vcombine.low %v3758_v2, %v3762_v57  ;;  %v5131_v51 = vcombine.low %v3774_v50, %v3778_v58 }
 0xb28   : > { %v5133_v31 = vcombine.low %v3775_v7, %v3779_v9 }
 0xb29   : > { %4573 = vmatpush1.bf16.msra.mxu1 %v5075_v46  ;;  %4626 = vmatpush1.bf16.msra.mxu0 %v5077_v5  ;;  %v3794_v46 = vld [vmem:[%s8114_s12 + $0x330] sm:$0xff]  ;;  %v3791_v5 = vld [vmem:[%s8114_s12 + $0x318] sm:$0xff] }
 0xb2a   : > { %4574 = vmatprep.subr.bf16.mxu1 %v5084_v20  ;;  %4627 = vmatprep.subr.bf16.mxu0 %v5086_v45  ;;  %v3795_v20 = vld [vmem:[%s8114_s12 + $0x338] sm:$0xff]  ;;  %v5139_v45 = vcombine.low %v3782_v32, %v3786_v24  ;;  %v5148_v8 = vcombine.high %v3790_v6, %v3794_v46 }
 0xb2b   : > { %v5150_v54 = vcombine.high %v3791_v5, %v3795_v20  ;;  %v5149_v34 = vcombine.low %v3791_v5, %v3795_v20 }
 0xb2d   : > { %4575 = vmatpush1.bf16.msra.mxu1 %v5083_v25  ;;  %4628 = vmatpush1.bf16.msra.mxu0 %v5085_v17  ;;  %v3802_v25 = vld [vmem:[%s8114_s12 + $0x370] sm:$0xff]  ;;  %v3799_v17 = vld [vmem:[%s8114_s12 + $0x358] sm:$0xff] }
 0xb2e   : > { %4576 = vmatprep.subr.bf16.mxu1 %v5092_v56  ;;  %4629 = vmatprep.subr.bf16.mxu0 %v5094_v52  ;;  %v3803_v56 = vld [vmem:[%s8114_s12 + $0x378] sm:$0xff]  ;;  %v5147_v52 = vcombine.low %v3790_v6, %v3794_v46  ;;  %v5156_v42 = vcombine.high %v3798_v28, %v3802_v25 }
 0xb2f   : > { %v5158_v49 = vcombine.high %v3799_v17, %v3803_v56  ;;  %v5157_v39 = vcombine.low %v3799_v17, %v3803_v56 }
 0xb31   : > { %4577 = vmatpush1.bf16.msra.mxu1 %v5091_v60  ;;  %4630 = vmatpush1.bf16.msra.mxu0 %v5093_v36  ;;  %v3810_v60 = vld [vmem:[%s8114_s12 + $0x3b0] sm:$0xff]  ;;  %v3807_v36 = vld [vmem:[%s8114_s12 + $0x398] sm:$0xff] }
 0xb32   : > { %4578 = vmatprep.subr.bf16.mxu1 %v5100_v55  ;;  %4631 = vmatprep.subr.bf16.mxu0 %v5102_v26  ;;  %v3811_v55 = vld [vmem:[%s8114_s12 + $0x3b8] sm:$0xff]  ;;  %v5155_v26 = vcombine.low %v3798_v28, %v3802_v25  ;;  %v5164_v18 = vcombine.high %v3806_v62, %v3810_v60 }
 0xb33   : > { %v5166_v38 = vcombine.high %v3807_v36, %v3811_v55  ;;  %v5165_v2 = vcombine.low %v3807_v36, %v3811_v55 }
 0xb35   : > { %4579 = vmatpush1.bf16.msra.mxu1 %v5099_v15  ;;  %4632 = vmatpush1.bf16.msra.mxu0 %v5101_v33  ;;  %v3818_v15 = vld [vmem:[%s8114_s12 + $0x3f0] sm:$0xff]  ;;  %v3815_v33 = vld [vmem:[%s8114_s12 + $0x3d8] sm:$0xff] }
 0xb36   : > { %4580 = vmatprep.subr.bf16.mxu1 %v5108_v37  ;;  %4633 = vmatprep.subr.bf16.mxu0 %v5110_v44  ;;  %v3819_v37 = vld [vmem:[%s8114_s12 + $0x3f8] sm:$0xff]  ;;  %v5163_v44 = vcombine.low %v3806_v62, %v3810_v60  ;;  %v5172_v57 = vcombine.high %v3814_v61, %v3818_v15  ;;  %v5171_v4 = vcombine.low %v3814_v61, %v3818_v15 }
 0xb37   : > { %v5174_v13 = vcombine.high %v3815_v33, %v3819_v37 }
 0xb39   : > { %4581 = vmatpush1.bf16.msra.mxu1 %v5107_v14  ;;  %4634 = vmatpush1.bf16.msra.mxu0 %v5109_v1  ;;  %v5173_v14 = vcombine.low %v3815_v33, %v3819_v37 }
 0xb3a   : > { %4582 = vmatprep.subr.bf16.mxu1 %v5116_v0  ;;  %4635 = vmatprep.subr.bf16.mxu0 %v5118_v47 }
 0xb3d   : > { %4583 = vmatpush1.bf16.msra.mxu1 %v5115_v48  ;;  %4636 = vmatpush1.bf16.msra.mxu0 %v5117_v21 }
 0xb3e   : > { %4584 = vmatprep.subr.bf16.mxu1 %v5124_v3  ;;  %4637 = vmatprep.subr.bf16.mxu0 %v5126_v63 }
 0xb41   : > { %4585 = vmatpush1.bf16.msra.mxu1 %v5123_v16  ;;  %4638 = vmatpush1.bf16.msra.mxu0 %v5125_v23 }
 0xb42   : > { %4586 = vmatprep.subr.bf16.mxu1 %v5132_v41  ;;  %4639 = vmatprep.subr.bf16.mxu0 %v5134_v11 }
 0xb45   : > { %4587 = vmatpush1.bf16.msra.mxu1 %v5131_v51  ;;  %4640 = vmatpush1.bf16.msra.mxu0 %v5133_v31 }
 0xb46   : > { %4588 = vmatprep.subr.bf16.mxu1 %v5140_v29  ;;  %4641 = vmatprep.subr.bf16.mxu0 %v5142_v27 }
 0xb49   : > { %4589 = vmatpush1.bf16.msra.mxu1 %v5139_v45  ;;  %4642 = vmatpush1.bf16.msra.mxu0 %v5141_v40 }
 0xb4a   : > { %4590 = vmatprep.subr.bf16.mxu1 %v5148_v8  ;;  %4643 = vmatprep.subr.bf16.mxu0 %v5150_v54 }
 0xb4d   : > { %4591 = vmatpush1.bf16.msra.mxu1 %v5147_v52  ;;  %4644 = vmatpush1.bf16.msra.mxu0 %v5149_v34 }
 0xb4e   : > { %4592 = vmatprep.subr.bf16.mxu1 %v5156_v42  ;;  %4645 = vmatprep.subr.bf16.mxu0 %v5158_v49 }
 0xb51   : > { %4593 = vmatpush1.bf16.msra.mxu1 %v5155_v26  ;;  %4646 = vmatpush1.bf16.msra.mxu0 %v5157_v39 }
 0xb52   : > { %4594 = vmatprep.subr.bf16.mxu1 %v5164_v18  ;;  %4647 = vmatprep.subr.bf16.mxu0 %v5166_v38 }
 0xb55   : > { %4595 = vmatpush1.bf16.msra.mxu1 %v5163_v44  ;;  %4648 = vmatpush1.bf16.msra.mxu0 %v5165_v2 }
 0xb56   : > { %4596 = vmatprep.subr.bf16.mxu1 %v5172_v57  ;;  %4649 = vmatprep.subr.bf16.mxu0 %v5174_v13 }
 0xb59   : > { %4597 = vmatpush1.bf16.msra.mxu1 %v5171_v4  ;;  %4650 = vmatpush1.bf16.msra.mxu0 %v5173_v14 }
 0xb5c   : > { %4599 = vmatmul.mubr.bf16.vlgmr.msra.gmra.mrb[108].mxu1 %v7875_v30  ;;  %4652 = vmatmul.mubr.bf16.vlgmr.msra.gmra.mrb[24].mxu0 %v7875_v30 }
 0xb5d   : > { %4608 = vmatprep.mubr.bf16.mxu1 %v7905_v12  ;;  %4661 = vmatprep.mubr.bf16.mxu0 %v7905_v12 }
 0xb64   : > { %4609 = vmatmul.mubr.bf16.gmra.mrb[112].mxu1 %v7894_v10  ;;  %4662 = vmatmul.mubr.bf16.gmra.mrb[28].mxu0 %v7894_v10 }
 0xbef   : > { %v4494_v30 = vpop.f32.mrb[100].mxu1  ;;  %v4547_v12 = vpop.f32.mrb[16].mxu0 }
 0xbf0   : > { %4672 = vst [vmem:[%s8065_s14] sm:$0xff] %v4494_v30  ;;  %4674 = vst [vmem:[%s8065_s14 + $0x10] sm:$0xff] %v4547_v12  ;;  %v4496_v10 = vpop.f32.mrb[101].mxu1  ;;  %v4549_v1 = vpop.f32.mrb[17].mxu0 }
 0xbf1   : > { %4673 = vst [vmem:[%s8065_s14 + $0x8] sm:$0xff] %v4496_v10  ;;  %4675 = vst [vmem:[%s8065_s14 + $0x18] sm:$0xff] %v4549_v1  ;;  %v4498_v0 = vpop.f32.mrb[102].mxu1  ;;  %v4551_v47 = vpop.f32.mrb[18].mxu0 }
 0xbf2   : > { %4680 = vst [vmem:[%s8065_s14 + $0x40] sm:$0xff] %v4498_v0  ;;  %4682 = vst [vmem:[%s8065_s14 + $0x50] sm:$0xff] %v4551_v47  ;;  %v4500_v43 = vpop.f32.mrb[103].mxu1  ;;  %v4553_v22 = vpop.f32.mrb[19].mxu0 }
 0xbf3   : > { %4681 = vst [vmem:[%s8065_s14 + $0x48] sm:$0xff] %v4500_v43  ;;  %4683 = vst [vmem:[%s8065_s14 + $0x58] sm:$0xff] %v4553_v22 }
 0xbf7   : > { %v4504_v53 = vpop.f32.mrb[104].mxu1  ;;  %v4557_v35 = vpop.f32.mrb[20].mxu0 }
 0xbf8   : > { %4688 = vst [vmem:[%s8065_s14 + $0x80] sm:$0xff] %v4504_v53  ;;  %4690 = vst [vmem:[%s8065_s14 + $0x90] sm:$0xff] %v4557_v35  ;;  %v4506_v48 = vpop.f32.mrb[105].mxu1  ;;  %v4559_v21 = vpop.f32.mrb[21].mxu0 }
 0xbf9   : > { %4689 = vst [vmem:[%s8065_s14 + $0x88] sm:$0xff] %v4506_v48  ;;  %4691 = vst [vmem:[%s8065_s14 + $0x98] sm:$0xff] %v4559_v21  ;;  %v4508_v3 = vpop.f32.mrb[106].mxu1  ;;  %v4561_v63 = vpop.f32.mrb[22].mxu0 }
 0xbfa   : > { %4696 = vst [vmem:[%s8065_s14 + $0xc0] sm:$0xff] %v4508_v3  ;;  %4698 = vst [vmem:[%s8065_s14 + $0xd0] sm:$0xff] %v4561_v63  ;;  %v4510_v50 = vpop.f32.mrb[107].mxu1  ;;  %v4563_v58 = vpop.f32.mrb[23].mxu0 }
 0xbfb   : > { %4697 = vst [vmem:[%s8065_s14 + $0xc8] sm:$0xff] %v4510_v50  ;;  %4699 = vst [vmem:[%s8065_s14 + $0xd8] sm:$0xff] %v4563_v58 }
 0xc2f   : > { %v4600_v7 = vpop.f32.mrb[108].mxu1  ;;  %v4653_v9 = vpop.f32.mrb[24].mxu0 }
 0xc30   : > { %4676 = vst [vmem:[%s8065_s14 + $0x20] sm:$0xff] %v4600_v7  ;;  %4678 = vst [vmem:[%s8065_s14 + $0x30] sm:$0xff] %v4653_v9  ;;  %v4602_v16 = vpop.f32.mrb[109].mxu1  ;;  %v4655_v23 = vpop.f32.mrb[25].mxu0 }
 0xc31   : > { %4677 = vst [vmem:[%s8065_s14 + $0x28] sm:$0xff] %v4602_v16  ;;  %4679 = vst [vmem:[%s8065_s14 + $0x38] sm:$0xff] %v4655_v23  ;;  %v4604_v41 = vpop.f32.mrb[110].mxu1  ;;  %v4657_v11 = vpop.f32.mrb[26].mxu0 }
 0xc32   : > { %4684 = vst [vmem:[%s8065_s14 + $0x60] sm:$0xff] %v4604_v41  ;;  %4686 = vst [vmem:[%s8065_s14 + $0x70] sm:$0xff] %v4657_v11  ;;  %v4606_v32 = vpop.f32.mrb[111].mxu1  ;;  %v4659_v24 = vpop.f32.mrb[27].mxu0 }
 0xc33   : > { %4685 = vst [vmem:[%s8065_s14 + $0x68] sm:$0xff] %v4606_v32  ;;  %4687 = vst [vmem:[%s8065_s14 + $0x78] sm:$0xff] %v4659_v24 }
 0xc37   : > { %v4610_v19 = vpop.f32.mrb[112].mxu1  ;;  %v4663_v59 = vpop.f32.mrb[28].mxu0 }
 0xc38   : > { %4692 = vst [vmem:[%s8065_s14 + $0xa0] sm:$0xff] %v4610_v19  ;;  %4694 = vst [vmem:[%s8065_s14 + $0xb0] sm:$0xff] %v4663_v59  ;;  %v4612_v51 = vpop.f32.mrb[113].mxu1  ;;  %v4665_v31 = vpop.f32.mrb[29].mxu0 }
 0xc39   : > { %4693 = vst [vmem:[%s8065_s14 + $0xa8] sm:$0xff] %v4612_v51  ;;  %4695 = vst [vmem:[%s8065_s14 + $0xb8] sm:$0xff] %v4665_v31  ;;  %v4614_v29 = vpop.f32.mrb[114].mxu1  ;;  %v4667_v27 = vpop.f32.mrb[30].mxu0 }
 0xc3a   : > { %4700 = vst [vmem:[%s8065_s14 + $0xe0] sm:$0xff] %v4614_v29  ;;  %4702 = vst [vmem:[%s8065_s14 + $0xf0] sm:$0xff] %v4667_v27  ;;  %v4616_v6 = vpop.f32.mrb[115].mxu1  ;;  %v4669_v46 = vpop.f32.mrb[31].mxu0 }
 0xc3b   : > { %4701 = vst [vmem:[%s8065_s14 + $0xe8] sm:$0xff] %v4616_v6  ;;  %4703 = vst [vmem:[%s8065_s14 + $0xf8] sm:$0xff] %v4669_v46 }
 0xc3c PF: > { %s23_s25 = sadd.s32 1, %s5918_s25  }
 0xc3d   : > { %p20_p4 = scmp.ge.s32.totalorder %s23_s25, 4  }
 0xc3f   :  { %22 = sbr.rel (!%p20_p4) target bundleno = 1 (0x1), region = 110 }

</bundles_post_ra>
